<compile_context>
chip_gen: v7x
topology: tpu7x:2x2x1
jax: 0.10.0
libtpu: 0.0.40
codegen_flags: <defaults>
</compile_context>

<pallas_src>
import math
import functools

import jax
import jax.numpy as jnp
from jax import lax
from jax.experimental import pallas as pl
from jax.experimental.pallas import tpu as pltpu


# ----------------------------- Fused decoder-stack kernel -----------------------------

def _decoder_stack_kernel(
    x0_ref, enc_ref, tmask_ref, smask_ref,
    na_ref, nb_ref,
    wqkv1_ref, bqkv1_ref, wo1_ref, bo1_ref,
    wq2_ref, bq2_ref, wkv2_ref, bkv2_ref, wo2_ref, bo2_ref,
    w1_ref, b1_ref, w2_ref, b2_ref,
    fa_ref, fb_ref,
    o_ref,
    *, heads, d_real, eps):
    layer = pl.program_id(1)                 # grid = (batch, layer); layer is the carry axis
    n_layers = pl.num_programs(1)

    S, Dp = o_ref.shape                      # lane-padded width Dp (multiple of 128)
    Sk = enc_ref.shape[0]
    dk = d_real // heads
    scale = 1.0 / math.sqrt(dk)
    mxu = jnp.bfloat16                       # matmul-operand dtype (accumulation stays f32)

    # Initialize the carried activation (resident output block) on the first layer.
    @pl.when(layer == 0)
    def _():
        o_ref[...] = x0_ref[...]

    xf = o_ref[...]                          # carried residual stream [S, Dp] f32; cols >= d_real are 0
    encf = enc_ref[...]                      # encoder outputs [Sk, Dp] f32 (zero-padded cols)
    na = na_ref[0]                           # [3, Dp] scales of the 3 per-layer Norms (zero-padded)
    nb = nb_ref[0]                           # [3, Dp] shifts

    # Norm statistics are taken over the real d_model columns only; padded cols of x are 0.
    valid = (lax.broadcasted_iota(jnp.int32, (1, Dp), 1) < d_real).astype(jnp.float32)

    def norm_rows(v, a_row, b_row):
        # PyTorch Norm: a * (x - mean) / (std + eps) + b, UNBIASED std (divide by d_model - 1).
        mean = jnp.sum(v, axis=-1, keepdims=True) * (1.0 / d_real)
        diff = v - mean
        var = jnp.sum(diff * diff * valid, axis=-1, keepdims=True) * (1.0 / (d_real - 1))
        inv = pl.reciprocal(jnp.sqrt(var) + eps)          # exact reciprocal
        return a_row * diff * inv + b_row                 # zero-padded a/b keep padded cols at 0

    def split_heads(m2d):
        # [L, d_real] -> [heads, L, dk]  (head-major operand for the batched dots)
        return jnp.stack([m2d[:, h * dk:(h + 1) * dk] for h in range(heads)], axis=0)

    def attention(q2d, k2d, v2d, add_mask):
        # q2d: [Lq, d_real]; k2d/v2d: [Lk, d_real]; add_mask: [Lq, Lk] additive f32.
        # One head-batched MXU dot for the scores and one for PV (no per-head matmul loop).
        qh = split_heads(q2d).astype(mxu)                 # [H, Lq, dk]
        kh = split_heads(k2d).astype(mxu)                 # [H, Lk, dk]
        vh = split_heads(v2d).astype(mxu)                 # [H, Lk, dk]
        s = jnp.einsum('hqd,hkd->hqk', qh, kh,
                       preferred_element_type=jnp.float32) * scale      # [H, Lq, Lk] f32
        s = s + add_mask[None, :, :]                      # mask add in f32
        s = s - jnp.max(s, axis=-1, keepdims=True)
        p = jnp.exp(s)
        p = p * pl.reciprocal(jnp.sum(p, axis=-1, keepdims=True))       # exact reciprocal
        ctx = jnp.einsum('hqk,hkd->hqd', p.astype(mxu), vh,
                         preferred_element_type=jnp.float32)            # [H, Lq, dk] f32
        return jnp.concatenate([ctx[h] for h in range(heads)], axis=-1)  # [Lq, d_real]

    # ---- sub-layer 1: masked self-attention (fused QKV projection) ----
    x2 = norm_rows(xf, na[0:1, :], nb[0:1, :])
    qkv = jnp.dot(x2.astype(mxu), wqkv1_ref[0],
                  preferred_element_type=jnp.float32) + bqkv1_ref[0]     # [S, 3*d_real]
    ctx = attention(qkv[:, 0:d_real], qkv[:, d_real:2 * d_real],
                    qkv[:, 2 * d_real:3 * d_real], tmask_ref[0])
    xf = xf + jnp.dot(ctx.astype(mxu), wo1_ref[0],
                      preferred_element_type=jnp.float32) + bo1_ref[0]

    # ---- sub-layer 2: cross-attention over encoder outputs (fused KV projection) ----
    x2 = norm_rows(xf, na[1:2, :], nb[1:2, :])
    qc = jnp.dot(x2.astype(mxu), wq2_ref[0],
                 preferred_element_type=jnp.float32) + bq2_ref[0]        # [S, d_real]
    kvc = jnp.dot(encf.astype(mxu), wkv2_ref[0],
                  preferred_element_type=jnp.float32) + bkv2_ref[0]      # [Sk, 2*d_real]
    ctx = attention(qc, kvc[:, 0:d_real], kvc[:, d_real:2 * d_real], smask_ref[0])
    xf = xf + jnp.dot(ctx.astype(mxu), wo2_ref[0],
                      preferred_element_type=jnp.float32) + bo2_ref[0]

    # ---- sub-layer 3: feed-forward (W1 + ReLU + W2 fused; hidden stays in VMEM) ----
    x2 = norm_rows(xf, na[2:3, :], nb[2:3, :])
    h = jnp.maximum(jnp.dot(x2.astype(mxu), w1_ref[0],
                            preferred_element_type=jnp.float32) + b1_ref[0], 0.0)
    xf = xf + jnp.dot(h.astype(mxu), w2_ref[0],
                      preferred_element_type=jnp.float32) + b2_ref[0]

    # Carry store is skipped on the last layer; only the final-Norm result is written there.
    @pl.when(layer != n_layers - 1)
    def _():
        o_ref[...] = xf

    @pl.when(layer == n_layers - 1)
    def _():
        o_ref[...] = norm_rows(xf, fa_ref[...], fb_ref[...])


# ----------------------------- Wrapper -----------------------------

def decoder_forward(trg, e_outputs, src_mask, trg_mask, packed, d_model, heads, n_layers):
    B, S = trg.shape
    Dr = d_model
    Sk = e_outputs.shape[1]
    Dp = packed["embed"].shape[1]            # lane-padded d_model (multiple of 128)
    L = packed["layers"]
    dff = L["w1"].shape[-1]
    assert Dr % heads == 0

    # TODO(synk): token-embedding gather (+ positional-encoding add) stays in plain JAX
    # (dynamic row gather); it could be moved in-kernel via a scalar-prefetch Element BlockSpec.
    x0 = jnp.take(packed["embed"], trg, axis=0) * math.sqrt(Dr) + packed["pe"][None, :S, :]
    x0 = x0.reshape(B * S, Dp).astype(jnp.float32)

    enc = jnp.pad(e_outputs.astype(jnp.float32),
                  ((0, 0), (0, 0), (0, Dp - Dr))).reshape(B * Sk, Dp)

    # Additive masks (masked_fill(mask == 0, -1e10)), reused by every layer inside the kernel.
    neg = jnp.float32(-1e10)
    trg_add = jnp.where(jnp.broadcast_to(trg_mask, (B, S, S)) == 0, neg, 0.0).astype(jnp.float32)
    src_add = jnp.where(jnp.broadcast_to(src_mask, (B, S, Sk)) == 0, neg, 0.0).astype(jnp.float32)

    per_b2 = lambda b, l: (b, 0)             # per-batch blocks, constant across the layer carry
    per_b3 = lambda b, l: (b, 0, 0)
    per_l3 = lambda b, l: (l, 0, 0)          # per-layer streamed weights
    const2 = lambda b, l: (0, 0)             # grid-constant (final Norm params)

    # (operand, block_shape, index_map) — also used to size the VMEM budget.
    triples = [
        (x0,          (S, Dp),         per_b2),
        (enc,         (Sk, Dp),        per_b2),
        (trg_add,     (1, S, S),       per_b3),
        (src_add,     (1, S, Sk),      per_b3),
        (L["na"],     (1, 3, Dp),      per_l3),
        (L["nb"],     (1, 3, Dp),      per_l3),
        (L["wqkv1"],  (1, Dp, 3 * Dr), per_l3),
        (L["bqkv1"],  (1, 1, 3 * Dr),  per_l3),
        (L["wo1"],    (1, Dr, Dp),     per_l3),
        (L["bo1"],    (1, 1, Dp),      per_l3),
        (L["wq2"],    (1, Dp, Dr),     per_l3),
        (L["bq2"],    (1, 1, Dr),      per_l3),
        (L["wkv2"],   (1, Dp, 2 * Dr), per_l3),
        (L["bkv2"],   (1, 1, 2 * Dr),  per_l3),
        (L["wo2"],    (1, Dr, Dp),     per_l3),
        (L["bo2"],    (1, 1, Dp),      per_l3),
        (L["w1"],     (1, Dp, dff),    per_l3),
        (L["b1"],     (1, 1, dff),     per_l3),
        (L["w2"],     (1, dff, Dp),    per_l3),
        (L["b2"],     (1, 1, Dp),      per_l3),
        (packed["norm_a"], (1, Dp),    const2),
        (packed["norm_b"], (1, Dp),    const2),
    ]
    in_specs = [pl.BlockSpec(bs, im) for _, bs, im in triples]
    operands = [a for a, _, _ in triples]

    # VMEM budget from the actual resident set (double-buffered blocks + output carry + slack).
    # 48 MiB cap is safe on v7x (64 MiB VMEM); raise toward ~100 MiB on v5e/v6e when scaling up.
    blk_bytes = sum(math.prod(bs) * a.dtype.itemsize for a, bs, _ in triples)
    blk_bytes += math.prod((S, Dp)) * 4
    vmem_limit = int(min(max(2 * blk_bytes + (8 << 20), 32 << 20), 48 << 20))

    kernel = functools.partial(_decoder_stack_kernel, heads=heads, d_real=Dr, eps=1e-6)

    out = pl.pallas_call(
        kernel,
        out_shape=jax.ShapeDtypeStruct((B * S, Dp), jnp.float32),
        grid=(B, n_layers),
        in_specs=in_specs,
        out_specs=pl.BlockSpec((S, Dp), per_b2),   # resident across the layer axis (carry)
        compiler_params=pltpu.CompilerParams(
            dimension_semantics=("parallel", "arbitrary"),   # batch parallel (v7x megacore)
            vmem_limit_bytes=vmem_limit,
        ),
    )(*operands)
    return out[:, :Dr].reshape(B, S, Dr)


# ----------------------------- Deterministic parameter init + packing -----------------------------

def make_pe_table(d_model, max_len=200):
    position = jnp.arange(max_len, dtype=jnp.float32)[:, None]
    div_term = jnp.exp(jnp.arange(0, d_model, 2, dtype=jnp.float32) * (-math.log(10000.0) / d_model))
    pe = jnp.zeros((max_len, d_model), jnp.float32)
    pe = pe.at[:, 0::2].set(jnp.sin(position * div_term))
    pe = pe.at[:, 1::2].set(jnp.cos(position * div_term))
    return pe


def init_linear(key, din, dout):
    k1, k2 = jax.random.split(key)
    bound = 1.0 / math.sqrt(din)
    w = jax.random.uniform(k1, (din, dout), jnp.float32, -bound, bound)
    b = jax.random.uniform(k2, (dout,), jnp.float32, -bound, bound)
    return w, b


def init_mha(key, d_model):
    ks = jax.random.split(key, 4)
    wq, bq = init_linear(ks[0], d_model, d_model)
    wk, bk = init_linear(ks[1], d_model, d_model)
    wv, bv = init_linear(ks[2], d_model, d_model)
    wo, bo = init_linear(ks[3], d_model, d_model)
    return wq, bq, wk, bk, wv, bv, wo, bo


def init_layer(key, d_model, d_ff):
    ks = jax.random.split(key, 4)
    wq1, bq1, wk1, bk1, wv1, bv1, wo1, bo1 = init_mha(ks[0], d_model)
    wq2, bq2, wk2, bk2, wv2, bv2, wo2, bo2 = init_mha(ks[1], d_model)
    w1, b1 = init_linear(ks[2], d_model, d_ff)
    w2, b2 = init_linear(ks[3], d_ff, d_model)
    D = d_model
    return dict(
        norm_a=jnp.ones((3, D), jnp.float32),                      # norm_1..norm_3 scales
        norm_b=jnp.zeros((3, D), jnp.float32),                     # norm_1..norm_3 shifts
        wqkv1=jnp.concatenate([wq1, wk1, wv1], axis=1),            # [D, 3D]
        bqkv1=jnp.concatenate([bq1, bk1, bv1]).reshape(1, 3 * D),
        wo1=wo1, bo1=bo1.reshape(1, D),
        wq2=wq2, bq2=bq2.reshape(1, D),
        wkv2=jnp.concatenate([wk2, wv2], axis=1),                  # [D, 2D]
        bkv2=jnp.concatenate([bk2, bv2]).reshape(1, 2 * D),
        wo2=wo2, bo2=bo2.reshape(1, D),
        w1=w1, b1=b1.reshape(1, d_ff),
        w2=w2, b2=b2.reshape(1, D),
    )


def init_decoder(key, vocab_size, d_model, n_layers, d_ff=2048):
    keys = jax.random.split(key, n_layers + 1)
    embed = jax.random.normal(keys[0], (vocab_size, d_model), jnp.float32)
    return dict(
        embed=embed,
        pe=make_pe_table(d_model),
        layers=[init_layer(keys[i + 1], d_model, d_ff) for i in range(n_layers)],
        norm_a=jnp.ones((d_model,), jnp.float32),
        norm_b=jnp.zeros((d_model,), jnp.float32),
    )


def pack_decoder_params(params, d_model, d_pad):
    """One-time packing (off the per-call path): zero-pad d_model -> d_pad lanes (128-multiple),
    stack per-layer params along a leading layer axis, cast streamed weight matrices to bf16."""
    Dr = d_model

    def padlast(x):   # zero-pad last dim to d_pad  (norm/bias pads stay 0 -> padded lanes stay 0)
        return jnp.pad(x, [(0, 0)] * (x.ndim - 1) + [(0, d_pad - x.shape[-1])])

    def padfirst(x):  # zero-pad first (input) dim to d_pad
        return jnp.pad(x, [(0, d_pad - x.shape[0])] + [(0, 0)] * (x.ndim - 1))

    plist = []
    for lyr in params["layers"]:
        plist.append(dict(
            na=padlast(lyr["norm_a"]),                               # [3, Dp]
            nb=padlast(lyr["norm_b"]),
            wqkv1=padfirst(lyr["wqkv1"]).astype(jnp.bfloat16),       # [Dp, 3Dr]
            bqkv1=lyr["bqkv1"],                                      # [1, 3Dr]
            wo1=padlast(lyr["wo1"]).astype(jnp.bfloat16),            # [Dr, Dp]
            bo1=padlast(lyr["bo1"]),                                 # [1, Dp]
            wq2=padfirst(lyr["wq2"]).astype(jnp.bfloat16),           # [Dp, Dr]
            bq2=lyr["bq2"],                                          # [1, Dr]
            wkv2=padfirst(lyr["wkv2"]).astype(jnp.bfloat16),         # [Dp, 2Dr]
            bkv2=lyr["bkv2"],                                        # [1, 2Dr]
            wo2=padlast(lyr["wo2"]).astype(jnp.bfloat16),            # [Dr, Dp]
            bo2=padlast(lyr["bo2"]),                                 # [1, Dp]
            w1=padfirst(lyr["w1"]).astype(jnp.bfloat16),             # [Dp, d_ff]
            b1=lyr["b1"],                                            # [1, d_ff]
            w2=padlast(lyr["w2"]).astype(jnp.bfloat16),              # [d_ff, Dp]
            b2=padlast(lyr["b2"]),                                   # [1, Dp]
        ))
    layers = {k: jnp.stack([p[k] for p in plist], axis=0) for k in plist[0]}
    return dict(
        embed=padlast(params["embed"]),                               # [vocab, Dp]
        pe=padlast(params["pe"]),                                     # [max_len, Dp]
        layers=layers,
        norm_a=padlast(params["norm_a"].reshape(1, Dr)),              # [1, Dp] (final Norm)
        norm_b=padlast(params["norm_b"].reshape(1, Dr)),
    )


# ----------------------------- Main -----------------------------

if __name__ == "__main__":
    vocab_size = 50
    d_model = 32
    N = 2
    heads = 4
    B = 2
    S_trg = 8
    S_src = 8

    key = jax.random.PRNGKey(0)
    k_params, k_trg, k_enc = jax.random.split(key, 3)

    params = init_decoder(k_params, vocab_size, d_model, N)
    d_pad = ((d_model + 127) // 128) * 128
    packed = pack_decoder_params(params, d_model, d_pad)     # one-time, off the hot path

    trg = jax.random.randint(k_trg, (B, S_trg), 0, vocab_size)            # [B, S_trg] token ids
    e_outputs = jax.random.normal(k_enc, (B, S_src, d_model), jnp.float32)
    src_mask = jnp.ones((B, 1, S_src), jnp.float32)                        # like PyTorch src_mask
    trg_mask = jnp.tril(jnp.ones((S_trg, S_trg), jnp.float32))[None].repeat(B, axis=0)  # causal

    fwd = jax.jit(functools.partial(decoder_forward, d_model=d_model, heads=heads, n_layers=N))
    out = fwd(trg, e_outputs, src_mask, trg_mask, packed)
    out = jax.block_until_ready(out)
    assert out.shape == (B, S_trg, d_model)
    assert bool(jnp.all(jnp.isfinite(out)))
    print("KERNEL_OK")
</pallas_src>

<mosaic_0001>
module attributes {stable_mosaic.version = 11 : i64} {
  func.func @_decoder_stack_kernel(%arg0: i32, %arg1: i32, %arg2: memref<8x128xf32, #tpu.memory_space<vmem>>, %arg3: memref<8x128xf32, #tpu.memory_space<vmem>>, %arg4: memref<1x8x8xf32, #tpu.memory_space<vmem>>, %arg5: memref<1x8x8xf32, #tpu.memory_space<vmem>>, %arg6: memref<1x3x128xf32, #tpu.memory_space<vmem>>, %arg7: memref<1x3x128xf32, #tpu.memory_space<vmem>>, %arg8: memref<1x128x96xbf16, #tpu.memory_space<vmem>>, %arg9: memref<1x1x96xf32, #tpu.memory_space<vmem>>, %arg10: memref<1x32x128xbf16, #tpu.memory_space<vmem>>, %arg11: memref<1x1x128xf32, #tpu.memory_space<vmem>>, %arg12: memref<1x128x32xbf16, #tpu.memory_space<vmem>>, %arg13: memref<1x1x32xf32, #tpu.memory_space<vmem>>, %arg14: memref<1x128x64xbf16, #tpu.memory_space<vmem>>, %arg15: memref<1x1x64xf32, #tpu.memory_space<vmem>>, %arg16: memref<1x32x128xbf16, #tpu.memory_space<vmem>>, %arg17: memref<1x1x128xf32, #tpu.memory_space<vmem>>, %arg18: memref<1x128x2048xbf16, #tpu.memory_space<vmem>>, %arg19: memref<1x1x2048xf32, #tpu.memory_space<vmem>>, %arg20: memref<1x2048x128xbf16, #tpu.memory_space<vmem>>, %arg21: memref<1x1x128xf32, #tpu.memory_space<vmem>>, %arg22: memref<1x128xf32, #tpu.memory_space<vmem>>, %arg23: memref<1x128xf32, #tpu.memory_space<vmem>>, %arg24: memref<8x128xf32, #tpu.memory_space<vmem>>) attributes {dimension_semantics = [#tpu.dimension_semantics<parallel>, #tpu.dimension_semantics<arbitrary>], iteration_bounds = array<i64: 2, 2>, scalar_prefetch = 0 : i64, scratch_operands = 0 : i64, tpu.core_type = #tpu.core_type<tc>, window_params = [{transform_indices = @transform_0, window_bounds = array<i64: 8, 128>}, {transform_indices = @transform_1, window_bounds = array<i64: 8, 128>}, {transform_indices = @transform_2, window_bounds = array<i64: 1, 8, 8>}, {transform_indices = @transform_3, window_bounds = array<i64: 1, 8, 8>}, {transform_indices = @transform_4, window_bounds = array<i64: 1, 3, 128>}, {transform_indices = @transform_5, window_bounds = array<i64: 1, 3, 128>}, {transform_indices = @transform_6, window_bounds = array<i64: 1, 128, 96>}, {transform_indices = @transform_7, window_bounds = array<i64: 1, 1, 96>}, {transform_indices = @transform_8, window_bounds = array<i64: 1, 32, 128>}, {transform_indices = @transform_9, window_bounds = array<i64: 1, 1, 128>}, {transform_indices = @transform_10, window_bounds = array<i64: 1, 128, 32>}, {transform_indices = @transform_11, window_bounds = array<i64: 1, 1, 32>}, {transform_indices = @transform_12, window_bounds = array<i64: 1, 128, 64>}, {transform_indices = @transform_13, window_bounds = array<i64: 1, 1, 64>}, {transform_indices = @transform_14, window_bounds = array<i64: 1, 32, 128>}, {transform_indices = @transform_15, window_bounds = array<i64: 1, 1, 128>}, {transform_indices = @transform_16, window_bounds = array<i64: 1, 128, 2048>}, {transform_indices = @transform_17, window_bounds = array<i64: 1, 1, 2048>}, {transform_indices = @transform_18, window_bounds = array<i64: 1, 2048, 128>}, {transform_indices = @transform_19, window_bounds = array<i64: 1, 1, 128>}, {pipeline_mode = #tpu.pipeline_mode<synchronous>, transform_indices = @transform_20, window_bounds = array<i64: 1, 128>}, {pipeline_mode = #tpu.pipeline_mode<synchronous>, transform_indices = @transform_21, window_bounds = array<i64: 1, 128>}, {transform_indices = @transform_22, window_bounds = array<i64: 8, 128>}]} {
    %c0_i32 = arith.constant 0 : i32
    %0 = arith.cmpi eq, %arg1, %c0_i32 : i32
    %1 = arith.extui %0 : i1 to i32
    %c0_i32_0 = arith.constant 0 : i32
    %2 = arith.cmpi ne, %1, %c0_i32_0 : i32
    scf.if %2 {
      %c0_93 = arith.constant 0 : index
      %c0_94 = arith.constant 0 : index
      %279 = vector.load %arg2[%c0_93, %c0_94] : memref<8x128xf32, #tpu.memory_space<vmem>>, vector<8x128xf32>
      %c0_95 = arith.constant 0 : index
      %c0_96 = arith.constant 0 : index
      %280 = vector.load %arg24[%c0_95, %c0_96] : memref<8x128xf32, #tpu.memory_space<vmem>>, vector<8x128xf32>
      tpu.vector_store %arg24[%c0_95, %c0_96], %279 {strides = array<i32>} : memref<8x128xf32, #tpu.memory_space<vmem>>, vector<8x128xf32>,
    } else {
    }
    %c0 = arith.constant 0 : index
    %c0_1 = arith.constant 0 : index
    %3 = vector.load %arg24[%c0, %c0_1] : memref<8x128xf32, #tpu.memory_space<vmem>>, vector<8x128xf32>
    %c0_2 = arith.constant 0 : index
    %c0_3 = arith.constant 0 : index
    %4 = vector.load %arg3[%c0_2, %c0_3] : memref<8x128xf32, #tpu.memory_space<vmem>>, vector<8x128xf32>
    %c0_4 = arith.constant 0 : index
    %c0_5 = arith.constant 0 : index
    %c0_6 = arith.constant 0 : index
    %5 = vector.load %arg6[%c0_4, %c0_5, %c0_6] : memref<1x3x128xf32, #tpu.memory_space<vmem>>, vector<1x3x128xf32>
    %6 = vector.shape_cast %5 : vector<1x3x128xf32> to vector<3x128xf32>
    %c0_7 = arith.constant 0 : index
    %c0_8 = arith.constant 0 : index
    %c0_9 = arith.constant 0 : index
    %7 = vector.load %arg7[%c0_7, %c0_8, %c0_9] : memref<1x3x128xf32, #tpu.memory_space<vmem>>, vector<1x3x128xf32>
    %8 = vector.shape_cast %7 : vector<1x3x128xf32> to vector<3x128xf32>
    %9 = tpu.iota {dimensions = array<i32: 1>} : vector<1x128xi32>
    %c32_i32 = arith.constant 32 : i32
    %10 = vector.broadcast %c32_i32 : i32 to vector<1x128xi32>
    %11 = arith.cmpi slt, %9, %10 : vector<1x128xi32>
    %12 = arith.extui %11 : vector<1x128xi1> to vector<1x128xi32>
    %13 = arith.sitofp %12 : vector<1x128xi32> to vector<1x128xf32>
    %14 = vector.extract_strided_slice %6 {offsets = [0, 0], sizes = [1, 128], strides = [1, 1]} : vector<3x128xf32> to vector<1x128xf32>
    %15 = vector.extract_strided_slice %8 {offsets = [0, 0], sizes = [1, 128], strides = [1, 1]} : vector<3x128xf32> to vector<1x128xf32>
    %cst = arith.constant dense<0.000000e+00> : vector<8xf32>
    %16 = vector.multi_reduction <add>, %3, %cst [1] : vector<8x128xf32> to vector<8xf32>
    %17 = vector.shape_cast %16 : vector<8xf32> to vector<8x1xf32>
    %cst_10 = arith.constant 3.125000e-02 : f32
    %18 = vector.broadcast %cst_10 : f32 to vector<8x1xf32>
    %19 = arith.mulf %17, %18 : vector<8x1xf32>
    %20 = vector.broadcast %19 : vector<8x1xf32> to vector<8x128xf32>
    %21 = arith.subf %3, %20 : vector<8x128xf32>
    %22 = arith.mulf %21, %21 : vector<8x128xf32>
    %23 = vector.broadcast %13 : vector<1x128xf32> to vector<8x128xf32>
    %24 = arith.mulf %22, %23 : vector<8x128xf32>
    %cst_11 = arith.constant dense<0.000000e+00> : vector<8xf32>
    %25 = vector.multi_reduction <add>, %24, %cst_11 [1] : vector<8x128xf32> to vector<8xf32>
    %26 = vector.shape_cast %25 : vector<8xf32> to vector<8x1xf32>
    %cst_12 = arith.constant 0.0322580636 : f32
    %27 = vector.broadcast %cst_12 : f32 to vector<8x1xf32>
    %28 = arith.mulf %26, %27 : vector<8x1xf32>
    %29 = math.sqrt %28 : vector<8x1xf32>
    %cst_13 = arith.constant 9.99999997E-7 : f32
    %30 = vector.broadcast %cst_13 : f32 to vector<8x1xf32>
    %31 = arith.addf %29, %30 : vector<8x1xf32>
    %32 = tpu.reciprocal %31 : vector<8x1xf32> -> vector<8x1xf32>
    %33 = vector.broadcast %14 : vector<1x128xf32> to vector<8x128xf32>
    %34 = arith.mulf %33, %21 : vector<8x128xf32>
    %35 = vector.broadcast %32 : vector<8x1xf32> to vector<8x128xf32>
    %36 = arith.mulf %34, %35 : vector<8x128xf32>
    %37 = vector.broadcast %15 : vector<1x128xf32> to vector<8x128xf32>
    %38 = arith.addf %36, %37 : vector<8x128xf32>
    %39 = arith.truncf %38 : vector<8x128xf32> to vector<8x128xbf16>
    %c0_14 = arith.constant 0 : index
    %c0_15 = arith.constant 0 : index
    %c0_16 = arith.constant 0 : index
    %40 = vector.load %arg8[%c0_14, %c0_15, %c0_16] : memref<1x128x96xbf16, #tpu.memory_space<vmem>>, vector<1x128x96xbf16>
    %41 = vector.shape_cast %40 : vector<1x128x96xbf16> to vector<128x96xbf16>
    %cst_17 = arith.constant dense<0.000000e+00> : vector<8x96xf32>
    %42 = tpu.matmul %39, %41, %cst_17 {dimension_numbers = #tpu.dot_dimension_numbers<[1], [0], [0], [1], [0, 0, 1, 1], [], []>} : vector<8x128xbf16>, vector<128x96xbf16>, vector<8x96xf32> -> vector<8x96xf32>
    %c0_18 = arith.constant 0 : index
    %c0_19 = arith.constant 0 : index
    %c0_20 = arith.constant 0 : index
    %43 = vector.load %arg9[%c0_18, %c0_19, %c0_20] : memref<1x1x96xf32, #tpu.memory_space<vmem>>, vector<1x1x96xf32>
    %44 = vector.shape_cast %43 : vector<1x1x96xf32> to vector<1x96xf32>
    %45 = vector.broadcast %44 : vector<1x96xf32> to vector<8x96xf32>
    %46 = arith.addf %42, %45 : vector<8x96xf32>
    %47 = vector.extract_strided_slice %46 {offsets = [0, 0], sizes = [8, 32], strides = [1, 1]} : vector<8x96xf32> to vector<8x32xf32>
    %48 = vector.extract_strided_slice %46 {offsets = [0, 32], sizes = [8, 32], strides = [1, 1]} : vector<8x96xf32> to vector<8x32xf32>
    %49 = vector.extract_strided_slice %46 {offsets = [0, 64], sizes = [8, 32], strides = [1, 1]} : vector<8x96xf32> to vector<8x32xf32>
    %c0_21 = arith.constant 0 : index
    %c0_22 = arith.constant 0 : index
    %c0_23 = arith.constant 0 : index
    %50 = vector.load %arg4[%c0_21, %c0_22, %c0_23] : memref<1x8x8xf32, #tpu.memory_space<vmem>>, vector<1x8x8xf32>
    %51 = vector.shape_cast %50 : vector<1x8x8xf32> to vector<8x8xf32>
    %52 = vector.extract_strided_slice %47 {offsets = [0, 0], sizes = [8, 8], strides = [1, 1]} : vector<8x32xf32> to vector<8x8xf32>
    %53 = vector.extract_strided_slice %47 {offsets = [0, 8], sizes = [8, 8], strides = [1, 1]} : vector<8x32xf32> to vector<8x8xf32>
    %54 = vector.extract_strided_slice %47 {offsets = [0, 16], sizes = [8, 8], strides = [1, 1]} : vector<8x32xf32> to vector<8x8xf32>
    %55 = vector.extract_strided_slice %47 {offsets = [0, 24], sizes = [8, 8], strides = [1, 1]} : vector<8x32xf32> to vector<8x8xf32>
    %56 = vector.shape_cast %52 : vector<8x8xf32> to vector<1x8x8xf32>
    %57 = vector.shape_cast %53 : vector<8x8xf32> to vector<1x8x8xf32>
    %58 = vector.shape_cast %54 : vector<8x8xf32> to vector<1x8x8xf32>
    %59 = vector.shape_cast %55 : vector<8x8xf32> to vector<1x8x8xf32>
    %60 = tpu.concatenate %56, %57, %58, %59 in 0 : vector<1x8x8xf32>, vector<1x8x8xf32>, vector<1x8x8xf32>, vector<1x8x8xf32> -> vector<4x8x8xf32>
    %61 = arith.truncf %60 : vector<4x8x8xf32> to vector<4x8x8xbf16>
    %62 = vector.extract_strided_slice %48 {offsets = [0, 0], sizes = [8, 8], strides = [1, 1]} : vector<8x32xf32> to vector<8x8xf32>
    %63 = vector.extract_strided_slice %48 {offsets = [0, 8], sizes = [8, 8], strides = [1, 1]} : vector<8x32xf32> to vector<8x8xf32>
    %64 = vector.extract_strided_slice %48 {offsets = [0, 16], sizes = [8, 8], strides = [1, 1]} : vector<8x32xf32> to vector<8x8xf32>
    %65 = vector.extract_strided_slice %48 {offsets = [0, 24], sizes = [8, 8], strides = [1, 1]} : vector<8x32xf32> to vector<8x8xf32>
    %66 = vector.shape_cast %62 : vector<8x8xf32> to vector<1x8x8xf32>
    %67 = vector.shape_cast %63 : vector<8x8xf32> to vector<1x8x8xf32>
    %68 = vector.shape_cast %64 : vector<8x8xf32> to vector<1x8x8xf32>
    %69 = vector.shape_cast %65 : vector<8x8xf32> to vector<1x8x8xf32>
    %70 = tpu.concatenate %66, %67, %68, %69 in 0 : vector<1x8x8xf32>, vector<1x8x8xf32>, vector<1x8x8xf32>, vector<1x8x8xf32> -> vector<4x8x8xf32>
    %71 = arith.truncf %70 : vector<4x8x8xf32> to vector<4x8x8xbf16>
    %72 = vector.extract_strided_slice %49 {offsets = [0, 0], sizes = [8, 8], strides = [1, 1]} : vector<8x32xf32> to vector<8x8xf32>
    %73 = vector.extract_strided_slice %49 {offsets = [0, 8], sizes = [8, 8], strides = [1, 1]} : vector<8x32xf32> to vector<8x8xf32>
    %74 = vector.extract_strided_slice %49 {offsets = [0, 16], sizes = [8, 8], strides = [1, 1]} : vector<8x32xf32> to vector<8x8xf32>
    %75 = vector.extract_strided_slice %49 {offsets = [0, 24], sizes = [8, 8], strides = [1, 1]} : vector<8x32xf32> to vector<8x8xf32>
    %76 = vector.shape_cast %72 : vector<8x8xf32> to vector<1x8x8xf32>
    %77 = vector.shape_cast %73 : vector<8x8xf32> to vector<1x8x8xf32>
    %78 = vector.shape_cast %74 : vector<8x8xf32> to vector<1x8x8xf32>
    %79 = vector.shape_cast %75 : vector<8x8xf32> to vector<1x8x8xf32>
    %80 = tpu.concatenate %76, %77, %78, %79 in 0 : vector<1x8x8xf32>, vector<1x8x8xf32>, vector<1x8x8xf32>, vector<1x8x8xf32> -> vector<4x8x8xf32>
    %81 = arith.truncf %80 : vector<4x8x8xf32> to vector<4x8x8xbf16>
    "tpu.trace_start"() <{level = 10 : i32, message = "hqd,hkd->hqk"}> : () -> ()
    %cst_24 = arith.constant dense<0.000000e+00> : vector<4x8x8xf32>
    %82 = tpu.matmul %61, %71, %cst_24 {dimension_numbers = #tpu.dot_dimension_numbers<[2], [2], [1], [1], [0, 0, 0, 1, 1, 1], [0], [0]>} : vector<4x8x8xbf16>, vector<4x8x8xbf16>, vector<4x8x8xf32> -> vector<4x8x8xf32>
    "tpu.trace_stop"() : () -> ()
    %cst_25 = arith.constant 0.353553385 : f32
    %83 = vector.broadcast %cst_25 : f32 to vector<4x8x8xf32>
    %84 = arith.mulf %82, %83 : vector<4x8x8xf32>
    %85 = vector.shape_cast %51 : vector<8x8xf32> to vector<1x8x8xf32>
    %86 = vector.broadcast %85 : vector<1x8x8xf32> to vector<4x8x8xf32>
    %87 = arith.addf %84, %86 : vector<4x8x8xf32>
    %cst_26 = arith.constant dense<0xFF800000> : vector<4x8xf32>
    %88 = vector.multi_reduction <maximumf>, %87, %cst_26 [2] : vector<4x8x8xf32> to vector<4x8xf32>
    %89 = vector.shape_cast %88 : vector<4x8xf32> to vector<4x8x1xf32>
    %90 = vector.broadcast %89 : vector<4x8x1xf32> to vector<4x8x8xf32>
    %91 = arith.subf %87, %90 : vector<4x8x8xf32>
    %92 = math.exp %91 : vector<4x8x8xf32>
    %cst_27 = arith.constant dense<0.000000e+00> : vector<4x8xf32>
    %93 = vector.multi_reduction <add>, %92, %cst_27 [2] : vector<4x8x8xf32> to vector<4x8xf32>
    %94 = vector.shape_cast %93 : vector<4x8xf32> to vector<4x8x1xf32>
    %95 = tpu.reciprocal %94 : vector<4x8x1xf32> -> vector<4x8x1xf32>
    %96 = vector.broadcast %95 : vector<4x8x1xf32> to vector<4x8x8xf32>
    %97 = arith.mulf %92, %96 : vector<4x8x8xf32>
    %98 = arith.truncf %97 : vector<4x8x8xf32> to vector<4x8x8xbf16>
    "tpu.trace_start"() <{level = 10 : i32, message = "hqk,hkd->hqd"}> : () -> ()
    %cst_28 = arith.constant dense<0.000000e+00> : vector<4x8x8xf32>
    %99 = tpu.matmul %98, %81, %cst_28 {dimension_numbers = #tpu.dot_dimension_numbers<[2], [1], [1], [2], [0, 0, 0, 1, 1, 2], [0], [0]>} : vector<4x8x8xbf16>, vector<4x8x8xbf16>, vector<4x8x8xf32> -> vector<4x8x8xf32>
    "tpu.trace_stop"() : () -> ()
    %100 = vector.extract_strided_slice %99 {offsets = [0, 0, 0], sizes = [1, 8, 8], strides = [1, 1, 1]} : vector<4x8x8xf32> to vector<1x8x8xf32>
    %101 = vector.shape_cast %100 : vector<1x8x8xf32> to vector<8x8xf32>
    %102 = vector.extract_strided_slice %99 {offsets = [1, 0, 0], sizes = [1, 8, 8], strides = [1, 1, 1]} : vector<4x8x8xf32> to vector<1x8x8xf32>
    %103 = vector.shape_cast %102 : vector<1x8x8xf32> to vector<8x8xf32>
    %104 = vector.extract_strided_slice %99 {offsets = [2, 0, 0], sizes = [1, 8, 8], strides = [1, 1, 1]} : vector<4x8x8xf32> to vector<1x8x8xf32>
    %105 = vector.shape_cast %104 : vector<1x8x8xf32> to vector<8x8xf32>
    %106 = vector.extract_strided_slice %99 {offsets = [3, 0, 0], sizes = [1, 8, 8], strides = [1, 1, 1]} : vector<4x8x8xf32> to vector<1x8x8xf32>
    %107 = vector.shape_cast %106 : vector<1x8x8xf32> to vector<8x8xf32>
    %108 = tpu.concatenate %101, %103, %105, %107 in 1 : vector<8x8xf32>, vector<8x8xf32>, vector<8x8xf32>, vector<8x8xf32> -> vector<8x32xf32>
    %109 = arith.truncf %108 : vector<8x32xf32> to vector<8x32xbf16>
    %c0_29 = arith.constant 0 : index
    %c0_30 = arith.constant 0 : index
    %c0_31 = arith.constant 0 : index
    %110 = vector.load %arg10[%c0_29, %c0_30, %c0_31] : memref<1x32x128xbf16, #tpu.memory_space<vmem>>, vector<1x32x128xbf16>
    %111 = vector.shape_cast %110 : vector<1x32x128xbf16> to vector<32x128xbf16>
    %cst_32 = arith.constant dense<0.000000e+00> : vector<8x128xf32>
    %112 = tpu.matmul %109, %111, %cst_32 {dimension_numbers = #tpu.dot_dimension_numbers<[1], [0], [0], [1], [0, 0, 1, 1], [], []>} : vector<8x32xbf16>, vector<32x128xbf16>, vector<8x128xf32> -> vector<8x128xf32>
    %113 = arith.addf %3, %112 : vector<8x128xf32>
    %c0_33 = arith.constant 0 : index
    %c0_34 = arith.constant 0 : index
    %c0_35 = arith.constant 0 : index
    %114 = vector.load %arg11[%c0_33, %c0_34, %c0_35] : memref<1x1x128xf32, #tpu.memory_space<vmem>>, vector<1x1x128xf32>
    %115 = vector.shape_cast %114 : vector<1x1x128xf32> to vector<1x128xf32>
    %116 = vector.broadcast %115 : vector<1x128xf32> to vector<8x128xf32>
    %117 = arith.addf %113, %116 : vector<8x128xf32>
    %118 = vector.extract_strided_slice %6 {offsets = [1, 0], sizes = [1, 128], strides = [1, 1]} : vector<3x128xf32> to vector<1x128xf32>
    %119 = vector.extract_strided_slice %8 {offsets = [1, 0], sizes = [1, 128], strides = [1, 1]} : vector<3x128xf32> to vector<1x128xf32>
    %cst_36 = arith.constant dense<0.000000e+00> : vector<8xf32>
    %120 = vector.multi_reduction <add>, %117, %cst_36 [1] : vector<8x128xf32> to vector<8xf32>
    %121 = vector.shape_cast %120 : vector<8xf32> to vector<8x1xf32>
    %cst_37 = arith.constant 3.125000e-02 : f32
    %122 = vector.broadcast %cst_37 : f32 to vector<8x1xf32>
    %123 = arith.mulf %121, %122 : vector<8x1xf32>
    %124 = vector.broadcast %123 : vector<8x1xf32> to vector<8x128xf32>
    %125 = arith.subf %117, %124 : vector<8x128xf32>
    %126 = arith.mulf %125, %125 : vector<8x128xf32>
    %127 = vector.broadcast %13 : vector<1x128xf32> to vector<8x128xf32>
    %128 = arith.mulf %126, %127 : vector<8x128xf32>
    %cst_38 = arith.constant dense<0.000000e+00> : vector<8xf32>
    %129 = vector.multi_reduction <add>, %128, %cst_38 [1] : vector<8x128xf32> to vector<8xf32>
    %130 = vector.shape_cast %129 : vector<8xf32> to vector<8x1xf32>
    %cst_39 = arith.constant 0.0322580636 : f32
    %131 = vector.broadcast %cst_39 : f32 to vector<8x1xf32>
    %132 = arith.mulf %130, %131 : vector<8x1xf32>
    %133 = math.sqrt %132 : vector<8x1xf32>
    %cst_40 = arith.constant 9.99999997E-7 : f32
    %134 = vector.broadcast %cst_40 : f32 to vector<8x1xf32>
    %135 = arith.addf %133, %134 : vector<8x1xf32>
    %136 = tpu.reciprocal %135 : vector<8x1xf32> -> vector<8x1xf32>
    %137 = vector.broadcast %118 : vector<1x128xf32> to vector<8x128xf32>
    %138 = arith.mulf %137, %125 : vector<8x128xf32>
    %139 = vector.broadcast %136 : vector<8x1xf32> to vector<8x128xf32>
    %140 = arith.mulf %138, %139 : vector<8x128xf32>
    %141 = vector.broadcast %119 : vector<1x128xf32> to vector<8x128xf32>
    %142 = arith.addf %140, %141 : vector<8x128xf32>
    %143 = arith.truncf %142 : vector<8x128xf32> to vector<8x128xbf16>
    %c0_41 = arith.constant 0 : index
    %c0_42 = arith.constant 0 : index
    %c0_43 = arith.constant 0 : index
    %144 = vector.load %arg12[%c0_41, %c0_42, %c0_43] : memref<1x128x32xbf16, #tpu.memory_space<vmem>>, vector<1x128x32xbf16>
    %145 = vector.shape_cast %144 : vector<1x128x32xbf16> to vector<128x32xbf16>
    %cst_44 = arith.constant dense<0.000000e+00> : vector<8x32xf32>
    %146 = tpu.matmul %143, %145, %cst_44 {dimension_numbers = #tpu.dot_dimension_numbers<[1], [0], [0], [1], [0, 0, 1, 1], [], []>} : vector<8x128xbf16>, vector<128x32xbf16>, vector<8x32xf32> -> vector<8x32xf32>
    %c0_45 = arith.constant 0 : index
    %c0_46 = arith.constant 0 : index
    %c0_47 = arith.constant 0 : index
    %147 = vector.load %arg13[%c0_45, %c0_46, %c0_47] : memref<1x1x32xf32, #tpu.memory_space<vmem>>, vector<1x1x32xf32>
    %148 = vector.shape_cast %147 : vector<1x1x32xf32> to vector<1x32xf32>
    %149 = vector.broadcast %148 : vector<1x32xf32> to vector<8x32xf32>
    %150 = arith.addf %146, %149 : vector<8x32xf32>
    %151 = arith.truncf %4 : vector<8x128xf32> to vector<8x128xbf16>
    %c0_48 = arith.constant 0 : index
    %c0_49 = arith.constant 0 : index
    %c0_50 = arith.constant 0 : index
    %152 = vector.load %arg14[%c0_48, %c0_49, %c0_50] : memref<1x128x64xbf16, #tpu.memory_space<vmem>>, vector<1x128x64xbf16>
    %153 = vector.shape_cast %152 : vector<1x128x64xbf16> to vector<128x64xbf16>
    %cst_51 = arith.constant dense<0.000000e+00> : vector<8x64xf32>
    %154 = tpu.matmul %151, %153, %cst_51 {dimension_numbers = #tpu.dot_dimension_numbers<[1], [0], [0], [1], [0, 0, 1, 1], [], []>} : vector<8x128xbf16>, vector<128x64xbf16>, vector<8x64xf32> -> vector<8x64xf32>
    %c0_52 = arith.constant 0 : index
    %c0_53 = arith.constant 0 : index
    %c0_54 = arith.constant 0 : index
    %155 = vector.load %arg15[%c0_52, %c0_53, %c0_54] : memref<1x1x64xf32, #tpu.memory_space<vmem>>, vector<1x1x64xf32>
    %156 = vector.shape_cast %155 : vector<1x1x64xf32> to vector<1x64xf32>
    %157 = vector.broadcast %156 : vector<1x64xf32> to vector<8x64xf32>
    %158 = arith.addf %154, %157 : vector<8x64xf32>
    %159 = vector.extract_strided_slice %158 {offsets = [0, 0], sizes = [8, 32], strides = [1, 1]} : vector<8x64xf32> to vector<8x32xf32>
    %160 = vector.extract_strided_slice %158 {offsets = [0, 32], sizes = [8, 32], strides = [1, 1]} : vector<8x64xf32> to vector<8x32xf32>
    %c0_55 = arith.constant 0 : index
    %c0_56 = arith.constant 0 : index
    %c0_57 = arith.constant 0 : index
    %161 = vector.load %arg5[%c0_55, %c0_56, %c0_57] : memref<1x8x8xf32, #tpu.memory_space<vmem>>, vector<1x8x8xf32>
    %162 = vector.shape_cast %161 : vector<1x8x8xf32> to vector<8x8xf32>
    %163 = vector.extract_strided_slice %150 {offsets = [0, 0], sizes = [8, 8], strides = [1, 1]} : vector<8x32xf32> to vector<8x8xf32>
    %164 = vector.extract_strided_slice %150 {offsets = [0, 8], sizes = [8, 8], strides = [1, 1]} : vector<8x32xf32> to vector<8x8xf32>
    %165 = vector.extract_strided_slice %150 {offsets = [0, 16], sizes = [8, 8], strides = [1, 1]} : vector<8x32xf32> to vector<8x8xf32>
    %166 = vector.extract_strided_slice %150 {offsets = [0, 24], sizes = [8, 8], strides = [1, 1]} : vector<8x32xf32> to vector<8x8xf32>
    %167 = vector.shape_cast %163 : vector<8x8xf32> to vector<1x8x8xf32>
    %168 = vector.shape_cast %164 : vector<8x8xf32> to vector<1x8x8xf32>
    %169 = vector.shape_cast %165 : vector<8x8xf32> to vector<1x8x8xf32>
    %170 = vector.shape_cast %166 : vector<8x8xf32> to vector<1x8x8xf32>
    %171 = tpu.concatenate %167, %168, %169, %170 in 0 : vector<1x8x8xf32>, vector<1x8x8xf32>, vector<1x8x8xf32>, vector<1x8x8xf32> -> vector<4x8x8xf32>
    %172 = arith.truncf %171 : vector<4x8x8xf32> to vector<4x8x8xbf16>
    %173 = vector.extract_strided_slice %159 {offsets = [0, 0], sizes = [8, 8], strides = [1, 1]} : vector<8x32xf32> to vector<8x8xf32>
    %174 = vector.extract_strided_slice %159 {offsets = [0, 8], sizes = [8, 8], strides = [1, 1]} : vector<8x32xf32> to vector<8x8xf32>
    %175 = vector.extract_strided_slice %159 {offsets = [0, 16], sizes = [8, 8], strides = [1, 1]} : vector<8x32xf32> to vector<8x8xf32>
    %176 = vector.extract_strided_slice %159 {offsets = [0, 24], sizes = [8, 8], strides = [1, 1]} : vector<8x32xf32> to vector<8x8xf32>
    %177 = vector.shape_cast %173 : vector<8x8xf32> to vector<1x8x8xf32>
    %178 = vector.shape_cast %174 : vector<8x8xf32> to vector<1x8x8xf32>
    %179 = vector.shape_cast %175 : vector<8x8xf32> to vector<1x8x8xf32>
    %180 = vector.shape_cast %176 : vector<8x8xf32> to vector<1x8x8xf32>
    %181 = tpu.concatenate %177, %178, %179, %180 in 0 : vector<1x8x8xf32>, vector<1x8x8xf32>, vector<1x8x8xf32>, vector<1x8x8xf32> -> vector<4x8x8xf32>
    %182 = arith.truncf %181 : vector<4x8x8xf32> to vector<4x8x8xbf16>
    %183 = vector.extract_strided_slice %160 {offsets = [0, 0], sizes = [8, 8], strides = [1, 1]} : vector<8x32xf32> to vector<8x8xf32>
    %184 = vector.extract_strided_slice %160 {offsets = [0, 8], sizes = [8, 8], strides = [1, 1]} : vector<8x32xf32> to vector<8x8xf32>
    %185 = vector.extract_strided_slice %160 {offsets = [0, 16], sizes = [8, 8], strides = [1, 1]} : vector<8x32xf32> to vector<8x8xf32>
    %186 = vector.extract_strided_slice %160 {offsets = [0, 24], sizes = [8, 8], strides = [1, 1]} : vector<8x32xf32> to vector<8x8xf32>
    %187 = vector.shape_cast %183 : vector<8x8xf32> to vector<1x8x8xf32>
    %188 = vector.shape_cast %184 : vector<8x8xf32> to vector<1x8x8xf32>
    %189 = vector.shape_cast %185 : vector<8x8xf32> to vector<1x8x8xf32>
    %190 = vector.shape_cast %186 : vector<8x8xf32> to vector<1x8x8xf32>
    %191 = tpu.concatenate %187, %188, %189, %190 in 0 : vector<1x8x8xf32>, vector<1x8x8xf32>, vector<1x8x8xf32>, vector<1x8x8xf32> -> vector<4x8x8xf32>
    %192 = arith.truncf %191 : vector<4x8x8xf32> to vector<4x8x8xbf16>
    "tpu.trace_start"() <{level = 10 : i32, message = "hqd,hkd->hqk"}> : () -> ()
    %cst_58 = arith.constant dense<0.000000e+00> : vector<4x8x8xf32>
    %193 = tpu.matmul %172, %182, %cst_58 {dimension_numbers = #tpu.dot_dimension_numbers<[2], [2], [1], [1], [0, 0, 0, 1, 1, 1], [0], [0]>} : vector<4x8x8xbf16>, vector<4x8x8xbf16>, vector<4x8x8xf32> -> vector<4x8x8xf32>
    "tpu.trace_stop"() : () -> ()
    %cst_59 = arith.constant 0.353553385 : f32
    %194 = vector.broadcast %cst_59 : f32 to vector<4x8x8xf32>
    %195 = arith.mulf %193, %194 : vector<4x8x8xf32>
    %196 = vector.shape_cast %162 : vector<8x8xf32> to vector<1x8x8xf32>
    %197 = vector.broadcast %196 : vector<1x8x8xf32> to vector<4x8x8xf32>
    %198 = arith.addf %195, %197 : vector<4x8x8xf32>
    %cst_60 = arith.constant dense<0xFF800000> : vector<4x8xf32>
    %199 = vector.multi_reduction <maximumf>, %198, %cst_60 [2] : vector<4x8x8xf32> to vector<4x8xf32>
    %200 = vector.shape_cast %199 : vector<4x8xf32> to vector<4x8x1xf32>
    %201 = vector.broadcast %200 : vector<4x8x1xf32> to vector<4x8x8xf32>
    %202 = arith.subf %198, %201 : vector<4x8x8xf32>
    %203 = math.exp %202 : vector<4x8x8xf32>
    %cst_61 = arith.constant dense<0.000000e+00> : vector<4x8xf32>
    %204 = vector.multi_reduction <add>, %203, %cst_61 [2] : vector<4x8x8xf32> to vector<4x8xf32>
    %205 = vector.shape_cast %204 : vector<4x8xf32> to vector<4x8x1xf32>
    %206 = tpu.reciprocal %205 : vector<4x8x1xf32> -> vector<4x8x1xf32>
    %207 = vector.broadcast %206 : vector<4x8x1xf32> to vector<4x8x8xf32>
    %208 = arith.mulf %203, %207 : vector<4x8x8xf32>
    %209 = arith.truncf %208 : vector<4x8x8xf32> to vector<4x8x8xbf16>
    "tpu.trace_start"() <{level = 10 : i32, message = "hqk,hkd->hqd"}> : () -> ()
    %cst_62 = arith.constant dense<0.000000e+00> : vector<4x8x8xf32>
    %210 = tpu.matmul %209, %192, %cst_62 {dimension_numbers = #tpu.dot_dimension_numbers<[2], [1], [1], [2], [0, 0, 0, 1, 1, 2], [0], [0]>} : vector<4x8x8xbf16>, vector<4x8x8xbf16>, vector<4x8x8xf32> -> vector<4x8x8xf32>
    "tpu.trace_stop"() : () -> ()
    %211 = vector.extract_strided_slice %210 {offsets = [0, 0, 0], sizes = [1, 8, 8], strides = [1, 1, 1]} : vector<4x8x8xf32> to vector<1x8x8xf32>
    %212 = vector.shape_cast %211 : vector<1x8x8xf32> to vector<8x8xf32>
    %213 = vector.extract_strided_slice %210 {offsets = [1, 0, 0], sizes = [1, 8, 8], strides = [1, 1, 1]} : vector<4x8x8xf32> to vector<1x8x8xf32>
    %214 = vector.shape_cast %213 : vector<1x8x8xf32> to vector<8x8xf32>
    %215 = vector.extract_strided_slice %210 {offsets = [2, 0, 0], sizes = [1, 8, 8], strides = [1, 1, 1]} : vector<4x8x8xf32> to vector<1x8x8xf32>
    %216 = vector.shape_cast %215 : vector<1x8x8xf32> to vector<8x8xf32>
    %217 = vector.extract_strided_slice %210 {offsets = [3, 0, 0], sizes = [1, 8, 8], strides = [1, 1, 1]} : vector<4x8x8xf32> to vector<1x8x8xf32>
    %218 = vector.shape_cast %217 : vector<1x8x8xf32> to vector<8x8xf32>
    %219 = tpu.concatenate %212, %214, %216, %218 in 1 : vector<8x8xf32>, vector<8x8xf32>, vector<8x8xf32>, vector<8x8xf32> -> vector<8x32xf32>
    %220 = arith.truncf %219 : vector<8x32xf32> to vector<8x32xbf16>
    %c0_63 = arith.constant 0 : index
    %c0_64 = arith.constant 0 : index
    %c0_65 = arith.constant 0 : index
    %221 = vector.load %arg16[%c0_63, %c0_64, %c0_65] : memref<1x32x128xbf16, #tpu.memory_space<vmem>>, vector<1x32x128xbf16>
    %222 = vector.shape_cast %221 : vector<1x32x128xbf16> to vector<32x128xbf16>
    %cst_66 = arith.constant dense<0.000000e+00> : vector<8x128xf32>
    %223 = tpu.matmul %220, %222, %cst_66 {dimension_numbers = #tpu.dot_dimension_numbers<[1], [0], [0], [1], [0, 0, 1, 1], [], []>} : vector<8x32xbf16>, vector<32x128xbf16>, vector<8x128xf32> -> vector<8x128xf32>
    %224 = arith.addf %117, %223 : vector<8x128xf32>
    %c0_67 = arith.constant 0 : index
    %c0_68 = arith.constant 0 : index
    %c0_69 = arith.constant 0 : index
    %225 = vector.load %arg17[%c0_67, %c0_68, %c0_69] : memref<1x1x128xf32, #tpu.memory_space<vmem>>, vector<1x1x128xf32>
    %226 = vector.shape_cast %225 : vector<1x1x128xf32> to vector<1x128xf32>
    %227 = vector.broadcast %226 : vector<1x128xf32> to vector<8x128xf32>
    %228 = arith.addf %224, %227 : vector<8x128xf32>
    %229 = vector.extract_strided_slice %6 {offsets = [2, 0], sizes = [1, 128], strides = [1, 1]} : vector<3x128xf32> to vector<1x128xf32>
    %230 = vector.extract_strided_slice %8 {offsets = [2, 0], sizes = [1, 128], strides = [1, 1]} : vector<3x128xf32> to vector<1x128xf32>
    %cst_70 = arith.constant dense<0.000000e+00> : vector<8xf32>
    %231 = vector.multi_reduction <add>, %228, %cst_70 [1] : vector<8x128xf32> to vector<8xf32>
    %232 = vector.shape_cast %231 : vector<8xf32> to vector<8x1xf32>
    %cst_71 = arith.constant 3.125000e-02 : f32
    %233 = vector.broadcast %cst_71 : f32 to vector<8x1xf32>
    %234 = arith.mulf %232, %233 : vector<8x1xf32>
    %235 = vector.broadcast %234 : vector<8x1xf32> to vector<8x128xf32>
    %236 = arith.subf %228, %235 : vector<8x128xf32>
    %237 = arith.mulf %236, %236 : vector<8x128xf32>
    %238 = vector.broadcast %13 : vector<1x128xf32> to vector<8x128xf32>
    %239 = arith.mulf %237, %238 : vector<8x128xf32>
    %cst_72 = arith.constant dense<0.000000e+00> : vector<8xf32>
    %240 = vector.multi_reduction <add>, %239, %cst_72 [1] : vector<8x128xf32> to vector<8xf32>
    %241 = vector.shape_cast %240 : vector<8xf32> to vector<8x1xf32>
    %cst_73 = arith.constant 0.0322580636 : f32
    %242 = vector.broadcast %cst_73 : f32 to vector<8x1xf32>
    %243 = arith.mulf %241, %242 : vector<8x1xf32>
    %244 = math.sqrt %243 : vector<8x1xf32>
    %cst_74 = arith.constant 9.99999997E-7 : f32
    %245 = vector.broadcast %cst_74 : f32 to vector<8x1xf32>
    %246 = arith.addf %244, %245 : vector<8x1xf32>
    %247 = tpu.reciprocal %246 : vector<8x1xf32> -> vector<8x1xf32>
    %248 = vector.broadcast %229 : vector<1x128xf32> to vector<8x128xf32>
    %249 = arith.mulf %248, %236 : vector<8x128xf32>
    %250 = vector.broadcast %247 : vector<8x1xf32> to vector<8x128xf32>
    %251 = arith.mulf %249, %250 : vector<8x128xf32>
    %252 = vector.broadcast %230 : vector<1x128xf32> to vector<8x128xf32>
    %253 = arith.addf %251, %252 : vector<8x128xf32>
    %254 = arith.truncf %253 : vector<8x128xf32> to vector<8x128xbf16>
    %c0_75 = arith.constant 0 : index
    %c0_76 = arith.constant 0 : index
    %c0_77 = arith.constant 0 : index
    %255 = vector.load %arg18[%c0_75, %c0_76, %c0_77] : memref<1x128x2048xbf16, #tpu.memory_space<vmem>>, vector<1x128x2048xbf16>
    %256 = vector.shape_cast %255 : vector<1x128x2048xbf16> to vector<128x2048xbf16>
    %cst_78 = arith.constant dense<0.000000e+00> : vector<8x2048xf32>
    %257 = tpu.matmul %254, %256, %cst_78 {dimension_numbers = #tpu.dot_dimension_numbers<[1], [0], [0], [1], [0, 0, 1, 1], [], []>} : vector<8x128xbf16>, vector<128x2048xbf16>, vector<8x2048xf32> -> vector<8x2048xf32>
    %c0_79 = arith.constant 0 : index
    %c0_80 = arith.constant 0 : index
    %c0_81 = arith.constant 0 : index
    %258 = vector.load %arg19[%c0_79, %c0_80, %c0_81] : memref<1x1x2048xf32, #tpu.memory_space<vmem>>, vector<1x1x2048xf32>
    %259 = vector.shape_cast %258 : vector<1x1x2048xf32> to vector<1x2048xf32>
    %260 = vector.broadcast %259 : vector<1x2048xf32> to vector<8x2048xf32>
    %261 = arith.addf %257, %260 : vector<8x2048xf32>
    %cst_82 = arith.constant 0.000000e+00 : f32
    %262 = vector.broadcast %cst_82 : f32 to vector<8x2048xf32>
    %263 = arith.maximumf %261, %262 : vector<8x2048xf32>
    %264 = arith.truncf %263 : vector<8x2048xf32> to vector<8x2048xbf16>
    %c0_83 = arith.constant 0 : index
    %c0_84 = arith.constant 0 : index
    %c0_85 = arith.constant 0 : index
    %265 = vector.load %arg20[%c0_83, %c0_84, %c0_85] : memref<1x2048x128xbf16, #tpu.memory_space<vmem>>, vector<1x2048x128xbf16>
    %266 = vector.shape_cast %265 : vector<1x2048x128xbf16> to vector<2048x128xbf16>
    %cst_86 = arith.constant dense<0.000000e+00> : vector<8x128xf32>
    %267 = tpu.matmul %264, %266, %cst_86 {dimension_numbers = #tpu.dot_dimension_numbers<[1], [0], [0], [1], [0, 0, 1, 1], [], []>} : vector<8x2048xbf16>, vector<2048x128xbf16>, vector<8x128xf32> -> vector<8x128xf32>
    %268 = arith.addf %228, %267 : vector<8x128xf32>
    %c0_87 = arith.constant 0 : index
    %c0_88 = arith.constant 0 : index
    %c0_89 = arith.constant 0 : index
    %269 = vector.load %arg21[%c0_87, %c0_88, %c0_89] : memref<1x1x128xf32, #tpu.memory_space<vmem>>, vector<1x1x128xf32>
    %270 = vector.shape_cast %269 : vector<1x1x128xf32> to vector<1x128xf32>
    %271 = vector.broadcast %270 : vector<1x128xf32> to vector<8x128xf32>
    %272 = arith.addf %268, %271 : vector<8x128xf32>
    %c1_i32 = arith.constant 1 : i32
    %273 = arith.cmpi ne, %arg1, %c1_i32 : i32
    %274 = arith.extui %273 : i1 to i32
    %c0_i32_90 = arith.constant 0 : i32
    %275 = arith.cmpi ne, %274, %c0_i32_90 : i32
    scf.if %275 {
      %c0_93 = arith.constant 0 : index
      %c0_94 = arith.constant 0 : index
      %279 = vector.load %arg24[%c0_93, %c0_94] : memref<8x128xf32, #tpu.memory_space<vmem>>, vector<8x128xf32>
      tpu.vector_store %arg24[%c0_93, %c0_94], %272 {strides = array<i32>} : memref<8x128xf32, #tpu.memory_space<vmem>>, vector<8x128xf32>,
    } else {
    }
    %c1_i32_91 = arith.constant 1 : i32
    %276 = arith.cmpi eq, %arg1, %c1_i32_91 : i32
    %277 = arith.extui %276 : i1 to i32
    %c0_i32_92 = arith.constant 0 : i32
    %278 = arith.cmpi ne, %277, %c0_i32_92 : i32
    scf.if %278 {
      %c0_93 = arith.constant 0 : index
      %c0_94 = arith.constant 0 : index
      %279 = vector.load %arg22[%c0_93, %c0_94] : memref<1x128xf32, #tpu.memory_space<vmem>>, vector<1x128xf32>
      %c0_95 = arith.constant 0 : index
      %c0_96 = arith.constant 0 : index
      %280 = vector.load %arg23[%c0_95, %c0_96] : memref<1x128xf32, #tpu.memory_space<vmem>>, vector<1x128xf32>
      %cst_97 = arith.constant dense<0.000000e+00> : vector<8xf32>
      %281 = vector.multi_reduction <add>, %272, %cst_97 [1] : vector<8x128xf32> to vector<8xf32>
      %282 = vector.shape_cast %281 : vector<8xf32> to vector<8x1xf32>
      %cst_98 = arith.constant 3.125000e-02 : f32
      %283 = vector.broadcast %cst_98 : f32 to vector<8x1xf32>
      %284 = arith.mulf %282, %283 : vector<8x1xf32>
      %285 = vector.broadcast %284 : vector<8x1xf32> to vector<8x128xf32>
      %286 = arith.subf %272, %285 : vector<8x128xf32>
      %287 = arith.mulf %286, %286 : vector<8x128xf32>
      %288 = vector.broadcast %13 : vector<1x128xf32> to vector<8x128xf32>
      %289 = arith.mulf %287, %288 : vector<8x128xf32>
      %cst_99 = arith.constant dense<0.000000e+00> : vector<8xf32>
      %290 = vector.multi_reduction <add>, %289, %cst_99 [1] : vector<8x128xf32> to vector<8xf32>
      %291 = vector.shape_cast %290 : vector<8xf32> to vector<8x1xf32>
      %cst_100 = arith.constant 0.0322580636 : f32
      %292 = vector.broadcast %cst_100 : f32 to vector<8x1xf32>
      %293 = arith.mulf %291, %292 : vector<8x1xf32>
      %294 = math.sqrt %293 : vector<8x1xf32>
      %cst_101 = arith.constant 9.99999997E-7 : f32
      %295 = vector.broadcast %cst_101 : f32 to vector<8x1xf32>
      %296 = arith.addf %294, %295 : vector<8x1xf32>
      %297 = tpu.reciprocal %296 : vector<8x1xf32> -> vector<8x1xf32>
      %298 = vector.broadcast %279 : vector<1x128xf32> to vector<8x128xf32>
      %299 = arith.mulf %298, %286 : vector<8x128xf32>
      %300 = vector.broadcast %297 : vector<8x1xf32> to vector<8x128xf32>
      %301 = arith.mulf %299, %300 : vector<8x128xf32>
      %302 = vector.broadcast %280 : vector<1x128xf32> to vector<8x128xf32>
      %303 = arith.addf %301, %302 : vector<8x128xf32>
      %c0_102 = arith.constant 0 : index
      %c0_103 = arith.constant 0 : index
      %304 = vector.load %arg24[%c0_102, %c0_103] : memref<8x128xf32, #tpu.memory_space<vmem>>, vector<8x128xf32>
      tpu.vector_store %arg24[%c0_102, %c0_103], %303 {strides = array<i32>} : memref<8x128xf32, #tpu.memory_space<vmem>>, vector<8x128xf32>,
    } else {
    }
    return
  }
  func.func @transform_0(%arg0: i32, %arg1: i32) -> (i32, i32) {
    %c0_i32 = arith.constant 0 : i32
    %c0_i32_0 = arith.constant 0 : i32
    return %arg0, %c0_i32 : i32, i32
  }
  func.func @transform_1(%arg0: i32, %arg1: i32) -> (i32, i32) {
    %c0_i32 = arith.constant 0 : i32
    %c0_i32_0 = arith.constant 0 : i32
    return %arg0, %c0_i32 : i32, i32
  }
  func.func @transform_2(%arg0: i32, %arg1: i32) -> (i32, i32, i32) {
    %c0_i32 = arith.constant 0 : i32
    %c0_i32_0 = arith.constant 0 : i32
    %c0_i32_1 = arith.constant 0 : i32
    return %arg0, %c0_i32, %c0_i32_0 : i32, i32, i32
  }
  func.func @transform_3(%arg0: i32, %arg1: i32) -> (i32, i32, i32) {
    %c0_i32 = arith.constant 0 : i32
    %c0_i32_0 = arith.constant 0 : i32
    %c0_i32_1 = arith.constant 0 : i32
    return %arg0, %c0_i32, %c0_i32_0 : i32, i32, i32
  }
  func.func @transform_4(%arg0: i32, %arg1: i32) -> (i32, i32, i32) {
    %c0_i32 = arith.constant 0 : i32
    %c0_i32_0 = arith.constant 0 : i32
    %c0_i32_1 = arith.constant 0 : i32
    return %arg1, %c0_i32, %c0_i32_0 : i32, i32, i32
  }
  func.func @transform_5(%arg0: i32, %arg1: i32) -> (i32, i32, i32) {
    %c0_i32 = arith.constant 0 : i32
    %c0_i32_0 = arith.constant 0 : i32
    %c0_i32_1 = arith.constant 0 : i32
    return %arg1, %c0_i32, %c0_i32_0 : i32, i32, i32
  }
  func.func @transform_6(%arg0: i32, %arg1: i32) -> (i32, i32, i32) {
    %c0_i32 = arith.constant 0 : i32
    %c0_i32_0 = arith.constant 0 : i32
    %c0_i32_1 = arith.constant 0 : i32
    return %arg1, %c0_i32, %c0_i32_0 : i32, i32, i32
  }
  func.func @transform_7(%arg0: i32, %arg1: i32) -> (i32, i32, i32) {
    %c0_i32 = arith.constant 0 : i32
    %c0_i32_0 = arith.constant 0 : i32
    %c0_i32_1 = arith.constant 0 : i32
    return %arg1, %c0_i32, %c0_i32_0 : i32, i32, i32
  }
  func.func @transform_8(%arg0: i32, %arg1: i32) -> (i32, i32, i32) {
    %c0_i32 = arith.constant 0 : i32
    %c0_i32_0 = arith.constant 0 : i32
    %c0_i32_1 = arith.constant 0 : i32
    return %arg1, %c0_i32, %c0_i32_0 : i32, i32, i32
  }
  func.func @transform_9(%arg0: i32, %arg1: i32) -> (i32, i32, i32) {
    %c0_i32 = arith.constant 0 : i32
    %c0_i32_0 = arith.constant 0 : i32
    %c0_i32_1 = arith.constant 0 : i32
    return %arg1, %c0_i32, %c0_i32_0 : i32, i32, i32
  }
  func.func @transform_10(%arg0: i32, %arg1: i32) -> (i32, i32, i32) {
    %c0_i32 = arith.constant 0 : i32
    %c0_i32_0 = arith.constant 0 : i32
    %c0_i32_1 = arith.constant 0 : i32
    return %arg1, %c0_i32, %c0_i32_0 : i32, i32, i32
  }
  func.func @transform_11(%arg0: i32, %arg1: i32) -> (i32, i32, i32) {
    %c0_i32 = arith.constant 0 : i32
    %c0_i32_0 = arith.constant 0 : i32
    %c0_i32_1 = arith.constant 0 : i32
    return %arg1, %c0_i32, %c0_i32_0 : i32, i32, i32
  }
  func.func @transform_12(%arg0: i32, %arg1: i32) -> (i32, i32, i32) {
    %c0_i32 = arith.constant 0 : i32
    %c0_i32_0 = arith.constant 0 : i32
    %c0_i32_1 = arith.constant 0 : i32
    return %arg1, %c0_i32, %c0_i32_0 : i32, i32, i32
  }
  func.func @transform_13(%arg0: i32, %arg1: i32) -> (i32, i32, i32) {
    %c0_i32 = arith.constant 0 : i32
    %c0_i32_0 = arith.constant 0 : i32
    %c0_i32_1 = arith.constant 0 : i32
    return %arg1, %c0_i32, %c0_i32_0 : i32, i32, i32
  }
  func.func @transform_14(%arg0: i32, %arg1: i32) -> (i32, i32, i32) {
    %c0_i32 = arith.constant 0 : i32
    %c0_i32_0 = arith.constant 0 : i32
    %c0_i32_1 = arith.constant 0 : i32
    return %arg1, %c0_i32, %c0_i32_0 : i32, i32, i32
  }
  func.func @transform_15(%arg0: i32, %arg1: i32) -> (i32, i32, i32) {
    %c0_i32 = arith.constant 0 : i32
    %c0_i32_0 = arith.constant 0 : i32
    %c0_i32_1 = arith.constant 0 : i32
    return %arg1, %c0_i32, %c0_i32_0 : i32, i32, i32
  }
  func.func @transform_16(%arg0: i32, %arg1: i32) -> (i32, i32, i32) {
    %c0_i32 = arith.constant 0 : i32
    %c0_i32_0 = arith.constant 0 : i32
    %c0_i32_1 = arith.constant 0 : i32
    return %arg1, %c0_i32, %c0_i32_0 : i32, i32, i32
  }
  func.func @transform_17(%arg0: i32, %arg1: i32) -> (i32, i32, i32) {
    %c0_i32 = arith.constant 0 : i32
    %c0_i32_0 = arith.constant 0 : i32
    %c0_i32_1 = arith.constant 0 : i32
    return %arg1, %c0_i32, %c0_i32_0 : i32, i32, i32
  }
  func.func @transform_18(%arg0: i32, %arg1: i32) -> (i32, i32, i32) {
    %c0_i32 = arith.constant 0 : i32
    %c0_i32_0 = arith.constant 0 : i32
    %c0_i32_1 = arith.constant 0 : i32
    return %arg1, %c0_i32, %c0_i32_0 : i32, i32, i32
  }
  func.func @transform_19(%arg0: i32, %arg1: i32) -> (i32, i32, i32) {
    %c0_i32 = arith.constant 0 : i32
    %c0_i32_0 = arith.constant 0 : i32
    %c0_i32_1 = arith.constant 0 : i32
    return %arg1, %c0_i32, %c0_i32_0 : i32, i32, i32
  }
  func.func @transform_20(%arg0: i32, %arg1: i32) -> (i32, i32) {
    %c0_i32 = arith.constant 0 : i32
    %c0_i32_0 = arith.constant 0 : i32
    %c0_i32_1 = arith.constant 0 : i32
    return %c0_i32, %c0_i32_0 : i32, i32
  }
  func.func @transform_21(%arg0: i32, %arg1: i32) -> (i32, i32) {
    %c0_i32 = arith.constant 0 : i32
    %c0_i32_0 = arith.constant 0 : i32
    %c0_i32_1 = arith.constant 0 : i32
    return %c0_i32, %c0_i32_0 : i32, i32
  }
  func.func @transform_22(%arg0: i32, %arg1: i32) -> (i32, i32) {
    %c0_i32 = arith.constant 0 : i32
    %c0_i32_0 = arith.constant 0 : i32
    return %arg0, %c0_i32 : i32, i32
  }
}

</mosaic_0001>

<bundles_post_ra>
// kernel: decoder_forward.1
= control target key start
LH: loop header
LB: loop body
LE: loop exit
PB: predicated region body
PF: predicated region fallthrough
CT: control target
= control target key end

     0   :  { %s7800_s0 = inlined_call_operand.vmem [shape: f32[16,128], index: 0, kind: input, shape index: {}]   ;;  %s7801_s1 = inlined_call_operand.vmem [shape: f32[16,128], index: 1, kind: input, shape index: {}]   ;;  %s7802_s2 = inlined_call_operand.vmem [shape: f32[2,8,8], index: 2, kind: input, shape index: {}]   ;;  %s7803_s3 = inlined_call_operand.vmem [shape: f32[2,8,8], index: 3, kind: input, shape index: {}]   ;;  %s7804_s4 = inlined_call_operand.vmem [shape: f32[2,3,128], index: 4, kind: input, shape index: {}]   ;;  %s7805_s5 = inlined_call_operand.vmem [shape: f32[2,3,128], index: 5, kind: input, shape index: {}]   ;;  %s7806_s6 = inlined_call_operand.vmem [shape: bf16[2,128,96], index: 6, kind: input, shape index: {}]   ;;  %s7807_s7 = inlined_call_operand.vmem [shape: f32[2,1,96], index: 7, kind: input, shape index: {}]   ;;  %s7808_s8 = inlined_call_operand.vmem [shape: bf16[2,32,128], index: 8, kind: input, shape index: {}]   ;;  %s7809_s9 = inlined_call_operand.vmem [shape: f32[2,1,128], index: 9, kind: input, shape index: {}]   ;;  %s7810_s10 = inlined_call_operand.vmem [shape: bf16[2,128,32], index: 10, kind: input, shape index: {}]   ;;  %s7811_s11 = inlined_call_operand.vmem [shape: f32[2,1,32], index: 11, kind: input, shape index: {}]   ;;  %s7812_s12 = inlined_call_operand.vmem [shape: bf16[2,128,64], index: 12, kind: input, shape index: {}]   ;;  %s7813_s13 = inlined_call_operand.vmem [shape: f32[2,1,64], index: 13, kind: input, shape index: {}]   ;;  %s7814_s14 = inlined_call_operand.vmem [shape: bf16[2,32,128], index: 14, kind: input, shape index: {}]   ;;  %s7815_s15 = inlined_call_operand.vmem [shape: f32[2,1,128], index: 15, kind: input, shape index: {}]   ;;  %s7816_s16 = inlined_call_operand.hbm [shape: bf16[2,128,2048], index: 16, kind: input, shape index: {}]   ;;  %s7817_s17 = inlined_call_operand.vmem [shape: f32[2,1,2048], index: 17, kind: input, shape index: {}]   ;;  %s7818_s18 = inlined_call_operand.hbm [shape: bf16[2,2048,128], index: 18, kind: input, shape index: {}]   ;;  %s7819_s19 = inlined_call_operand.vmem [shape: f32[2,1,128], index: 19, kind: input, shape index: {}]   ;;  %s7820_s20 = inlined_call_operand.vmem [shape: f32[1,128], index: 20, kind: input, shape index: {}]   ;;  %s7821_s21 = inlined_call_operand.vmem [shape: f32[1,128], index: 21, kind: input, shape index: {}]   ;;  %s7822_s22 = inlined_call_operand.vmem [shape: f32[16,128], index: 22, kind: output, shape index: {}]  }
   0x1   :  { %7836 = sst [smem:[#allocation20_spill]] %s7800_s0 }
   0x2   :  { %7837 = sst [smem:[#allocation21_spill]] %s7801_s1 }
   0x3   :  { %7838 = sst [smem:[#allocation22_spill]] %s7802_s2 }
   0x4   :  { %7839 = sst [smem:[#allocation23_spill]] %s7803_s3 }
   0x5   :  { %7840 = sst [smem:[#allocation24_spill]] %s7804_s4 }
   0x6   :  { %7841 = sst [smem:[#allocation25_spill]] %s7805_s5 }
   0x7   :  { %7842 = sst [smem:[#allocation26_spill]] %s7806_s6 }
   0x8   :  { %7843 = sst [smem:[#allocation27_spill]] %s7808_s8 }
   0x9   :  { %7844 = sst [smem:[#allocation28_spill]] %s7810_s10 }
   0xa   :  { %7845 = sst [smem:[#allocation29_spill]] %s7811_s11 }
   0xb   :  { %7846 = sst [smem:[#allocation30_spill]] %s7812_s12 }
   0xc   :  { %7847 = sst [smem:[#allocation31_spill]] %s7813_s13 }
   0xd   :  { %7848 = sst [smem:[#allocation32_spill]] %s7816_s16 }
   0xe   :  { %7849 = sst [smem:[#allocation33_spill]] %s7817_s17 }
   0xf   :  { %7850 = sst [smem:[#allocation34_spill]] %s7818_s18 }
  0x10   :  { %7851 = sst [smem:[#allocation35_spill]] %s7819_s19 }
  0x11   :  { %7852 = sst [smem:[#allocation36_spill]] %s7820_s20 }
  0x12   :  { %7853 = sst [smem:[#allocation37_spill]] %s7821_s21 }
  0x13   :  { %7854 = sst [smem:[#allocation38_spill]] %s7822_s22 }
  0x14   :  { %27 = vsyncpa [#allocation3], 0 }
  0x15   :  { %29 = vsyncpa [#allocation3 + $0x1], 0 }
  0x16   :  { %30 = vsyncpa [#allocation5], 0 }
  0x17   :  { %32 = vsyncpa [#allocation5 + $0x1], 0  ;;  %s6828_s3 = smov 0   ;;  %s6830_s28 = smov 0  }
  0x18   :  { %s6832_s29 = smov 0   ;;  %s6834_s30 = smov 0  }
  0x19   :  { %s6836_s4 = smov 0   ;;  %s6838_s0 = smov 0  }
  0x1a   :  { %s6840_s23 = smov 0   ;;  %s6842_s1 = smov 0  }
  0x1b LB: > { %7855 = sst [smem:[#allocation8_spill]] %s6671_s28  ;;  %s5501_s5 = sadd.s32 4294967295, %s6695_s1   ;;  %s6695_s1 = sphi %s6842_s1, %s38_s1   ;;  %s6691_s23 = sphi %s6840_s23, %s7920_s23   ;;  %s6687_s0 = sphi %s6838_s0, %s7919_s0   ;;  %s6683_s4 = sphi %s6836_s4, %s7918_s4   ;;  %s6679_s30 = sphi %s6834_s30, %s7917_s30   ;;  %s6675_s29 = sphi %s6832_s29, %s7916_s29   ;;  %s6671_s28 = sphi %s6830_s28, %s7915_s28   ;;  %s6667_s3 = sphi %s6828_s3, %s7914_s3  }
  0x1c   : > { %7856 = sst [smem:[#allocation9_spill]] %s6675_s29  ;;  %s47_s24 = sadd.s32 1, %s6687_s0 }
  0x1d   : > { %7857 = sst [smem:[#allocation10_spill]] %s6679_s30  ;;  %p48_p0 = scmp.ge.s32.totalorder %s47_s24, 2 }
  0x1e   : > { %7858 = sst [smem:[#allocation11_spill]] %s6687_s0  ;;  %s50_s6 = sadd.s32 1, %s6691_s23 }
  0x1f   : > { %7859 = sst [smem:[#allocation12_spill]] %s6691_s23  ;;  %s473_s25 = sadd.s32 1, %s6675_s29 }
  0x20   : > { %7860 = sst [smem:[#allocation13_spill]] %s6695_s1  ;;  %p480_p1 = scmp.ne.s32.totalorder %s6675_s29, %s6671_s28 }
  0x21   : > { %s7922_s24 = smov (%p48_p0, %s47_s24), 0  ;;  %s7924_s6 = smov (!%p48_p0, %s50_s6), %s6691_s23 }
  0x22   : > { %7861 = sst [smem:[#allocation14_spill]] %s7922_s24  ;;  %s470_s26 = ssub.s32 %s6687_s0, %s7922_s24 }
  0x23   : > { %p481_p2 = scmp.eq.s32.totalorder %s6695_s1, 0  ;;  %p52_p3 = scmp.ge.s32.totalorder %s7924_s6, 2 }
  0x24   : > { %p471_p4 = scmp.eq.s32.totalorder %s470_s26, 0  ;;  %p486_p6 = scmp.ne.s32.totalorder %s6671_s28, %s6667_s3 }
  0x25   : > { %p6878_p5 = por %p481_p2, %p480_p1  ;;  %s7926_s6 = smov (%p52_p3, %s7924_s6), 0 }
  0x26   : > { %7863 = sst [smem:[#allocation15_spill]] %s7926_s6  ;;  %p487_p7 = scmp.eq.s32.totalorder %s5501_s5, 0 }
  0x27   : > { %s6886_s27 = scalar_select %p471_p4, %s6675_s29, %s473_s25  }
  0x28   : > { %p6279_p8 = scmp.lt.s32.totalorder %s6695_s1, 4  ;;  %s6890_s21 = sand.u32 1, %s6675_s29  }
  0x29   : > { %7864 = sst [smem:[#allocation16_spill]] %s6886_s27  ;;  %p6892_p9 = por %p487_p7, %p486_p6 }
  0x2a   : > { %s7826_s26 = sshll.u32 %s6890_s21, 10  ;;  %s7827_s23 = sshll.u32 %s6687_s0, 14 }
  0x2b   : > { %s7865_s24 = scalar_select %p6892_p9, 1, 0 }
  0x2c   : > { %s7866_s16 = sld [smem:[#allocation32_spill]]  ;;  %s778_s5 = scalar_lea.vmem [#allocation2], %s7826_s26 }
  0x2d   : > { %s785_s25 = sshll.u32 %s778_s5, 4  ;;  %p6909_p10 = pnand %p6279_p8, %p6878_p5  ;;  %s6913_s25 = int_to_ptr.vmem [resolvable:$true] %s785_s25 }
  0x2f   : > { %p6567_p12 = pneg %p6909_p10 }
  0x32   : > { %s6903_s6 = scalar_lea.hbm %s7866_s16, %s7827_s23  ;;  %s6570_s2 = scalar_lea.hbm %s7866_s16, 32768 }
  0x33   : > { %s6565_s20 = scalar_lea.hbm %s6903_s6, 16384  ;;  %p6571_p1 = scmp.lt.u32.totalorder %s6903_s6, %s7866_s16 }
  0x34   : > { %p6566_p11 = scmp.ne.s32.totalorder %s6903_s6, %s6565_s20  ;;  %p6572_p2 = scmp.lt.u32.totalorder %s6570_s2, %s6565_s20 }
  0x35   : > { %p6574_p4 = scmp.lt.u32.totalorder %s6565_s20, %s6903_s6 }
  0x36   : > { %p6568_p13 = pnand %p6567_p12, %p6566_p11  ;;  %p6573_p3 = por %p6572_p2, %p6571_p1 }
  0x38   : > { %p6569_p0 = pneg %p6568_p13  ;;  %p6575_p5 = por %p6574_p4, %p6573_p3 }
  0x3a   : > { %p6576_p6 = pnand %p6575_p5, %p6569_p0 }
  0x3c   : > { %6579 = shalt.err (!%p6576_p6)
}
  0x3d   : > { %s6580_s29 = scalar_lea.vmem %s6913_s25, 16384  ;;  %s6697_s3 = smov [#allocation2]  }
  0x3e   : > { %p6581_p7 = scmp.ne.s32.totalorder %s6913_s25, %s6580_s29  ;;  %s6585_s5 = sshll.u32 %s6697_s3, 4  ;;  %s6586_s5 = int_to_ptr.vmem [resolvable:$false] %s6585_s5 }
  0x3f   : > { %s6587_s23 = scalar_lea.vmem %s6586_s5, 32768  ;;  %p6588_p13 = scmp.lt.s32.totalorder %s6913_s25, %s6586_s5 }
  0x40   : > { %p6583_p8 = pnand %p6581_p7, %p6567_p12  ;;  %p6589_p1 = scmp.lt.s32.totalorder %s6587_s23, %s6580_s29 }
  0x42   : > { %p6584_p11 = pneg %p6583_p8  ;;  %p6590_p2 = por %p6589_p1, %p6588_p13 }
  0x44   : > { %p6591_p3 = pnand %p6590_p2, %p6584_p11 }
  0x46   : > { %6594 = shalt.err (!%p6591_p3)
}
  0x47   : > { %s6698_s26 = smov 1024   ;;  %s6699_s20 = smov 64  }
  0x48   : > { %s7868_s2 = scalar_lea.sflag [#allocation3], %s6890_s21  ;;  %p5511_p0 = scmp.ge.s32.totalorder %s6695_s1, 1 }
  0x49   : > { %6275 = dma.hbm_to_vmem [thread:$0]  (!%p6909_p10), %s6903_s6, 16384, %s6913_s25, %s7868_s2, %s6698_s26, %s6698_s26, %s6699_s20  }
  0x4a   : > { %p827_p4 = scmp.lt.s32.totalorder %s6695_s1, 5  ;;  %s7870_s3 = sshll.u32 %s6687_s0, 14 }
  0x4b   : > { %s7871_s18 = sld [smem:[#allocation34_spill]]  ;;  %s7872_s22 = sshll.u32 %s6890_s21, 10 }
  0x4c   : > { %p6946_p5 = pnand %p5511_p0, %p827_p4  ;;  %s806_s19 = scalar_lea.vmem [#allocation4], %s7872_s22 }
  0x4d   : > { %s813_s17 = sshll.u32 %s806_s19, 4  ;;  %s803_s6 = scalar_lea.sflag [#allocation5], %s6890_s21  ;;  %s6959_s17 = int_to_ptr.vmem [resolvable:$true] %s813_s17 }
  0x51   : > { %s6955_s16 = scalar_lea.hbm %s7871_s18, %s7870_s3  ;;  %s6600_s3 = scalar_lea.hbm %s7871_s18, 32768 }
  0x52   : > { %s6595_s25 = scalar_lea.hbm %s6955_s16, 16384  ;;  %p6601_p11 = scmp.lt.u32.totalorder %s6955_s16, %s7871_s18 }
  0x53   : > { %p6596_p6 = scmp.ne.s32.totalorder %s6955_s16, %s6595_s25  ;;  %p6602_p13 = scmp.lt.u32.totalorder %s6600_s3, %s6595_s25 }
  0x54   : > { %p6604_p2 = scmp.lt.u32.totalorder %s6595_s25, %s6955_s16 }
  0x55   : > { %p6598_p7 = pnand %p6596_p6, %p6567_p12  ;;  %p6603_p1 = por %p6602_p13, %p6601_p11 }
  0x57   : > { %p6599_p8 = pneg %p6598_p7  ;;  %p6605_p3 = por %p6604_p2, %p6603_p1 }
  0x59   : > { %p6606_p0 = pnand %p6605_p3, %p6599_p8 }
  0x5b   : > { %6609 = shalt.err (!%p6606_p0)
}
  0x5c   : > { %s6610_s19 = scalar_lea.vmem %s6959_s17, 16384  ;;  %s6700_s22 = smov [#allocation4]  }
  0x5d   : > { %p6611_p4 = scmp.ne.s32.totalorder %s6959_s17, %s6610_s19  ;;  %s6615_s26 = sshll.u32 %s6700_s22, 4  ;;  %s6616_s26 = int_to_ptr.vmem [resolvable:$false] %s6615_s26 }
  0x5e   : > { %s6617_s2 = scalar_lea.vmem %s6616_s26, 32768  ;;  %p6618_p9 = scmp.lt.s32.totalorder %s6959_s17, %s6616_s26 }
  0x5f   : > { %p6613_p6 = pnand %p6611_p4, %p6567_p12  ;;  %p6619_p11 = scmp.lt.s32.totalorder %s6617_s2, %s6610_s19 }
  0x61   : > { %p6614_p7 = pneg %p6613_p6  ;;  %p6620_p13 = por %p6619_p11, %p6618_p9 }
  0x63   : > { %p6621_p1 = pnand %p6620_p13, %p6614_p7 }
  0x65   : > { %6624 = shalt.err (!%p6621_p1)
}
  0x66   : > { %s6701_s25 = smov 4   ;;  %831 = sbr.rel (%p6946_p5) target bundleno = 4970 (0x136a), region = 108 }
  0x67   : > { %6278 = dma.hbm_to_vmem [thread:$0]  (!%p6909_p10), %s6955_s16, 16384, %s6959_s17, %s803_s6, %s6699_s20, %s6699_s20, %s6701_s25  }
  0x6d   : > { %s833_s3 = sand.u32 1, %s6671_s28   ;;  %p7874_p9 = scmp.ne.s32.totalorder %s7865_s24, 0 }
  0x6e   : > { %s5512_s5 = sshll.u32 %s833_s3, 10  ;;  %s834_s23 = scalar_lea.sflag [#allocation3], %s833_s3 }
  0x6f   : > { %s6992_s19 = scalar_lea.vmem [#allocation2], %s5512_s5 }
  0x70   : > { %7873 = sst [smem:[#allocation17_spill]] %s6992_s19 }
  0x71   : > { %6658 = dma.done.wait (%p7874_p9), %s834_s23, 16384  }
  0x72   : > { %6660 = vsyncadd (%p7874_p9), %s834_s23, 4294950912  ;;  %s843_s21 = scalar_lea.sflag [#allocation5], %s833_s3  ;;  %s6998_s27 = scalar_lea.vmem [#allocation4], %s5512_s5 }
  0x73   : > { %7875 = sst [smem:[#allocation18_spill]] %s6998_s27 }
  0x74   : > { %6662 = dma.done.wait (%p7874_p9), %s843_s21, 16384  }
  0x75   : > { %6664 = vsyncadd (%p7874_p9), %s843_s21, 4294950912  ;;  %p982_p10 = scmp.lt.s32.totalorder %s6683_s4, 1  ;;  %p998_p12 = scmp.lt.s32.totalorder %s6679_s30, 1 }
  0x76   : > { %s7876_s29 = sld [smem:[#allocation20_spill]]  ;;  %s7882_s2 = sld [smem:[#allocation25_spill]] }
  0x77   : > { %s7928_s4 = smov (!%p982_p10, %s6683_s4), 1  ;;  %s7883_s23 = sld [smem:[#allocation26_spill]] }
  0x78   : > { %s7008_s16 = scalar_select %p998_p12, %s6679_s30, 1 }
  0x79   : > { %s7010_s17 = sshll.u32 %s7928_s4, 3  ;;  %s7884_s8 = sld [smem:[#allocation27_spill]] }
  0x7a   : > { %s5518_s1 = sshll.u32 %s7008_s16, 2  ;;  %s5850_s24 = sshll.u32 %s7008_s16, 6 }
  0x7b   : > { %s5851_s21 = sshll.u32 %s7008_s16, 4  ;;  %s7885_s10 = sld [smem:[#allocation28_spill]] }
  0x7c   : > { %s985_s6 = scalar_lea.vmem %s7876_s29, %s7010_s17  ;;  %s7880_s29 = sld [smem:[#allocation24_spill]] }
  0x7d   : > { %s7038_s25 = scalar_lea.vmem %s7882_s2, %s5518_s1  ;;  %s7043_s18 = scalar_lea.vmem %s7883_s23, %s5850_s24 }
  0x7e   : > { %s7887_s12 = sld [smem:[#allocation30_spill]]  ;;  %s7889_s23 = sld [smem:[#allocation33_spill]] }
  0x7f   : > { %s7057_s22 = scalar_lea.vmem %s7884_s8, %s5851_s21  ;;  %s7080_s8 = scalar_lea.vmem %s7814_s14, %s5851_s21 }
  0x80   : > { %s7890_s4 = sld [smem:[#allocation35_spill]]  ;;  %s7892_s20 = sld [smem:[#allocation10_spill]] }
  0x81   : > { %s7062_s2 = scalar_lea.vmem %s7885_s10, %s5850_s24  ;;  %s1045_s10 = scalar_lea.vmem %s7815_s15, %s7008_s16 }
  0x82   : > { %s7033_s19 = scalar_lea.vmem %s7880_s29, %s5518_s1 }
  0x83   : > { %7881 = sst [smem:[#allocation19_spill]] %s7033_s19  ;;  %s7891_s19 = sld [smem:[#allocation38_spill]] }
  0x84   : > { %s7071_s28 = scalar_lea.vmem %s7887_s12, %s5850_s24  ;;  %s7089_s11 = scalar_lea.vmem %s7889_s23, %s5851_s21 }
  0x86   : > { %s1052_s12 = scalar_lea.vmem %s7890_s4, %s7008_s16  ;;  %p5532_p5 = scmp.ne.s32.totalorder %s7892_s20, 0 }
  0x87   : > { %v1062_v0 = vld [vmem:[%s985_s6] sm:$0xff] (!%p5532_p5) }
  0x88   : > { %1061 = sbr.rel (%p5532_p5) target bundleno = 143 (0x8f), region = 120 }
  0x89   : > { %s7099_s13 = scalar_lea.vmem %s7891_s19, %s7010_s17 }
  0x8a   : > { %1063 = vst [vmem:[%s7099_s13] sm:$0xff] (!%p5532_p5), %v1062_v0 }
  0x8f PF: > { %v6702_v2 = vmov 0.0   ;;  %v1068_v3 = vlaneseq  ;;  %v6358_v11 = vld [vmem:[%s7043_s18] sm:$0xff]   ;;  %v6359_v12 = vld [vmem:[%s7043_s18 + $0x8] sm:$0xff]   ;;  %v6360_v13 = vld [vmem:[%s7043_s18 + $0x10] sm:$0xff]   ;;  %vm6703_vm1 = vmmov 0   ;;  %s7893_s6 = sld [smem:[#allocation19_spill]]  ;;  %s7894_s23 = scalar_lea.vmem %s7807_s7, %s7008_s16 }
  0x90   : > { %6096 = vmatprep.subr.bf16.mxu0 %v6702_v2  ;;  %6116 = vmatprep.subr.bf16.mxu1 %v6702_v2  ;;  %v6361_v14 = vld [vmem:[%s7043_s18 + $0x18] sm:$0xff]   ;;  %v6362_v15 = vld [vmem:[%s7043_s18 + $0x20] sm:$0xff]   ;;  %v6363_v16 = vld [vmem:[%s7043_s18 + $0x28] sm:$0xff]   ;;  %s6704_s19 = smov 104   ;;  %s6705_s29 = smov 120   ;;  %vm1232_vm4 = vcmask 64512  }
  0x91   : > { %v1064_v1 = vld [vmem:[%s7099_s13] sm:$0xff]  ;;  %v1069_v4 = vand.u32 127, %v1068_v3  ;;  %6097 = vmatpush3.bf16.msra.mxu0 %v6358_v11  ;;  %6112 = vmatprep.mubr.msk.bf16.mxu0 %vm6703_vm1, %v6702_v2  ;;  %v6364_v17 = vld [vmem:[%s7043_s18 + $0x30] sm:$0xff]   ;;  %v6365_v18 = vld [vmem:[%s7043_s18 + $0x38] sm:$0xff]   ;;  %v7130_v25 = vshrl.u32 %v1068_v3, 7  ;;  %s6706_s1 = smov 112   ;;  %s7897_s18 = scalar_lea.vmem %s7809_s9, %s7008_s16 }
  0x92   : > { %1073 = vadd.xlane.f32.xlu0 %v1064_v1  ;;  %6098 = vmatprep.subr.bf16.mxu0 %v6702_v2  ;;  %v7141_v31 = vld [vmem:[%s7038_s25] sm:$0x7]  ;;  %s6707_s26 = smov 96   ;;  %s7895_s24 = sld [smem:[#allocation22_spill]]  ;;  %vm1487_vm5 = vcmask 1043456   ;;  %vm1688_vm6 = vcmask 130048  }
  0x93   : > { %vm1070_vm0 = vcmp.lt.s32.totalorder %v1069_v4, 32  ;;  %6118 = vmatprep.mubr.msk.bf16.mxu1 %vm6703_vm1, %v6702_v2  ;;  %v7133_v28 = vsub.s32 0, %v7130_v25  ;;  %v5534_v38 = vld [vmem:[%s7894_s23] ss:$0 sm:$0xff]  ;;  %s6708_s4 = smov 64   ;;  %s6709_s30 = smov 16  }
  0x94   : > { %v7107_v8 = vsel %vm1070_vm0, 1.0, %v6702_v2  ;;  %s6710_s27 = smov 8   ;;  %s6711_s20 = smov 24   ;;  %vm1690_vm7 = vcmask 195584   ;;  %vm1709_vm8 = vcmask 261120  }
  0x95   : > { %6099 = vmatpush3.bf16.msra.mxu0 %v6359_v12  ;;  %v7136_v29 = vld [vmem:[%s7893_s6] sm:$0x7]  ;;  %v1100_v33 = vrot.slane %v7141_v31, %v7133_v28  ;;  %s7898_s5 = sld [smem:[#allocation21_spill]] }
  0x96   : > { %6100 = vmatprep.subr.bf16.mxu0 %v6702_v2  ;;  %v1094_v30 = vrot.slane %v7136_v29, %v7133_v28 }
  0x98   : > { %s7896_s0 = scalar_lea.vmem %s7895_s24, %s7010_s17 }
  0x99   : > { %6101 = vmatpush3.bf16.msra.mxu0 %v6360_v13  ;;  %v1214_v60 = vld [vmem:[%s7896_s0] sm:$0xff]  ;;  %s7900_s0 = sld [smem:[#allocation31_spill]] }
  0x9a   : > { %6102 = vmatprep.subr.bf16.mxu0 %v6702_v2 }
  0x9b   : > { %s7899_s24 = scalar_lea.vmem %s7898_s5, %s7010_s17 }
  0x9d   : > { %6103 = vmatpush3.bf16.msra.mxu0 %v6361_v14 }
  0x9e   : > { %6104 = vmatprep.subr.bf16.mxu0 %v6702_v2 }
  0xa1   : > { %6105 = vmatpush3.bf16.msra.mxu0 %v6362_v15 }
  0xa2   : > { %6106 = vmatprep.subr.bf16.mxu0 %v6702_v2 }
  0xa5   : > { %6107 = vmatpush3.bf16.msra.mxu0 %v6363_v16 }
  0xa6   : > { %6108 = vmatprep.subr.bf16.mxu0 %v6702_v2 }
  0xa9   : > { %6109 = vmatpush3.bf16.msra.mxu0 %v6364_v17 }
  0xaa   : > { %6110 = vmatprep.subr.bf16.mxu0 %v6702_v2 }
  0xad   : > { %6111 = vmatpush3.bf16.msra.mxu0 %v6365_v18 }
  0xae   : > { %6140 = vmatprep.subr.bf16.mxu0 %v6702_v2 }
 0x11f   : > { %v1074_v5 = vpop.xlane.xlu0 %1073 }
 0x120   : > { %v1075_v6 = vmul.f32 0.03125, %v1074_v5 }
 0x122   : > { %v1076_v7 = vsub.f32 %v1064_v1, %v1075_v6 }
 0x124   : > { %v1077_v9 = vmul.f32 %v1076_v7, %v1076_v7  ;;  %v1095_v32 = vmul.f32 %v1094_v30, %v1076_v7 }
 0x126   : > { %v1078_v10 = vmul.f32 %v7107_v8, %v1077_v9 }
 0x128   : > { %1079 = vadd.xlane.f32.xlu0 %v1078_v10 }
 0x1b5   : > { %v1080_v19 = vpop.xlane.xlu0 %1079 }
 0x1b6   : > { %v1081_v20 = vmul.f32 0.032258064, %v1080_v19 }
 0x1b8   : > { %6514 = vrsqrt.f32 %v1081_v20  ;;  %vm1084_vm2 = vcmp.eq.f32.partialorder %v1081_v20, inf  ;;  %v1087_v23 = vand.u32 2147483648, %v1081_v20  ;;  %vm1086_vm3 = vcmp.eq.f32.partialorder %v1081_v20, 0.0 }
 0x1c2   : > { %v6515_v21 = vpop.eup %6514 }
 0x1c3   : > { %v1083_v22 = vmul.f32 %v6515_v21, %v1081_v20 }
 0x1c5   : > { %v1085_v24 = vsel %vm1084_vm2, %v1081_v20, %v1083_v22 }
 0x1c6   : > { %v1088_v26 = vsel %vm1086_vm3, %v1087_v23, %v1085_v24 }
 0x1c7   : > { %v1089_v27 = vadd.f32 1e-06, %v1088_v26 }
 0x1c9   : > { %6516 = vrcp.f32 %v1089_v27 }
 0x1d3   : > { %v6517_v34 = vpop.eup %6516 }
 0x1d4   : > { %v1096_v35 = vmul.f32 %v6517_v34, %v1095_v32 }
 0x1d6   : > { %v1101_v36 = vadd.f32 %v1100_v33, %v1096_v35 }
 0x1d8   : > { %v1102_v37 = vpack.c.bf16 %v1101_v36, %v1101_v36 }
 0x1da   : > { %6113 = vmatmul.mubr.bf16.vlgmr.msra.gmra.mrb[0].mxu0 %v1102_v37 }
 0x1db   : > { %6142 = vmatprep.mubr.msk.bf16.mxu0 %vm6703_vm1, %v6702_v2 }
 0x2ad   : > { %v1208_v39 = vpop.f32.mrb[0].mxu0 }
 0x2ae   : > { %v1209_v40 = vadd.f32 %v5534_v38, %v1208_v39  ;;  %v6114_v41 = vpop.f32.mrb[1].mxu0 }
 0x2af   : > { %v1211_v42 = vpop.f32.mrb[2].mxu0 }
 0x2b0   : > { %1222 = vrot.lane.b32.xlu0 %v1209_v40, %s6704_s19  ;;  %1216 = vrot.lane.b32.xlu1 %v1209_v40, %s6705_s29  ;;  %v6115_v43 = vpop.f32.mrb[3].mxu0  ;;  %v7155_v44 = vpack.c.bf16 %v1209_v40, %v1209_v40 }
 0x2b4   : > { %1219 = vrot.lane.b32.xlu1 %v1209_v40, %s6706_s1 }
 0x2b8   : > { %1230 = vrot.lane.b32.xlu1 %v7155_v44, %s6707_s26 }
 0x322   : > { %v1217_v45 = vpop.permute.xlu1 %1216  ;;  %v1223_v49 = vpop.permute.xlu0 %1222 }
 0x323   : > { %v7159_v46 = vpack.c.bf16 %v1217_v45, %v1217_v45  ;;  %v7167_v51 = vpack.c.bf16 %v1223_v49, %v1223_v49 }
 0x325   : > { %1280 = vrot.lane.b32.xlu1 %v7159_v46, %s6707_s26 }
 0x326   : > { %v1220_v47 = vpop.permute.xlu1 %1219 }
 0x327   : > { %v7163_v48 = vpack.c.bf16 %v1220_v47, %v1220_v47 }
 0x329   : > { %1329 = vrot.lane.b32.xlu1 %v7163_v48, %s6707_s26 }
 0x32a   : > { %v1231_v50 = vpop.permute.xlu1 %1230 }
 0x32b   : > { %v1237_v52 = vsel %vm1232_vm4, %v1231_v50, 0 }
 0x32c   : > { %6117 = vmatpush3.bf16.xpose.msra.mxu1 %v1237_v52 }
 0x32d   : > { %1378 = vrot.lane.b32.xlu1 %v7167_v51, %s6707_s26  ;;  %6122 = vmatprep.subr.bf16.mxu1 %v6702_v2 }
 0x333   : > { %6119 = vmatmul.mubr.msk.bf16.vlgmr.msra.gmra.mrb[0].mxu1 %vm1232_vm4, %v7155_v44 }
 0x334   : > { %6124 = vmatprep.mubr.msk.bf16.mxu1 %vm6703_vm1, %v6702_v2 }
 0x397   : > { %v1281_v53 = vpop.permute.xlu1 %1280 }
 0x398   : > { %v1286_v54 = vsel %vm1232_vm4, %v1281_v53, 0 }
 0x399   : > { %6123 = vmatpush3.bf16.xpose.msra.mxu1 %v1286_v54 }
 0x39a   : > { %6128 = vmatprep.subr.bf16.mxu1 %v6702_v2 }
 0x39b   : > { %v1330_v55 = vpop.permute.xlu1 %1329 }
 0x39c   : > { %v1335_v56 = vsel %vm1232_vm4, %v1330_v55, 0 }
 0x39f   : > { %v1379_v57 = vpop.permute.xlu1 %1378 }
 0x3a0   : > { %6125 = vmatmul.mubr.msk.bf16.vlgmr.msra.gmra.mrb[4].mxu1 %vm1232_vm4, %v7159_v46  ;;  %v1384_v58 = vsel %vm1232_vm4, %v1379_v57, 0 }
 0x3a1   : > { %6129 = vmatpush3.bf16.xpose.msra.mxu1 %v1335_v56  ;;  %6130 = vmatprep.mubr.msk.bf16.mxu1 %vm6703_vm1, %v6702_v2 }
 0x3a2   : > { %6134 = vmatprep.subr.bf16.mxu1 %v6702_v2 }
 0x3a8   : > { %6131 = vmatmul.mubr.msk.bf16.vlgmr.msra.gmra.mrb[8].mxu1 %vm1232_vm4, %v7163_v48 }
 0x3a9   : > { %6135 = vmatpush3.bf16.xpose.msra.mxu1 %v1384_v58  ;;  %6136 = vmatprep.mubr.msk.bf16.mxu1 %vm6703_vm1, %v6702_v2 }
 0x3aa   : > { %6146 = vmatprep.subr.bf16.mxu1 %v6702_v2 }
 0x3b0   : > { %6137 = vmatmul.mubr.msk.bf16.vlgmr.msra.gmra.mrb[12].mxu1 %vm1232_vm4, %v7167_v51 }
 0x3b1   : > { %6148 = vmatprep.mubr.msk.bf16.mxu1 %vm6703_vm1, %v6702_v2 }
 0x406   : > { %v1273_v59 = vpop.f32.mrb[0].mxu1 }
 0x407   : > { %v1426_v61 = vmul.f32 0.35355338, %v1273_v59  ;;  %v6120_v62 = vpop.f32.mrb[1].mxu1 }
 0x408   : > { %v1276_v63 = vpop.f32.mrb[2].mxu1 }
 0x409   : > { %v6121_v0 = vpop.f32.mrb[3].mxu1  ;;  %v1430_v1 = vadd.f32 %v1426_v61, %v1214_v60 }
 0x40b   : > { %v1434_v3 = vsel %vm1232_vm4, %v1430_v1, -inf }
 0x40c   : > { %1435 = vmax.xlane.f32.xlu1 %v1434_v3 }
 0x473   : > { %v1322_v4 = vpop.f32.mrb[4].mxu1 }
 0x474   : > { %v1427_v5 = vmul.f32 0.35355338, %v1322_v4  ;;  %v6126_v6 = vpop.f32.mrb[5].mxu1 }
 0x475   : > { %v1325_v7 = vpop.f32.mrb[6].mxu1 }
 0x476   : > { %v6127_v9 = vpop.f32.mrb[7].mxu1  ;;  %v1431_v10 = vadd.f32 %v1427_v5, %v1214_v60 }
 0x478   : > { %v1437_v11 = vsel %vm1232_vm4, %v1431_v10, -inf }
 0x479   : > { %1438 = vmax.xlane.f32.xlu0 %v1437_v11 }
 0x47b   : > { %v1371_v12 = vpop.f32.mrb[8].mxu1 }
 0x47c   : > { %v1428_v13 = vmul.f32 0.35355338, %v1371_v12  ;;  %v6132_v14 = vpop.f32.mrb[9].mxu1 }
 0x47d   : > { %v1374_v15 = vpop.f32.mrb[10].mxu1 }
 0x47e   : > { %v6133_v16 = vpop.f32.mrb[11].mxu1  ;;  %v1432_v17 = vadd.f32 %v1428_v13, %v1214_v60 }
 0x47f   : > { %v6366_v16 = vld [vmem:[%s7057_s22] sm:$0xff]  }
 0x480   : > { %v1440_v18 = vsel %vm1232_vm4, %v1432_v17, -inf }
 0x481   : > { %1441 = vmax.xlane.f32.xlu1 %v1440_v18 }
 0x483   : > { %v1420_v19 = vpop.f32.mrb[12].mxu1 }
 0x484   : > { %v1429_v20 = vmul.f32 0.35355338, %v1420_v19  ;;  %v6138_v21 = vpop.f32.mrb[13].mxu1 }
 0x485   : > { %v1423_v22 = vpop.f32.mrb[14].mxu1 }
 0x486   : > { %v6139_v23 = vpop.f32.mrb[15].mxu1  ;;  %v1433_v24 = vadd.f32 %v1429_v20, %v1214_v60 }
 0x488   : > { %v1443_v26 = vsel %vm1232_vm4, %v1433_v24, -inf }
 0x489   : > { %1444 = vmax.xlane.f32.xlu0 %v1443_v26 }
 0x492   : > { %1482 = vrot.lane.b32.xlu1 %v7155_v44, %s6708_s4 }
 0x499   : > { %v1436_v27 = vpop.xlane.xlu1 %1435 }
 0x49a   : > { %v1446_v30 = vsub.f32 %v1430_v1, %v1436_v27 }
 0x49c   : > { %v1450_v32 = vmul.f32 1.442695, %v1446_v30 }
 0x49e   : > { %6518 = vpow2.f32 %v1450_v32 }
 0x4a8   : > { %v6519_v33 = vpop.eup %6518 }
 0x4a9   : > { %v1458_v34 = vsel %vm1232_vm4, %v6519_v33, 0.0 }
 0x4b6   : > { %1459 = vadd.xlane.f32.xlu1 %v1458_v34 }
 0x506   : > { %v1439_v35 = vpop.xlane.xlu0 %1438 }
 0x507   : > { %v1447_v36 = vsub.f32 %v1431_v10, %v1439_v35 }
 0x509   : > { %v1452_v37 = vmul.f32 1.442695, %v1447_v36 }
 0x50b   : > { %6520 = vpow2.f32 %v1452_v37 }
 0x50e   : > { %v1442_v38 = vpop.xlane.xlu1 %1441 }
 0x50f   : > { %v1448_v39 = vsub.f32 %v1432_v17, %v1442_v38  ;;  %v6367_v17 = vld [vmem:[%s7057_s22 + $0x8] sm:$0xff]  }
 0x511   : > { %v1454_v40 = vmul.f32 1.442695, %v1448_v39 }
 0x512   : > { %v1483_v41 = vpop.permute.xlu1 %1482 }
 0x513   : > { %6522 = vpow2.f32 %v1454_v40  ;;  %v1489_v42 = vsel %vm1487_vm5, %v1483_v41, 0 }
 0x514   : > { %6141 = vmatpush3.bf16.msra.mxu0 %v1489_v42  ;;  %v5554_v42 = vld [vmem:[%s7897_s18] ss:$0 sm:$0xff]  ;;  %s7902_s18 = sld [smem:[#allocation29_spill]] }
 0x515   : > { %v6521_v43 = vpop.eup %6520  ;;  %6152 = vmatprep.subr.bf16.mxu0 %v6702_v2 }
 0x516   : > { %v1445_v44 = vpop.xlane.xlu0 %1444  ;;  %v1461_v45 = vsel %vm1232_vm4, %v6521_v43, 0.0 }
 0x517   : > { %v1449_v47 = vsub.f32 %v1433_v24, %v1445_v44  ;;  %1462 = vadd.xlane.f32.xlu0 %v1461_v45 }
 0x519   : > { %v1456_v49 = vmul.f32 1.442695, %v1449_v47 }
 0x51a   : > { %s7903_s23 = scalar_lea.vmem %s7902_s18, %s7008_s16 }
 0x51b   : > { %6524 = vpow2.f32 %v1456_v49 }
 0x51d   : > { %v6523_v50 = vpop.eup %6522 }
 0x51e   : > { %v1464_v52 = vsel %vm1232_vm4, %v6523_v50, 0.0 }
 0x51f   : > { %1465 = vadd.xlane.f32.xlu1 %v1464_v52  ;;  %v6368_v52 = vld [vmem:[%s7071_s28] sm:$0xff]  }
 0x525   : > { %v6525_v53 = vpop.eup %6524 }
 0x526   : > { %v1467_v54 = vsel %vm1232_vm4, %v6525_v53, 0.0 }
 0x527   : > { %1468 = vadd.xlane.f32.xlu0 %v1467_v54 }
 0x530   : > { %1579 = vrot.lane.b32.xlu1 %v7163_v48, %s6708_s4 }
 0x534   : > { %1627 = vrot.lane.b32.xlu1 %v7167_v51, %s6708_s4 }
 0x53d   : > { %1531 = vrot.lane.b32.xlu0 %v7159_v46, %s6708_s4  ;;  %s7901_s4 = scalar_lea.vmem %s7900_s0, %s7008_s16 }
 0x543   : > { %v1460_v55 = vpop.xlane.xlu1 %1459 }
 0x544   : > { %6526 = vrcp.f32 %v1460_v55 }
 0x54e   : > { %v6527_v56 = vpop.eup %6526 }
 0x54f   : > { %v1474_v57 = vmul.f32 %v6527_v56, %v6519_v33 }
 0x551   : > { %v1478_v58 = vpack.c.bf16 %v1474_v57, %v1474_v57 }
 0x553   : > { %6143 = vmatmul.mubr.msk.bf16.vlgmr.msra.gmra.mrb[4].mxu0 %vm1232_vm4, %v1478_v58  ;;  %v6369_v58 = vld [vmem:[%s7071_s28 + $0x8] sm:$0xff]  }
 0x554   : > { %6154 = vmatprep.mubr.msk.bf16.mxu0 %vm6703_vm1, %v6702_v2 }
 0x5a4   : > { %v1463_v59 = vpop.xlane.xlu0 %1462 }
 0x5a5   : > { %6528 = vrcp.f32 %v1463_v59  ;;  %v6370_v59 = vld [vmem:[%s7071_s28 + $0x10] sm:$0xff]  }
 0x5ac   : > { %v1466_v60 = vpop.xlane.xlu1 %1465 }
 0x5ad   : > { %6530 = vrcp.f32 %v1466_v60  ;;  %v6371_v60 = vld [vmem:[%s7062_s2] sm:$0xff]  }
 0x5af   : > { %v6529_v46 = vpop.eup %6528 }
 0x5b0   : > { %v1580_v48 = vpop.permute.xlu1 %1579  ;;  %v1475_v63 = vmul.f32 %v6529_v46, %v6521_v43  ;;  %v6558_v43 = vld [vmem:[%s7099_s13] sm:$0xff] }
 0x5b1   : > { %v1585_v51 = vsel %vm1487_vm5, %v1580_v48, 0  ;;  %v6372_v48 = vld [vmem:[%s7071_s28 + $0x18] sm:$0xff]   ;;  %v6374_v46 = vld [vmem:[%s7071_s28 + $0x20] sm:$0xff]  }
 0x5b2   : > { %6153 = vmatpush3.bf16.msra.mxu0 %v1585_v51  ;;  %v1479_v6 = vpack.c.bf16 %v1475_v63, %v1475_v63  ;;  %v6373_v51 = vld [vmem:[%s7062_s2 + $0x8] sm:$0xff]   ;;  %v6377_v63 = vld [vmem:[%s7062_s2 + $0x18] sm:$0xff]  }
 0x5b3   : > { %6164 = vmatprep.subr.bf16.mxu0 %v6702_v2 }
 0x5b4   : > { %v1469_v61 = vpop.xlane.xlu0 %1468  ;;  %v1628_v4 = vpop.permute.xlu1 %1627 }
 0x5b5   : > { %6532 = vrcp.f32 %v1469_v61  ;;  %v1633_v7 = vsel %vm1487_vm5, %v1628_v4, 0  ;;  %v6375_v61 = vld [vmem:[%s7062_s2 + $0x10] sm:$0xff]   ;;  %v1065_v4 = vld [vmem:[%s7899_s24] sm:$0xff] }
 0x5b7   : > { %v6531_v62 = vpop.eup %6530 }
 0x5b8   : > { %v1476_v0 = vmul.f32 %v6531_v62, %v6523_v50  ;;  %v1532_v1 = vpop.permute.xlu0 %1531  ;;  %v6376_v62 = vld [vmem:[%s7071_s28 + $0x28] sm:$0xff]  }
 0x5b9   : > { %v1537_v3 = vsel %vm1487_vm5, %v1532_v1, 0  ;;  %v6379_v1 = vld [vmem:[%s7062_s2 + $0x20] sm:$0xff]  }
 0x5ba   : > { %6147 = vmatpush3.bf16.msra.mxu1 %v1537_v3  ;;  %v1480_v5 = vpack.c.bf16 %v1476_v0, %v1476_v0  ;;  %v6378_v0 = vld [vmem:[%s7071_s28 + $0x30] sm:$0xff]   ;;  %v6380_v3 = vld [vmem:[%s7071_s28 + $0x38] sm:$0xff]  }
 0x5bb   : > { %6158 = vmatprep.subr.bf16.mxu1 %v6702_v2 }
 0x5bc   : > { %6155 = vmatmul.mubr.msk.bf16.vlgmr.msra.gmra.mrb[8].mxu0 %vm1232_vm4, %v1480_v5  ;;  %v1903_v5 = vpack.c.bf16 %v1065_v4, %v1065_v4 }
 0x5bd   : > { %6149 = vmatmul.mubr.msk.bf16.vlgmr.msra.gmra.mrb[16].mxu1 %vm1232_vm4, %v1479_v6  ;;  %6168 = vmatprep.mubr.msk.bf16.mxu0 %vm6703_vm1, %v6702_v2  ;;  %v6381_v6 = vld [vmem:[%s7062_s2 + $0x28] sm:$0xff]  }
 0x5be   : > { %6159 = vmatpush3.bf16.msra.mxu1 %v1633_v7  ;;  %6160 = vmatprep.mubr.msk.bf16.mxu1 %vm6703_vm1, %v6702_v2  ;;  %v6382_v7 = vld [vmem:[%s7062_s2 + $0x30] sm:$0xff]  }
 0x5bf   : > { %v6533_v9 = vpop.eup %6532  ;;  %6172 = vmatprep.subr.bf16.mxu1 %v6702_v2  ;;  %6165 = vmatpush3.bf16.msra.mxu0 %v6366_v16 }
 0x5c0   : > { %v1477_v10 = vmul.f32 %v6533_v9, %v6525_v53  ;;  %6166 = vmatprep.subr.bf16.mxu0 %v6702_v2  ;;  %v6383_v9 = vld [vmem:[%s7062_s2 + $0x38] sm:$0xff]  }
 0x5c2   : > { %v1481_v11 = vpack.c.bf16 %v1477_v10, %v1477_v10 }
 0x5c3   : > { %6167 = vmatpush3.bf16.msra.mxu0 %v6367_v17 }
 0x5c4   : > { %6192 = vmatprep.subr.bf16.mxu0 %v6702_v2 }
 0x5c5   : > { %6161 = vmatmul.mubr.msk.bf16.vlgmr.msra.gmra.mrb[20].mxu1 %vm1232_vm4, %v1481_v11 }
 0x5c6   : > { %6188 = vmatprep.mubr.msk.bf16.mxu1 %vm6703_vm1, %v6702_v2  ;;  %6173 = vmatpush3.bf16.msra.mxu1 %v6371_v60 }
 0x5c7   : > { %6174 = vmatprep.subr.bf16.mxu1 %v6702_v2 }
 0x5ca   : > { %6175 = vmatpush3.bf16.msra.mxu1 %v6373_v51 }
 0x5cb   : > { %6176 = vmatprep.subr.bf16.mxu1 %v6702_v2 }
 0x5ce   : > { %6177 = vmatpush3.bf16.msra.mxu1 %v6375_v61 }
 0x5cf   : > { %6178 = vmatprep.subr.bf16.mxu1 %v6702_v2 }
 0x5d2   : > { %6179 = vmatpush3.bf16.msra.mxu1 %v6377_v63 }
 0x5d3   : > { %6180 = vmatprep.subr.bf16.mxu1 %v6702_v2 }
 0x5d6   : > { %6181 = vmatpush3.bf16.msra.mxu1 %v6379_v1 }
 0x5d7   : > { %6182 = vmatprep.subr.bf16.mxu1 %v6702_v2 }
 0x5da   : > { %6183 = vmatpush3.bf16.msra.mxu1 %v6381_v6 }
 0x5db   : > { %6184 = vmatprep.subr.bf16.mxu1 %v6702_v2 }
 0x5de   : > { %6185 = vmatpush3.bf16.msra.mxu1 %v6382_v7 }
 0x5df   : > { %6186 = vmatprep.subr.bf16.mxu1 %v6702_v2 }
 0x5e2   : > { %6187 = vmatpush3.bf16.msra.mxu1 %v6383_v9 }
 0x5e3   : > { %6212 = vmatprep.subr.bf16.mxu1 %v6702_v2 }
 0x626   : > { %v1525_v12 = vpop.f32.mrb[4].mxu0 }
 0x627   : > { %v6144_v13 = vpop.f32.mrb[5].mxu0 }
 0x628   : > { %v1528_v14 = vpop.f32.mrb[6].mxu0 }
 0x629   : > { %v6145_v15 = vpop.f32.mrb[7].mxu0 }
 0x68f   : > { %v1621_v18 = vpop.f32.mrb[8].mxu0 }
 0x690   : > { %v1573_v19 = vpop.f32.mrb[16].mxu1  ;;  %1680 = vrot.lane.b32.xlu1 %v1621_v18, %s6709_s30  ;;  %v6156_v20 = vpop.f32.mrb[9].mxu0  ;;  %v7304_v18 = vsub.s32 1, %v7130_v25 }
 0x691   : > { %1676 = vrot.lane.b32.xlu0 %v1573_v19, %s6710_s27  ;;  %v6150_v21 = vpop.f32.mrb[17].mxu1  ;;  %v1624_v22 = vpop.f32.mrb[10].mxu0 }
 0x692   : > { %v1576_v23 = vpop.f32.mrb[18].mxu1  ;;  %v6157_v24 = vpop.f32.mrb[11].mxu0  ;;  %v1783_v19 = vrot.slane %v7136_v29, %v7304_v18  ;;  %v1789_v21 = vrot.slane %v7141_v31, %v7304_v18 }
 0x693   : > { %v6151_v26 = vpop.f32.mrb[19].mxu1 }
 0x698   : > { %v1669_v27 = vpop.f32.mrb[20].mxu1 }
 0x699   : > { %1684 = vrot.lane.b32.xlu0 %v1669_v27, %s6711_s20  ;;  %v6162_v30 = vpop.f32.mrb[21].mxu1  ;;  %v5564_v27 = vld [vmem:[%s7901_s4] ss:$0 sm:$0xff] }
 0x69a   : > { %v1672_v32 = vpop.f32.mrb[22].mxu1 }
 0x69b   : > { %v6163_v33 = vpop.f32.mrb[23].mxu1 }
 0x702   : > { %v1681_v36 = vpop.permute.xlu1 %1680 }
 0x703   : > { %v1677_v34 = vpop.permute.xlu0 %1676 }
 0x704   : > { %v1687_v35 = vsel %vm1232_vm4, %v1525_v12, %v1677_v34 }
 0x705   : > { %v1689_v38 = vsel %vm1688_vm6, %v1687_v35, %v1681_v36 }
 0x70b   : > { %v1685_v37 = vpop.permute.xlu0 %1684 }
 0x70c   : > { %v1691_v39 = vsel %vm1690_vm7, %v1689_v38, %v1685_v37 }
 0x70d   : > { %v1692_v40 = vpack.c.bf16 %v1691_v39, %v1691_v39 }
 0x70f   : > { %6169 = vmatmul.mubr.msk.bf16.vlgmr.msra.gmra.mrb[12].mxu0 %vm1709_vm8, %v1692_v40  ;;  %v5555_v40 = vld [vmem:[%s7903_s23] ss:$0 sm:$0xff] }
 0x710   : > { %6208 = vmatprep.mubr.msk.bf16.mxu0 %vm6703_vm1, %v6702_v2  ;;  %6193 = vmatpush3.bf16.msra.mxu0 %v6368_v52 }
 0x711   : > { %6194 = vmatprep.subr.bf16.mxu0 %v6702_v2 }
 0x714   : > { %6195 = vmatpush3.bf16.msra.mxu0 %v6369_v58 }
 0x715   : > { %6196 = vmatprep.subr.bf16.mxu0 %v6702_v2 }
 0x718   : > { %6197 = vmatpush3.bf16.msra.mxu0 %v6370_v59 }
 0x719   : > { %6198 = vmatprep.subr.bf16.mxu0 %v6702_v2 }
 0x71c   : > { %6199 = vmatpush3.bf16.msra.mxu0 %v6372_v48 }
 0x71d   : > { %6200 = vmatprep.subr.bf16.mxu0 %v6702_v2 }
 0x720   : > { %6201 = vmatpush3.bf16.msra.mxu0 %v6374_v46 }
 0x721   : > { %6202 = vmatprep.subr.bf16.mxu0 %v6702_v2 }
 0x724   : > { %6203 = vmatpush3.bf16.msra.mxu0 %v6376_v62 }
 0x725   : > { %6204 = vmatprep.subr.bf16.mxu0 %v6702_v2 }
 0x728   : > { %6205 = vmatpush3.bf16.msra.mxu0 %v6378_v0 }
 0x729   : > { %6206 = vmatprep.subr.bf16.mxu0 %v6702_v2 }
 0x72c   : > { %6207 = vmatpush3.bf16.msra.mxu0 %v6380_v3 }
 0x72d   : > { %6218 = vmatprep.subr.bf16.mxu0 %v6702_v2 }
 0x72f   : > { %6209 = vmatmul.mubr.bf16.vlgmr.msra.gmra.mrb[16].mxu0 %v1903_v5 }
 0x730   : > { %6220 = vmatprep.mubr.msk.bf16.mxu0 %vm6703_vm1, %v6702_v2 }
 0x7e2   : > { %v1747_v41 = vpop.f32.mrb[12].mxu0 }
 0x7e3   : > { %v1753_v44 = vadd.f32 %v6558_v43, %v1747_v41  ;;  %v6170_v45 = vpop.f32.mrb[13].mxu0 }
 0x7e4   : > { %v1750_v47 = vpop.f32.mrb[14].mxu0 }
 0x7e5   : > { %v7255_v49 = vadd.f32 %v5554_v42, %v1753_v44  ;;  %v6171_v50 = vpop.f32.mrb[15].mxu0 }
 0x7e7   : > { %1762 = vadd.xlane.f32.xlu1 %v7255_v49 }
 0x802   : > { %v2009_v30 = vpop.f32.mrb[16].mxu0 }
 0x803   : > { %v2010_v29 = vadd.f32 %v5564_v27, %v2009_v30  ;;  %v6210_v32 = vpop.f32.mrb[17].mxu0 }
 0x804   : > { %v2012_v33 = vpop.f32.mrb[18].mxu0 }
 0x805   : > { %v6211_v31 = vpop.f32.mrb[19].mxu0  ;;  %v7319_v34 = vpack.c.bf16 %v2010_v29, %v2010_v29  ;;  %2034 = vrot.lane.b32.xlu1 %v2010_v29, %s6706_s1 }
 0x807   : > { %v2048_v35 = vsel %vm1232_vm4, %v7319_v34, 0 }
 0x874   : > { %v1763_v53 = vpop.xlane.xlu1 %1762 }
 0x875   : > { %v1764_v54 = vmul.f32 0.03125, %v1763_v53 }
 0x877   : > { %v7261_v55 = vsub.f32 %v7255_v49, %v1764_v54 }
 0x878   : > { %v2035_v39 = vpop.permute.xlu1 %2034 }
 0x879   : > { %v1766_v56 = vmul.f32 %v7261_v55, %v7261_v55  ;;  %v1784_v20 = vmul.f32 %v1783_v19, %v7261_v55  ;;  %v7336_v41 = vpack.c.bf16 %v2035_v39, %v2035_v39 }
 0x87b   : > { %v1767_v57 = vmul.f32 %v7107_v8, %v1766_v56  ;;  %v2140_v52 = vsel %vm1232_vm4, %v7336_v41, 0 }
 0x87d   : > { %1768 = vadd.xlane.f32.xlu0 %v1767_v57 }
 0x893   : > { %2031 = vrot.lane.b32.xlu0 %v2010_v29, %s6705_s29 }
 0x897   : > { %2037 = vrot.lane.b32.xlu0 %v2010_v29, %s6704_s19 }
 0x90a   : > { %v1769_v10 = vpop.xlane.xlu0 %1768 }
 0x90b   : > { %v1770_v11 = vmul.f32 0.032258064, %v1769_v10 }
 0x90d   : > { %6534 = vrsqrt.f32 %v1770_v11  ;;  %vm1773_vm9 = vcmp.eq.f32.partialorder %v1770_v11, inf  ;;  %v1776_v14 = vand.u32 2147483648, %v1770_v11  ;;  %vm1775_vm10 = vcmp.eq.f32.partialorder %v1770_v11, 0.0 }
 0x90e   : > { %v2032_v36 = vpop.permute.xlu0 %2031 }
 0x90f   : > { %v7326_v37 = vpack.c.bf16 %v2032_v36, %v2032_v36 }
 0x911   : > { %v2094_v38 = vsel %vm1232_vm4, %v7326_v37, 0 }
 0x912   : > { %6219 = vmatpush3.bf16.xpose.msra.mxu0 %v2094_v38  ;;  %v2038_v53 = vpop.permute.xlu0 %2037 }
 0x913   : > { %6230 = vmatprep.subr.bf16.mxu0 %v6702_v2  ;;  %v7347_v54 = vpack.c.bf16 %v2038_v53, %v2038_v53 }
 0x915   : > { %v2186_v57 = vsel %vm1232_vm4, %v7347_v54, 0 }
 0x917   : > { %v6535_v12 = vpop.eup %6534 }
 0x918   : > { %v1772_v13 = vmul.f32 %v6535_v12, %v1770_v11 }
 0x91a   : > { %v1774_v15 = vsel %vm1773_vm9, %v1770_v11, %v1772_v13 }
 0x91b   : > { %v1777_v16 = vsel %vm1775_vm10, %v1776_v14, %v1774_v15 }
 0x91c   : > { %v1778_v17 = vadd.f32 1e-06, %v1777_v16 }
 0x91e   : > { %6536 = vrcp.f32 %v1778_v17 }
 0x928   : > { %v6537_v22 = vpop.eup %6536 }
 0x929   : > { %v1785_v23 = vmul.f32 %v6537_v22, %v1784_v20 }
 0x92b   : > { %v1790_v24 = vadd.f32 %v1789_v21, %v1785_v23 }
 0x92d   : > { %v1791_v26 = vpack.c.bf16 %v1790_v24, %v1790_v24 }
 0x92f   : > { %6189 = vmatmul.mubr.bf16.vlgmr.msra.gmra.mrb[24].mxu1 %v1791_v26 }
 0x930   : > { %6214 = vmatprep.mubr.msk.bf16.mxu1 %vm6703_vm1, %v6702_v2  ;;  %6213 = vmatpush3.bf16.xpose.msra.mxu1 %v2048_v35 }
 0x931   : > { %6224 = vmatprep.subr.bf16.mxu1 %v6702_v2 }
 0xa02   : > { %v1897_v42 = vpop.f32.mrb[24].mxu1 }
 0xa03   : > { %v1898_v43 = vadd.f32 %v5555_v40, %v1897_v42  ;;  %v6190_v44 = vpop.f32.mrb[25].mxu1 }
 0xa04   : > { %v1900_v45 = vpop.f32.mrb[26].mxu1 }
 0xa05   : > { %v2026_v47 = vpack.c.bf16 %v1898_v43, %v1898_v43  ;;  %v6191_v50 = vpop.f32.mrb[27].mxu1  ;;  %2017 = vrot.lane.b32.xlu1 %v1898_v43, %s6705_s29  ;;  %2023 = vrot.lane.b32.xlu0 %v1898_v43, %s6704_s19 }
 0xa07   : > { %6215 = vmatmul.mubr.msk.bf16.vlgmr.msra.gmra.mrb[28].mxu1 %vm1232_vm4, %v2026_v47 }
 0xa08   : > { %6225 = vmatpush3.bf16.xpose.msra.mxu1 %v2140_v52  ;;  %6226 = vmatprep.mubr.msk.bf16.mxu1 %vm6703_vm1, %v6702_v2 }
 0xa09   : > { %2020 = vrot.lane.b32.xlu1 %v1898_v43, %s6706_s1  ;;  %6236 = vmatprep.subr.bf16.mxu1 %v6702_v2  ;;  %s7904_s1 = sld [smem:[#allocation23_spill]] }
 0xa0f   : > { %s7905_s3 = scalar_lea.vmem %s7904_s1, %s7010_s17 }
 0xa10   : > { %v2015_v46 = vld [vmem:[%s7905_s3] sm:$0xff] }
 0xa77   : > { %v2018_v55 = vpop.permute.xlu1 %2017  ;;  %v2024_v60 = vpop.permute.xlu0 %2023 }
 0xa78   : > { %v2027_v56 = vpack.c.bf16 %v2018_v55, %v2018_v55  ;;  %v2029_v48 = vpack.c.bf16 %v2024_v60, %v2024_v60 }
 0xa7a   : > { %6221 = vmatmul.mubr.msk.bf16.vlgmr.msra.gmra.mrb[20].mxu0 %vm1232_vm4, %v2027_v56 }
 0xa7b   : > { %6231 = vmatpush3.bf16.xpose.msra.mxu0 %v2186_v57  ;;  %v2021_v58 = vpop.permute.xlu1 %2020  ;;  %6232 = vmatprep.mubr.msk.bf16.mxu0 %vm6703_vm1, %v6702_v2 }
 0xa7c   : > { %v2028_v59 = vpack.c.bf16 %v2021_v58, %v2021_v58  ;;  %6242 = vmatprep.subr.bf16.mxu0 %v6702_v2 }
 0xa7e   : > { %6227 = vmatmul.mubr.msk.bf16.vlgmr.msra.gmra.mrb[32].mxu1 %vm1232_vm4, %v2028_v59 }
 0xa7f   : > { %6238 = vmatprep.mubr.msk.bf16.mxu1 %vm6703_vm1, %v6702_v2 }
 0xa82   : > { %6233 = vmatmul.mubr.msk.bf16.vlgmr.msra.gmra.mrb[24].mxu0 %vm1232_vm4, %v2029_v48 }
 0xa83   : > { %6244 = vmatprep.mubr.msk.bf16.mxu0 %vm6703_vm1, %v6702_v2 }
 0xada   : > { %v2084_v51 = vpop.f32.mrb[28].mxu1 }
 0xadb   : > { %v2228_v61 = vmul.f32 0.35355338, %v2084_v51  ;;  %v6216_v62 = vpop.f32.mrb[29].mxu1 }
 0xadc   : > { %v2087_v63 = vpop.f32.mrb[30].mxu1 }
 0xadd   : > { %v6217_v0 = vpop.f32.mrb[31].mxu1  ;;  %v2232_v1 = vadd.f32 %v2228_v61, %v2015_v46 }
 0xadf   : > { %v2236_v3 = vsel %vm1232_vm4, %v2232_v1, -inf }
 0xae0   : > { %2237 = vmax.xlane.f32.xlu1 %v2236_v3 }
 0xb4d   : > { %v2130_v4 = vpop.f32.mrb[20].mxu0 }
 0xb4e   : > { %v2229_v5 = vmul.f32 0.35355338, %v2130_v4  ;;  %v6222_v6 = vpop.f32.mrb[21].mxu0 }
 0xb4f   : > { %v2133_v7 = vpop.f32.mrb[22].mxu0 }
 0xb50   : > { %v6223_v9 = vpop.f32.mrb[23].mxu0  ;;  %v2233_v10 = vadd.f32 %v2229_v5, %v2015_v46 }
 0xb51   : > { %v2176_v11 = vpop.f32.mrb[32].mxu1 }
 0xb52   : > { %v2230_v12 = vmul.f32 0.35355338, %v2176_v11  ;;  %v6228_v13 = vpop.f32.mrb[33].mxu1  ;;  %v2239_v14 = vsel %vm1232_vm4, %v2233_v10, -inf }
 0xb53   : > { %v2179_v15 = vpop.f32.mrb[34].mxu1  ;;  %2240 = vmax.xlane.f32.xlu0 %v2239_v14 }
 0xb54   : > { %v6229_v16 = vpop.f32.mrb[35].mxu1  ;;  %v2234_v17 = vadd.f32 %v2230_v12, %v2015_v46 }
 0xb55   : > { %v2222_v19 = vpop.f32.mrb[24].mxu0  ;;  %v6384_v16 = vld [vmem:[%s7080_s8] sm:$0xff]  }
 0xb56   : > { %v2231_v20 = vmul.f32 0.35355338, %v2222_v19  ;;  %v6234_v21 = vpop.f32.mrb[25].mxu0  ;;  %v2242_v22 = vsel %vm1232_vm4, %v2234_v17, -inf }
 0xb57   : > { %2243 = vmax.xlane.f32.xlu0 %v2242_v22  ;;  %v2225_v23 = vpop.f32.mrb[26].mxu0 }
 0xb58   : > { %v6235_v24 = vpop.f32.mrb[27].mxu0  ;;  %v2235_v26 = vadd.f32 %v2231_v20, %v2015_v46 }
 0xb5a   : > { %v2245_v27 = vsel %vm1232_vm4, %v2235_v26, -inf }
 0xb5b   : > { %2246 = vmax.xlane.f32.xlu1 %v2245_v27 }
 0xb6c   : > { %2334 = vrot.lane.b32.xlu1 %v7326_v37, %s6707_s26 }
 0xb6d   : > { %2285 = vrot.lane.b32.xlu0 %v7319_v34, %s6707_s26  ;;  %v2238_v30 = vpop.xlane.xlu1 %2237 }
 0xb6e   : > { %v2248_v29 = vsub.f32 %v2232_v1, %v2238_v30 }
 0xb70   : > { %v2252_v32 = vmul.f32 1.442695, %v2248_v29 }
 0xb72   : > { %6538 = vpow2.f32 %v2252_v32 }
 0xb7c   : > { %v6539_v33 = vpop.eup %6538 }
 0xb7d   : > { %v2260_v31 = vsel %vm1232_vm4, %v6539_v33, 0.0 }
 0xb8c   : > { %2261 = vadd.xlane.f32.xlu0 %v2260_v31 }
 0xbe0   : > { %v2241_v35 = vpop.xlane.xlu0 %2240 }
 0xbe1   : > { %v2249_v36 = vsub.f32 %v2233_v10, %v2241_v35 }
 0xbe3   : > { %v2254_v38 = vmul.f32 1.442695, %v2249_v36 }
 0xbe4   : > { %v2244_v39 = vpop.xlane.xlu0 %2243 }
 0xbe5   : > { %6540 = vpow2.f32 %v2254_v38  ;;  %v2250_v40 = vsub.f32 %v2234_v17, %v2244_v39  ;;  %v6385_v17 = vld [vmem:[%s7080_s8 + $0x8] sm:$0xff]   ;;  %s7906_s8 = sld [smem:[#allocation17_spill]] }
 0xbe7   : > { %v2256_v42 = vmul.f32 1.442695, %v2250_v40 }
 0xbe8   : > { %v2286_v43 = vpop.permute.xlu0 %2285  ;;  %v2247_v37 = vpop.xlane.xlu1 %2246 }
 0xbe9   : > { %6542 = vpow2.f32 %v2256_v42  ;;  %v2291_v34 = vsel %vm1487_vm5, %v2286_v43, 0  ;;  %v2251_v44 = vsub.f32 %v2235_v26, %v2247_v37  ;;  %v5584_v43 = vld [vmem:[%s1045_s10] ss:$0 sm:$0xff]  ;;  %s7907_s10 = sld [smem:[#allocation18_spill]] }
 0xbea   : > { %6237 = vmatpush3.bf16.msra.mxu1 %v2291_v34 }
 0xbeb   : > { %v2258_v45 = vmul.f32 1.442695, %v2251_v44  ;;  %6248 = vmatprep.subr.bf16.mxu1 %v6702_v2 }
 0xbec   : > { %v2335_v47 = vpop.permute.xlu1 %2334 }
 0xbed   : > { %6544 = vpow2.f32 %v2258_v45  ;;  %v2340_v50 = vsel %vm1487_vm5, %v2335_v47, 0 }
 0xbee   : > { %6243 = vmatpush3.bf16.msra.mxu0 %v2340_v50 }
 0xbef   : > { %v6541_v52 = vpop.eup %6540  ;;  %6254 = vmatprep.subr.bf16.mxu0 %v6702_v2 }
 0xbf0   : > { %v2263_v53 = vsel %vm1232_vm4, %v6541_v52, 0.0 }
 0xbf1   : > { %2264 = vadd.xlane.f32.xlu1 %v2263_v53 }
 0xbf3   : > { %v6543_v55 = vpop.eup %6542 }
 0xbf4   : > { %v2266_v56 = vsel %vm1232_vm4, %v6543_v55, 0.0 }
 0xbf5   : > { %2267 = vadd.xlane.f32.xlu0 %v2266_v56  ;;  %v2594_v56 = vld [vmem:[%s7906_s8] sm:$0xff] }
 0xbf7   : > { %v6545_v57 = vpop.eup %6544 }
 0xbf8   : > { %v2269_v58 = vsel %vm1232_vm4, %v6545_v57, 0.0 }
 0xbf9   : > { %2270 = vadd.xlane.f32.xlu1 %v2269_v58  ;;  %v2595_v58 = vld [vmem:[%s7906_s8 + $0x8] sm:$0xff] }
 0xc0a   : > { %2383 = vrot.lane.b32.xlu1 %v7336_v41, %s6707_s26 }
 0xc0b   : > { %2432 = vrot.lane.b32.xlu0 %v7347_v54, %s6707_s26 }
 0xc19   : > { %v2262_v59 = vpop.xlane.xlu0 %2261 }
 0xc1a   : > { %6546 = vrcp.f32 %v2262_v59 }
 0xc24   : > { %v6547_v60 = vpop.eup %6546 }
 0xc25   : > { %v2276_v48 = vmul.f32 %v6547_v60, %v6539_v33  ;;  %v2603_v60 = vld [vmem:[%s7906_s8 + $0x48] sm:$0xff] }
 0xc27   : > { %v2280_v51 = vpack.c.bf16 %v2276_v48, %v2276_v48 }
 0xc29   : > { %6239 = vmatmul.mubr.msk.bf16.vlgmr.msra.gmra.mrb[36].mxu1 %vm1232_vm4, %v2280_v51  ;;  %v5587_v51 = vcombine.low %v2595_v58, %v2603_v60 }
 0xc2a   : > { %6250 = vmatprep.mubr.msk.bf16.mxu1 %vm6703_vm1, %v6702_v2 }
 0xc7e   : > { %v2265_v46 = vpop.xlane.xlu1 %2264 }
 0xc7f   : > { %6548 = vrcp.f32 %v2265_v46  ;;  %v5588_v46 = vcombine.high %v2595_v58, %v2603_v60  ;;  %v2596_v60 = vld [vmem:[%s7906_s8 + $0x10] sm:$0xff] }
 0xc82   : > { %v2268_v61 = vpop.xlane.xlu0 %2267 }
 0xc83   : > { %6550 = vrcp.f32 %v2268_v61  ;;  %v2610_v61 = vld [vmem:[%s7906_s8 + $0x80] sm:$0xff] }
 0xc86   : > { %v2271_v62 = vpop.xlane.xlu1 %2270  ;;  %v2433_v54 = vpop.permute.xlu0 %2432 }
 0xc87   : > { %6552 = vrcp.f32 %v2271_v62  ;;  %v2438_v6 = vsel %vm1487_vm5, %v2433_v54, 0  ;;  %v2618_v62 = vld [vmem:[%s7906_s8 + $0xc0] sm:$0xff] }
 0xc88   : > { %v5601_v54 = vcombine.low %v2610_v61, %v2618_v62 }
 0xc89   : > { %v6549_v41 = vpop.eup %6548 }
 0xc8a   : > { %v2277_v63 = vmul.f32 %v6549_v41, %v6541_v52  ;;  %v2384_v0 = vpop.permute.xlu1 %2383  ;;  %v2611_v41 = vld [vmem:[%s7906_s8 + $0x88] sm:$0xff] }
 0xc8b   : > { %v2389_v1 = vsel %vm1487_vm5, %v2384_v0, 0  ;;  %v2619_v0 = vld [vmem:[%s7906_s8 + $0xc8] sm:$0xff] }
 0xc8c   : > { %6249 = vmatpush3.bf16.msra.mxu1 %v2389_v1  ;;  %v2281_v3 = vpack.c.bf16 %v2277_v63, %v2277_v63  ;;  %v5602_v63 = vcombine.high %v2610_v61, %v2618_v62  ;;  %v5603_v1 = vcombine.low %v2611_v41, %v2619_v0  ;;  %v6712_v61 = vmov 0  }
 0xc8d   : > { %v6551_v4 = vpop.eup %6550  ;;  %6260 = vmatprep.subr.bf16.mxu1 %v6702_v2 }
 0xc8e   : > { %v2278_v5 = vmul.f32 %v6551_v4, %v6543_v55  ;;  %6245 = vmatmul.mubr.msk.bf16.vlgmr.msra.gmra.mrb[28].mxu0 %vm1232_vm4, %v2281_v3  ;;  %v5604_v3 = vcombine.high %v2611_v41, %v2619_v0  ;;  %v2626_v4 = vld [vmem:[%s7906_s8 + $0x100] sm:$0xff]  ;;  %v2597_v41 = vld [vmem:[%s7906_s8 + $0x18] sm:$0xff] }
 0xc8f   : > { %6255 = vmatpush3.bf16.msra.mxu0 %v2438_v6  ;;  %6256 = vmatprep.mubr.msk.bf16.mxu0 %vm6703_vm1, %v6702_v2  ;;  %v2627_v6 = vld [vmem:[%s7906_s8 + $0x108] sm:$0xff] }
 0xc90   : > { %v2282_v7 = vpack.c.bf16 %v2278_v5, %v2278_v5  ;;  %v2634_v5 = vld [vmem:[%s7906_s8 + $0x140] sm:$0xff] }
 0xc91   : > { %v6553_v9 = vpop.eup %6552 }
 0xc92   : > { %v2279_v10 = vmul.f32 %v6553_v9, %v6545_v57  ;;  %6251 = vmatmul.mubr.msk.bf16.vlgmr.msra.gmra.mrb[40].mxu1 %vm1232_vm4, %v2282_v7  ;;  %v2602_v57 = vld [vmem:[%s7906_s8 + $0x40] sm:$0xff]  ;;  %v5618_v7 = vcombine.high %v2626_v4, %v2634_v5  ;;  %v2635_v9 = vld [vmem:[%s7906_s8 + $0x148] sm:$0xff] }
 0xc93   : > { %6264 = vmatprep.mubr.msk.bf16.mxu1 %vm6703_vm1, %v6702_v2  ;;  %6261 = vmatpush3.bf16.msra.mxu1 %v6384_v16  ;;  %v5586_v59 = vcombine.high %v2594_v56, %v2602_v57  ;;  %v5585_v48 = vcombine.low %v2594_v56, %v2602_v57  ;;  %v2707_v56 = vld [vmem:[%s7906_s8 + $0x388] sm:$0xff] }
 0xc94   : > { %v2283_v11 = vpack.c.bf16 %v2279_v10, %v2279_v10  ;;  %6262 = vmatprep.subr.bf16.mxu1 %v6702_v2  ;;  %v5617_v10 = vcombine.low %v2626_v4, %v2634_v5 }
 0xc95   : > { %3446 = vmatprep.subr.bf16.mxu0 %v5586_v59  ;;  %v2715_v59 = vld [vmem:[%s7906_s8 + $0x3c8] sm:$0xff] }
 0xc96   : > { %6257 = vmatmul.mubr.msk.bf16.vlgmr.msra.gmra.mrb[32].mxu0 %vm1232_vm4, %v2283_v11  ;;  %v5619_v11 = vcombine.low %v2627_v6, %v2635_v9 }
 0xc97   : > { %6263 = vmatpush3.bf16.msra.mxu1 %v6385_v17  ;;  %3447 = vmatpush1.bf16.msra.mxu0 %v5585_v48  ;;  %v2651_v17 = vld [vmem:[%s7906_s8 + $0x1c8] sm:$0xff]  ;;  %v2604_v48 = vld [vmem:[%s7906_s8 + $0x50] sm:$0xff] }
 0xc98   : > { %3487 = vmatprep.subr.bf16.mxu1 %v5588_v46  ;;  %3448 = vmatprep.subr.bf16.mxu0 %v5602_v63  ;;  %v5700_v46 = vcombine.high %v2707_v56, %v2715_v59  ;;  %v5589_v62 = vcombine.low %v2596_v60, %v2604_v48  ;;  %v2605_v63 = vld [vmem:[%s7906_s8 + $0x58] sm:$0xff]  ;;  %v5590_v0 = vcombine.high %v2596_v60, %v2604_v48  ;;  %v2676_v60 = vld [vmem:[%s7906_s8 + $0x290] sm:$0xff] }
 0xc99   : > { %3478 = vmatprep.mubr.bf16.mxu0 %v6712_v61  ;;  %v2684_v48 = vld [vmem:[%s7906_s8 + $0x2d0] sm:$0xff] }
 0xc9b   : > { %3449 = vmatpush1.bf16.msra.mxu0 %v5601_v54  ;;  %v5591_v54 = vcombine.low %v2597_v41, %v2605_v63 }
 0xc9c   : > { %3450 = vmatprep.subr.bf16.mxu0 %v5618_v7 }
 0xc9f   : > { %3451 = vmatpush1.bf16.msra.mxu0 %v5617_v10 }
 0xcfc   : > { %v2327_v12 = vpop.f32.mrb[36].mxu1 }
 0xcfd   : > { %v6240_v13 = vpop.f32.mrb[37].mxu1 }
 0xcfe   : > { %v2330_v14 = vpop.f32.mrb[38].mxu1  ;;  %v2642_v13 = vld [vmem:[%s7906_s8 + $0x180] sm:$0xff] }
 0xcff   : > { %v6241_v15 = vpop.f32.mrb[39].mxu1  ;;  %v2650_v14 = vld [vmem:[%s7906_s8 + $0x1c0] sm:$0xff] }
 0xd00   : > { %v2643_v15 = vld [vmem:[%s7906_s8 + $0x188] sm:$0xff]  ;;  %v5634_v16 = vcombine.high %v2642_v13, %v2650_v14 }
 0xd02   : > { %3452 = vmatprep.subr.bf16.mxu0 %v5634_v16 }
 0xd61   : > { %v2376_v19 = vpop.f32.mrb[28].mxu0 }
 0xd62   : > { %2481 = vrot.lane.b32.xlu1 %v2376_v19, %s6710_s27  ;;  %v6246_v20 = vpop.f32.mrb[29].mxu0  ;;  %v5633_v19 = vcombine.low %v2642_v13, %v2650_v14  ;;  %v6559_v13 = vld [vmem:[%s7893_s6] sm:$0x7] }
 0xd63   : > { %v2379_v21 = vpop.f32.mrb[30].mxu0  ;;  %v5635_v20 = vcombine.low %v2643_v15, %v2651_v17 }
 0xd64   : > { %v6247_v22 = vpop.f32.mrb[31].mxu0  ;;  %v5636_v21 = vcombine.high %v2643_v15, %v2651_v17  ;;  %3453 = vmatpush1.bf16.msra.mxu0 %v5633_v19  ;;  %v6560_v15 = vld [vmem:[%s7038_s25] sm:$0x7] }
 0xd65   : > { %v2425_v23 = vpop.f32.mrb[40].mxu1  ;;  %v2658_v22 = vld [vmem:[%s7906_s8 + $0x200] sm:$0xff] }
 0xd66   : > { %2485 = vrot.lane.b32.xlu0 %v2425_v23, %s6709_s30  ;;  %v6252_v24 = vpop.f32.mrb[41].mxu1  ;;  %v2666_v23 = vld [vmem:[%s7906_s8 + $0x240] sm:$0xff]  ;;  %s7909_s30 = sld [smem:[#allocation10_spill]] }
 0xd67   : > { %v2428_v26 = vpop.f32.mrb[42].mxu1  ;;  %v2659_v24 = vld [vmem:[%s7906_s8 + $0x208] sm:$0xff] }
 0xd68   : > { %v6253_v27 = vpop.f32.mrb[43].mxu1  ;;  %v5650_v26 = vcombine.high %v2658_v22, %v2666_v23 }
 0xd69   : > { %v2474_v30 = vpop.f32.mrb[32].mxu0  ;;  %v2667_v27 = vld [vmem:[%s7906_s8 + $0x248] sm:$0xff] }
 0xd6a   : > { %2489 = vrot.lane.b32.xlu1 %v2474_v30, %s6711_s20  ;;  %v6258_v29 = vpop.f32.mrb[33].mxu0  ;;  %v5649_v30 = vcombine.low %v2658_v22, %v2666_v23  ;;  %3454 = vmatprep.subr.bf16.mxu0 %v5650_v26  ;;  %v2620_v22 = vld [vmem:[%s7906_s8 + $0xd0] sm:$0xff]  ;;  %v2613_v23 = vld [vmem:[%s7906_s8 + $0x98] sm:$0xff] }
 0xd6b   : > { %v2477_v2 = vpop.f32.mrb[34].mxu0  ;;  %v5651_v29 = vcombine.low %v2659_v24, %v2667_v27 }
 0xd6c   : > { %v6259_v32 = vpop.f32.mrb[35].mxu0  ;;  %v5652_v2 = vcombine.high %v2659_v24, %v2667_v27  ;;  %3455 = vmatpush1.bf16.msra.mxu0 %v5649_v30  ;;  %v2621_v24 = vld [vmem:[%s7906_s8 + $0xd8] sm:$0xff]  ;;  %p5842_p8 = scmp.eq.s32.totalorder %s7909_s30, 1 }
 0xd6d   : > { %v2674_v32 = vld [vmem:[%s7906_s8 + $0x280] sm:$0xff] }
 0xdd4   : > { %v2482_v33 = vpop.permute.xlu1 %2481 }
 0xdd5   : > { %v2492_v35 = vsel %vm1232_vm4, %v2327_v12, %v2482_v33  ;;  %v5620_v12 = vcombine.high %v2627_v6, %v2635_v9  ;;  %v2682_v33 = vld [vmem:[%s7906_s8 + $0x2c0] sm:$0xff] }
 0xdd8   : > { %v2486_v31 = vpop.permute.xlu0 %2485 }
 0xdd9   : > { %v2493_v36 = vsel %vm1688_vm6, %v2492_v35, %v2486_v31  ;;  %v2675_v31 = vld [vmem:[%s7906_s8 + $0x288] sm:$0xff]  ;;  %v5666_v35 = vcombine.high %v2674_v32, %v2682_v33 }
 0xddb   : > { %3456 = vmatprep.subr.bf16.mxu0 %v5666_v35  ;;  %v5607_v35 = vcombine.low %v2613_v23, %v2621_v24 }
 0xddc   : > { %v2490_v38 = vpop.permute.xlu1 %2489 }
 0xddd   : > { %v2494_v39 = vsel %vm1690_vm7, %v2493_v36, %v2490_v38  ;;  %v2683_v36 = vld [vmem:[%s7906_s8 + $0x2c8] sm:$0xff]  ;;  %v5665_v38 = vcombine.low %v2674_v32, %v2682_v33  ;;  %v2636_v32 = vld [vmem:[%s7906_s8 + $0x150] sm:$0xff]  ;;  %v2629_v33 = vld [vmem:[%s7906_s8 + $0x118] sm:$0xff] }
 0xdde   : > { %v2495_v40 = vpack.c.bf16 %v2494_v39, %v2494_v39  ;;  %v5667_v39 = vcombine.low %v2675_v31, %v2683_v36 }
 0xddf   : > { %3457 = vmatpush1.bf16.msra.mxu0 %v5665_v38 }
 0xde0   : > { %6265 = vmatmul.mubr.msk.bf16.vlgmr.msra.gmra.mrb[44].mxu1 %vm1709_vm8, %v2495_v40  ;;  %v5668_v40 = vcombine.high %v2675_v31, %v2683_v36  ;;  %v2637_v31 = vld [vmem:[%s7906_s8 + $0x158] sm:$0xff] }
 0xde1   : > { %3488 = vmatpush1.bf16.msra.mxu1 %v5587_v51  ;;  %v5699_v51 = vcombine.low %v2707_v56, %v2715_v59  ;;  %3519 = vmatprep.mubr.bf16.mxu1 %v6712_v61  ;;  %v5624_v38 = vcombine.high %v2629_v33, %v2637_v31 }
 0xde2   : > { %3489 = vmatprep.subr.bf16.mxu1 %v5604_v3 }
 0xde5   : > { %3490 = vmatpush1.bf16.msra.mxu1 %v5603_v1  ;;  %v5592_v1 = vcombine.high %v2597_v41, %v2605_v63  ;;  %v5670_v63 = vcombine.high %v2676_v60, %v2684_v48 }
 0xde6   : > { %3491 = vmatprep.subr.bf16.mxu1 %v5620_v12  ;;  %v7463_v12 = vsub.s32 2, %v7130_v25 }
 0xde8   : > { %v2585_v14 = vrot.slane %v6559_v13, %v7463_v12  ;;  %v2591_v16 = vrot.slane %v6560_v15, %v7463_v12  ;;  %v2709_v13 = vld [vmem:[%s7906_s8 + $0x398] sm:$0xff] }
 0xde9   : > { %3492 = vmatpush1.bf16.msra.mxu1 %v5619_v11 }
 0xdea   : > { %3493 = vmatprep.subr.bf16.mxu1 %v5636_v21  ;;  %v2612_v21 = vld [vmem:[%s7906_s8 + $0x90] sm:$0xff] }
 0xdeb   : > { %v5606_v30 = vcombine.high %v2612_v21, %v2620_v22 }
 0xded   : > { %3494 = vmatpush1.bf16.msra.mxu1 %v5635_v20 }
 0xdee   : > { %3495 = vmatprep.subr.bf16.mxu1 %v5652_v2  ;;  %v2628_v2 = vld [vmem:[%s7906_s8 + $0x110] sm:$0xff] }
 0xdef   : > { %v5622_v36 = vcombine.high %v2628_v2, %v2636_v32 }
 0xdf1   : > { %3496 = vmatpush1.bf16.msra.mxu1 %v5651_v29  ;;  %v5608_v29 = vcombine.high %v2613_v23, %v2621_v24  ;;  %v2607_v23 = vld [vmem:[%s7906_s8 + $0x68] sm:$0xff] }
 0xdf2   : > { %3497 = vmatprep.subr.bf16.mxu1 %v5668_v40  ;;  %v2652_v40 = vld [vmem:[%s7906_s8 + $0x1d0] sm:$0xff] }
 0xdf5   : > { %3498 = vmatpush1.bf16.msra.mxu1 %v5667_v39  ;;  %v2644_v39 = vld [vmem:[%s7906_s8 + $0x190] sm:$0xff] }
 0xdf6   : > { %v5637_v56 = vcombine.low %v2644_v39, %v2652_v40 }
 0xeb3   : > { %v2549_v42 = vpop.f32.mrb[44].mxu1 }
 0xeb4   : > { %v2555_v37 = vadd.f32 %v2549_v42, %v7255_v49  ;;  %v6266_v34 = vpop.f32.mrb[45].mxu1  ;;  %v2690_v42 = vld [vmem:[%s7906_s8 + $0x300] sm:$0xff] }
 0xeb5   : > { %v2552_v44 = vpop.f32.mrb[46].mxu1 }
 0xeb6   : > { %v7415_v45 = vadd.f32 %v5584_v43, %v2555_v37  ;;  %v6267_v47 = vpop.f32.mrb[47].mxu1  ;;  %v2698_v43 = vld [vmem:[%s7906_s8 + $0x340] sm:$0xff]  ;;  %v2691_v37 = vld [vmem:[%s7906_s8 + $0x308] sm:$0xff] }
 0xeb7   : > { %v5682_v34 = vcombine.high %v2690_v42, %v2698_v43  ;;  %v2699_v44 = vld [vmem:[%s7906_s8 + $0x348] sm:$0xff]  ;;  %v5681_v47 = vcombine.low %v2690_v42, %v2698_v43  ;;  %v2645_v42 = vld [vmem:[%s7906_s8 + $0x198] sm:$0xff] }
 0xeb8   : > { %2564 = vadd.xlane.f32.xlu0 %v7415_v45  ;;  %v2653_v43 = vld [vmem:[%s7906_s8 + $0x1d8] sm:$0xff] }
 0xeb9   : > { %3458 = vmatprep.subr.bf16.mxu0 %v5682_v34  ;;  %v5623_v34 = vcombine.low %v2629_v33, %v2637_v31  ;;  %v2615_v33 = vld [vmem:[%s7906_s8 + $0xa8] sm:$0xff] }
 0xeba   : > { %3459 = vmatpush1.bf16.msra.mxu0 %v5681_v47  ;;  %v5640_v47 = vcombine.high %v2645_v42, %v2653_v43  ;;  %v2623_v31 = vld [vmem:[%s7906_s8 + $0xe8] sm:$0xff] }
 0xf45   : > { %v2565_v50 = vpop.xlane.xlu0 %2564 }
 0xf46   : > { %v2566_v52 = vmul.f32 0.03125, %v2565_v50  ;;  %v5683_v50 = vcombine.low %v2691_v37, %v2699_v44 }
 0xf48   : > { %v7419_v53 = vsub.f32 %v7415_v45, %v2566_v52  ;;  %v5684_v52 = vcombine.high %v2691_v37, %v2699_v44  ;;  %v5621_v37 = vcombine.low %v2628_v2, %v2636_v32  ;;  %v5638_v44 = vcombine.high %v2644_v39, %v2652_v40  ;;  %v2614_v2 = vld [vmem:[%s7906_s8 + $0xa0] sm:$0xff] }
 0xf49   : > { %v2622_v32 = vld [vmem:[%s7906_s8 + $0xe0] sm:$0xff] }
 0xf4a   : > { %v2568_v55 = vmul.f32 %v7419_v53, %v7419_v53  ;;  %3499 = vmatprep.subr.bf16.mxu1 %v5684_v52  ;;  %v2586_v17 = vmul.f32 %v2585_v14, %v7419_v53  ;;  %v5605_v53 = vcombine.low %v2612_v21, %v2620_v22  ;;  %v2668_v52 = vld [vmem:[%s7906_s8 + $0x250] sm:$0xff]  ;;  %v2717_v14 = vld [vmem:[%s7906_s8 + $0x3d8] sm:$0xff]  ;;  %v2606_v21 = vld [vmem:[%s7906_s8 + $0x60] sm:$0xff] }
 0xf4b   : > { %3500 = vmatpush1.bf16.msra.mxu1 %v5683_v50  ;;  %v2660_v50 = vld [vmem:[%s7906_s8 + $0x210] sm:$0xff]  ;;  %v2599_v22 = vld [vmem:[%s7906_s8 + $0x28] sm:$0xff]  ;;  %v2630_v39 = vld [vmem:[%s7906_s8 + $0x120] sm:$0xff] }
 0xf4c   : > { %v2569_v49 = vmul.f32 %v7107_v8, %v2568_v55  ;;  %v2706_v55 = vld [vmem:[%s7906_s8 + $0x380] sm:$0xff]  ;;  %3501 = vmatprep.subr.bf16.mxu1 %v5700_v46  ;;  %v2685_v46 = vld [vmem:[%s7906_s8 + $0x2d8] sm:$0xff] }
 0xf4d   : > { %v2638_v40 = vld [vmem:[%s7906_s8 + $0x160] sm:$0xff] }
 0xf4e   : > { %2570 = vadd.xlane.f32.xlu1 %v2569_v49  ;;  %v2714_v49 = vld [vmem:[%s7906_s8 + $0x3c0] sm:$0xff] }
 0xf4f   : > { %v5697_v57 = vcombine.low %v2706_v55, %v2714_v49  ;;  %v5698_v58 = vcombine.high %v2706_v55, %v2714_v49  ;;  %3502 = vmatpush1.bf16.msra.mxu1 %v5699_v51  ;;  %v2661_v55 = vld [vmem:[%s7906_s8 + $0x218] sm:$0xff] }
 0xf50   : > { %3569 = vmatprep.subr.bf16.mxu1 %v5592_v1  ;;  %v2669_v49 = vld [vmem:[%s7906_s8 + $0x258] sm:$0xff]  ;;  %v2700_v1 = vld [vmem:[%s7906_s8 + $0x350] sm:$0xff] }
 0xf51   : > { %3460 = vmatprep.subr.bf16.mxu0 %v5698_v58  ;;  %v5654_v58 = vcombine.high %v2660_v50, %v2668_v52  ;;  %v5656_v59 = vcombine.high %v2661_v55, %v2669_v49  ;;  %v2677_v51 = vld [vmem:[%s7906_s8 + $0x298] sm:$0xff]  ;;  %v5655_v41 = vcombine.low %v2661_v55, %v2669_v49  ;;  %v2647_v55 = vld [vmem:[%s7906_s8 + $0x1a8] sm:$0xff] }
 0xf52   : > { %3461 = vmatpush1.bf16.msra.mxu0 %v5697_v57  ;;  %v5639_v57 = vcombine.low %v2645_v42, %v2653_v43  ;;  %v2631_v42 = vld [vmem:[%s7906_s8 + $0x128] sm:$0xff] }
 0xf53   : > { %3528 = vmatprep.subr.bf16.mxu0 %v5590_v0  ;;  %v5672_v0 = vcombine.high %v2677_v51, %v2685_v46  ;;  %v2639_v43 = vld [vmem:[%s7906_s8 + $0x168] sm:$0xff] }
 0xf54   : > { %v2655_v49 = vld [vmem:[%s7906_s8 + $0x1e8] sm:$0xff] }
 0xfdb   : > { %v2571_v3 = vpop.xlane.xlu1 %2570 }
 0xfdc   : > { %v2572_v4 = vmul.f32 0.032258064, %v2571_v3  ;;  %v2693_v3 = vld [vmem:[%s7906_s8 + $0x318] sm:$0xff] }
 0xfde   : > { %6554 = vrsqrt.f32 %v2572_v4  ;;  %vm2575_vm11 = vcmp.eq.f32.partialorder %v2572_v4, inf  ;;  %v2578_v7 = vand.u32 2147483648, %v2572_v4  ;;  %vm2577_vm12 = vcmp.eq.f32.partialorder %v2572_v4, 0.0 }
 0xfe8   : > { %v6555_v5 = vpop.eup %6554 }
 0xfe9   : > { %v2574_v6 = vmul.f32 %v6555_v5, %v2572_v4  ;;  %v5669_v5 = vcombine.low %v2676_v60, %v2684_v48  ;;  %v2662_v60 = vld [vmem:[%s7906_s8 + $0x220] sm:$0xff] }
 0xfea   : > { %v2670_v48 = vld [vmem:[%s7906_s8 + $0x260] sm:$0xff] }
 0xfeb   : > { %v2576_v9 = vsel %vm2575_vm11, %v2572_v4, %v2574_v6  ;;  %v2701_v4 = vld [vmem:[%s7906_s8 + $0x358] sm:$0xff]  ;;  %v5671_v6 = vcombine.low %v2677_v51, %v2685_v46  ;;  %v2663_v51 = vld [vmem:[%s7906_s8 + $0x228] sm:$0xff] }
 0xfec   : > { %v2579_v10 = vsel %vm2577_vm12, %v2578_v7, %v2576_v9  ;;  %v5688_v9 = vcombine.high %v2693_v3, %v2701_v4  ;;  %v2671_v46 = vld [vmem:[%s7906_s8 + $0x268] sm:$0xff] }
 0xfed   : > { %v2580_v11 = vadd.f32 1e-06, %v2579_v10  ;;  %v2708_v10 = vld [vmem:[%s7906_s8 + $0x390] sm:$0xff] }
 0xfef   : > { %6556 = vrcp.f32 %v2580_v11  ;;  %v2716_v11 = vld [vmem:[%s7906_s8 + $0x3d0] sm:$0xff] }
 0xff0   : > { %v5701_v24 = vcombine.low %v2708_v10, %v2716_v11 }
 0xff9   : > { %v6557_v19 = vpop.eup %6556 }
 0xffa   : > { %v2587_v20 = vmul.f32 %v6557_v19, %v2586_v17  ;;  %v5702_v17 = vcombine.high %v2708_v10, %v2716_v11  ;;  %v5704_v19 = vcombine.high %v2709_v13, %v2717_v14  ;;  %v2694_v10 = vld [vmem:[%s7906_s8 + $0x320] sm:$0xff] }
 0xffb   : > { %v2702_v11 = vld [vmem:[%s7906_s8 + $0x360] sm:$0xff] }
 0xffc   : > { %v2592_v26 = vadd.f32 %v2591_v16, %v2587_v20  ;;  %v5687_v16 = vcombine.low %v2693_v3, %v2701_v4  ;;  %v2598_v20 = vld [vmem:[%s7906_s8 + $0x20] sm:$0xff]  ;;  %v2679_v3 = vld [vmem:[%s7906_s8 + $0x2a8] sm:$0xff] }
 0xffd   : > { %v2687_v4 = vld [vmem:[%s7906_s8 + $0x2e8] sm:$0xff] }
 0xffe   : > { %v7474_v27 = vpack.c.bf16 %v2592_v26, %v2592_v26  ;;  %v5703_v26 = vcombine.low %v2709_v13, %v2717_v14  ;;  %v2695_v13 = vld [vmem:[%s7906_s8 + $0x328] sm:$0xff] }
 0xfff   : > { %v2703_v14 = vld [vmem:[%s7906_s8 + $0x368] sm:$0xff] }
0x1000   : > { %3479 = vmatmul.mubr.bf16.vlgmr.msra.gmra.mrb[36].mxu0 %v7474_v27  ;;  %3520 = vmatmul.mubr.bf16.vlgmr.msra.gmra.mrb[48].mxu1 %v7474_v27 }
0x1001   : > { %3529 = vmatpush1.bf16.msra.mxu0 %v5589_v62  ;;  %3570 = vmatpush1.bf16.msra.mxu1 %v5591_v54  ;;  %v5653_v62 = vcombine.low %v2660_v50, %v2668_v52  ;;  %v2692_v54 = vld [vmem:[%s7906_s8 + $0x310] sm:$0xff]  ;;  %v2646_v50 = vld [vmem:[%s7906_s8 + $0x1a0] sm:$0xff] }
0x1002   : > { %3530 = vmatprep.subr.bf16.mxu0 %v5606_v30  ;;  %3571 = vmatprep.subr.bf16.mxu1 %v5608_v29  ;;  %v5686_v7 = vcombine.high %v2692_v54, %v2700_v1  ;;  %v5685_v15 = vcombine.low %v2692_v54, %v2700_v1  ;;  %v5594_v30 = vcombine.high %v2598_v20, %v2606_v21  ;;  %v2654_v52 = vld [vmem:[%s7906_s8 + $0x1e0] sm:$0xff] }
0x1003   : > { %3560 = vmatprep.mubr.bf16.mxu0 %v6712_v61  ;;  %3601 = vmatprep.mubr.bf16.mxu1 %v6712_v61  ;;  %v5596_v29 = vcombine.high %v2599_v22, %v2607_v23  ;;  %v2678_v54 = vld [vmem:[%s7906_s8 + $0x2a0] sm:$0xff] }
0x1004   : > { %v2686_v1 = vld [vmem:[%s7906_s8 + $0x2e0] sm:$0xff] }
0x1005   : > { %3531 = vmatpush1.bf16.msra.mxu0 %v5605_v53  ;;  %3572 = vmatpush1.bf16.msra.mxu1 %v5607_v35  ;;  %v5593_v53 = vcombine.low %v2598_v20, %v2606_v21  ;;  %v5595_v35 = vcombine.low %v2599_v22, %v2607_v23  ;;  %v2710_v20 = vld [vmem:[%s7906_s8 + $0x3a0] sm:$0xff]  ;;  %v2711_v22 = vld [vmem:[%s7906_s8 + $0x3a8] sm:$0xff] }
0x1006   : > { %3532 = vmatprep.subr.bf16.mxu0 %v5622_v36  ;;  %3573 = vmatprep.subr.bf16.mxu1 %v5624_v38  ;;  %v5610_v36 = vcombine.high %v2614_v2, %v2622_v32  ;;  %v5612_v38 = vcombine.high %v2615_v33, %v2623_v31  ;;  %v2718_v21 = vld [vmem:[%s7906_s8 + $0x3e0] sm:$0xff]  ;;  %v2719_v23 = vld [vmem:[%s7906_s8 + $0x3e8] sm:$0xff] }
0x1009   : > { %3533 = vmatpush1.bf16.msra.mxu0 %v5621_v37  ;;  %3574 = vmatpush1.bf16.msra.mxu1 %v5623_v34  ;;  %v5609_v37 = vcombine.low %v2614_v2, %v2622_v32  ;;  %v5611_v34 = vcombine.low %v2615_v33, %v2623_v31  ;;  %v2600_v2 = vld [vmem:[%s7906_s8 + $0x30] sm:$0xff]  ;;  %v2601_v33 = vld [vmem:[%s7906_s8 + $0x38] sm:$0xff] }
0x100a   : > { %3534 = vmatprep.subr.bf16.mxu0 %v5638_v44  ;;  %3575 = vmatprep.subr.bf16.mxu1 %v5640_v47  ;;  %v5626_v44 = vcombine.high %v2630_v39, %v2638_v40  ;;  %v5628_v47 = vcombine.high %v2631_v42, %v2639_v43  ;;  %v2608_v32 = vld [vmem:[%s7906_s8 + $0x70] sm:$0xff]  ;;  %v2609_v31 = vld [vmem:[%s7906_s8 + $0x78] sm:$0xff] }
0x100d   : > { %3535 = vmatpush1.bf16.msra.mxu0 %v5637_v56  ;;  %3576 = vmatpush1.bf16.msra.mxu1 %v5639_v57  ;;  %v5625_v56 = vcombine.low %v2630_v39, %v2638_v40  ;;  %v5627_v57 = vcombine.low %v2631_v42, %v2639_v43  ;;  %v2616_v39 = vld [vmem:[%s7906_s8 + $0xb0] sm:$0xff]  ;;  %v2617_v42 = vld [vmem:[%s7906_s8 + $0xb8] sm:$0xff] }
0x100e   : > { %3536 = vmatprep.subr.bf16.mxu0 %v5654_v58  ;;  %3577 = vmatprep.subr.bf16.mxu1 %v5656_v59  ;;  %v5642_v58 = vcombine.high %v2646_v50, %v2654_v52  ;;  %v5644_v59 = vcombine.high %v2647_v55, %v2655_v49  ;;  %v2624_v40 = vld [vmem:[%s7906_s8 + $0xf0] sm:$0xff]  ;;  %v2625_v43 = vld [vmem:[%s7906_s8 + $0xf8] sm:$0xff] }
0x1011   : > { %3537 = vmatpush1.bf16.msra.mxu0 %v5653_v62  ;;  %3578 = vmatpush1.bf16.msra.mxu1 %v5655_v41  ;;  %v5641_v62 = vcombine.low %v2646_v50, %v2654_v52  ;;  %v5643_v41 = vcombine.low %v2647_v55, %v2655_v49  ;;  %v2632_v50 = vld [vmem:[%s7906_s8 + $0x130] sm:$0xff]  ;;  %v2633_v55 = vld [vmem:[%s7906_s8 + $0x138] sm:$0xff] }
0x1012   : > { %3538 = vmatprep.subr.bf16.mxu0 %v5670_v63  ;;  %3579 = vmatprep.subr.bf16.mxu1 %v5672_v0  ;;  %v5658_v63 = vcombine.high %v2662_v60, %v2670_v48  ;;  %v5660_v0 = vcombine.high %v2663_v51, %v2671_v46  ;;  %v2640_v52 = vld [vmem:[%s7906_s8 + $0x170] sm:$0xff]  ;;  %v2641_v49 = vld [vmem:[%s7906_s8 + $0x178] sm:$0xff] }
0x1015   : > { %3539 = vmatpush1.bf16.msra.mxu0 %v5669_v5  ;;  %3580 = vmatpush1.bf16.msra.mxu1 %v5671_v6  ;;  %v5657_v5 = vcombine.low %v2662_v60, %v2670_v48  ;;  %v5659_v6 = vcombine.low %v2663_v51, %v2671_v46  ;;  %v2648_v60 = vld [vmem:[%s7906_s8 + $0x1b0] sm:$0xff]  ;;  %v2649_v51 = vld [vmem:[%s7906_s8 + $0x1b8] sm:$0xff] }
0x1016   : > { %3540 = vmatprep.subr.bf16.mxu0 %v5686_v7  ;;  %3581 = vmatprep.subr.bf16.mxu1 %v5688_v9  ;;  %v5674_v7 = vcombine.high %v2678_v54, %v2686_v1  ;;  %v5676_v9 = vcombine.high %v2679_v3, %v2687_v4  ;;  %v2656_v48 = vld [vmem:[%s7906_s8 + $0x1f0] sm:$0xff]  ;;  %v2657_v46 = vld [vmem:[%s7906_s8 + $0x1f8] sm:$0xff] }
0x1019   : > { %3541 = vmatpush1.bf16.msra.mxu0 %v5685_v15  ;;  %3582 = vmatpush1.bf16.msra.mxu1 %v5687_v16  ;;  %v5673_v15 = vcombine.low %v2678_v54, %v2686_v1  ;;  %v5675_v16 = vcombine.low %v2679_v3, %v2687_v4  ;;  %v2664_v54 = vld [vmem:[%s7906_s8 + $0x230] sm:$0xff]  ;;  %v2665_v3 = vld [vmem:[%s7906_s8 + $0x238] sm:$0xff] }
0x101a   : > { %3542 = vmatprep.subr.bf16.mxu0 %v5702_v17  ;;  %3583 = vmatprep.subr.bf16.mxu1 %v5704_v19  ;;  %v5690_v17 = vcombine.high %v2694_v10, %v2702_v11  ;;  %v5692_v19 = vcombine.high %v2695_v13, %v2703_v14  ;;  %v2672_v1 = vld [vmem:[%s7906_s8 + $0x270] sm:$0xff]  ;;  %v2673_v4 = vld [vmem:[%s7906_s8 + $0x278] sm:$0xff] }
0x101d   : > { %3543 = vmatpush1.bf16.msra.mxu0 %v5701_v24  ;;  %3584 = vmatpush1.bf16.msra.mxu1 %v5703_v26  ;;  %v5689_v24 = vcombine.low %v2694_v10, %v2702_v11  ;;  %v5691_v26 = vcombine.low %v2695_v13, %v2703_v14  ;;  %v2688_v10 = vld [vmem:[%s7906_s8 + $0x2f0] sm:$0xff]  ;;  %v2681_v11 = vld [vmem:[%s7906_s8 + $0x2b8] sm:$0xff]  ;;  %v5661_v14 = vcombine.low %v2664_v54, %v2672_v1 }
0x101e   : > { %3610 = vmatprep.subr.bf16.mxu0 %v5594_v30  ;;  %3651 = vmatprep.subr.bf16.mxu1 %v5596_v29  ;;  %v5706_v30 = vcombine.high %v2710_v20, %v2718_v21  ;;  %v5708_v29 = vcombine.high %v2711_v22, %v2719_v23  ;;  %v2689_v13 = vld [vmem:[%s7906_s8 + $0x2f8] sm:$0xff] }
0x1020   : > { %3561 = vmatmul.mubr.bf16.vlgmr.msra.gmra.mrb[40].mxu0 %v7474_v27  ;;  %3602 = vmatmul.mubr.bf16.vlgmr.msra.gmra.mrb[52].mxu1 %v7474_v27 }
0x1021   : > { %3611 = vmatpush1.bf16.msra.mxu0 %v5593_v53  ;;  %3652 = vmatpush1.bf16.msra.mxu1 %v5595_v35  ;;  %v5705_v53 = vcombine.low %v2710_v20, %v2718_v21  ;;  %v5707_v35 = vcombine.low %v2711_v22, %v2719_v23  ;;  %v2704_v20 = vld [vmem:[%s7906_s8 + $0x370] sm:$0xff]  ;;  %v2697_v21 = vld [vmem:[%s7906_s8 + $0x338] sm:$0xff] }
0x1022   : > { %3612 = vmatprep.subr.bf16.mxu0 %v5610_v36  ;;  %3653 = vmatprep.subr.bf16.mxu1 %v5612_v38  ;;  %v5598_v36 = vcombine.high %v2600_v2, %v2608_v32  ;;  %v5600_v38 = vcombine.high %v2601_v33, %v2609_v31  ;;  %v2705_v22 = vld [vmem:[%s7906_s8 + $0x378] sm:$0xff] }
0x1023   : > { %3642 = vmatprep.mubr.bf16.mxu0 %v6712_v61  ;;  %3683 = vmatprep.mubr.bf16.mxu1 %v6712_v61 }
0x1025   : > { %3613 = vmatpush1.bf16.msra.mxu0 %v5609_v37  ;;  %3654 = vmatpush1.bf16.msra.mxu1 %v5611_v34  ;;  %v5597_v37 = vcombine.low %v2600_v2, %v2608_v32  ;;  %v5599_v34 = vcombine.low %v2601_v33, %v2609_v31  ;;  %v2720_v2 = vld [vmem:[%s7906_s8 + $0x3f0] sm:$0xff]  ;;  %v2713_v32 = vld [vmem:[%s7906_s8 + $0x3b8] sm:$0xff] }
0x1026   : > { %3614 = vmatprep.subr.bf16.mxu0 %v5626_v44  ;;  %3655 = vmatprep.subr.bf16.mxu1 %v5628_v47  ;;  %v5614_v44 = vcombine.high %v2616_v39, %v2624_v40  ;;  %v5616_v47 = vcombine.high %v2617_v42, %v2625_v43  ;;  %v2721_v33 = vld [vmem:[%s7906_s8 + $0x3f8] sm:$0xff] }
0x1029   : > { %3615 = vmatpush1.bf16.msra.mxu0 %v5625_v56  ;;  %3656 = vmatpush1.bf16.msra.mxu1 %v5627_v57  ;;  %v5613_v56 = vcombine.low %v2616_v39, %v2624_v40  ;;  %v5615_v57 = vcombine.low %v2617_v42, %v2625_v43  ;;  %v5711_v39 = vcombine.low %v2713_v32, %v2721_v33  ;;  %v6386_v40 = vld [vmem:[%s7907_s10 + $0x40] sm:$0xff]  }
0x102a   : > { %3616 = vmatprep.subr.bf16.mxu0 %v5642_v58  ;;  %3657 = vmatprep.subr.bf16.mxu1 %v5644_v59  ;;  %v5630_v58 = vcombine.high %v2632_v50, %v2640_v52  ;;  %v5632_v59 = vcombine.high %v2633_v55, %v2641_v49  ;;  %v6387_v42 = vld [vmem:[%s7907_s10 + $0xc0] sm:$0xff]  }
0x102b   : > { %v6388_v43 = vld [vmem:[%s7907_s10] sm:$0xff]  }
0x102d   : > { %3617 = vmatpush1.bf16.msra.mxu0 %v5641_v62  ;;  %3658 = vmatpush1.bf16.msra.mxu1 %v5643_v41  ;;  %v5629_v62 = vcombine.low %v2632_v50, %v2640_v52  ;;  %v5631_v41 = vcombine.low %v2633_v55, %v2641_v49  ;;  %v6393_v50 = vld [vmem:[%s7907_s10 + $0x88] sm:$0xff]   ;;  %v6394_v52 = vld [vmem:[%s7907_s10 + $0x50] sm:$0xff]  }
0x102e   : > { %3618 = vmatprep.subr.bf16.mxu0 %v5658_v63  ;;  %3659 = vmatprep.subr.bf16.mxu1 %v5660_v0  ;;  %v5646_v63 = vcombine.high %v2648_v60, %v2656_v48  ;;  %v5648_v0 = vcombine.high %v2649_v51, %v2657_v46  ;;  %v6395_v55 = vld [vmem:[%s7907_s10 + $0xd0] sm:$0xff]  }
0x102f   : > { %v6396_v49 = vld [vmem:[%s7907_s10 + $0x10] sm:$0xff]  }
0x1031   : > { %3619 = vmatpush1.bf16.msra.mxu0 %v5657_v5  ;;  %3660 = vmatpush1.bf16.msra.mxu1 %v5659_v6  ;;  %v5645_v5 = vcombine.low %v2648_v60, %v2656_v48  ;;  %v5662_v6 = vcombine.high %v2664_v54, %v2672_v1  ;;  %v6402_v60 = vld [vmem:[%s7907_s10 + $0x60] sm:$0xff]   ;;  %v6410_v54 = vld [vmem:[%s7907_s10 + $0x70] sm:$0xff]  }
0x1032   : > { %3620 = vmatprep.subr.bf16.mxu0 %v5674_v7  ;;  %3661 = vmatprep.subr.bf16.mxu1 %v5676_v9  ;;  %v5664_v7 = vcombine.high %v2665_v3, %v2673_v4  ;;  %v2680_v9 = vld [vmem:[%s7906_s8 + $0x2b0] sm:$0xff]  ;;  %v6403_v48 = vld [vmem:[%s7907_s10 + $0xe0] sm:$0xff]  }
0x1033   : > { %v5677_v23 = vcombine.low %v2680_v9, %v2688_v10  ;;  %v6411_v1 = vld [vmem:[%s7907_s10 + $0xf0] sm:$0xff]  }
0x1035   : > { %3621 = vmatpush1.bf16.msra.mxu0 %v5673_v15  ;;  %3662 = vmatpush1.bf16.msra.mxu1 %v5675_v16  ;;  %v5663_v15 = vcombine.low %v2665_v3, %v2673_v4  ;;  %v5678_v16 = vcombine.high %v2680_v9, %v2688_v10  ;;  %v6412_v3 = vld [vmem:[%s7907_s10 + $0x30] sm:$0xff]   ;;  %v6418_v9 = vld [vmem:[%s7907_s10 + $0x140] sm:$0xff]  }
0x1036   : > { %3622 = vmatprep.subr.bf16.mxu0 %v5690_v17  ;;  %3663 = vmatprep.subr.bf16.mxu1 %v5692_v19  ;;  %v5680_v17 = vcombine.high %v2681_v11, %v2689_v13  ;;  %v2696_v19 = vld [vmem:[%s7906_s8 + $0x330] sm:$0xff]  ;;  %v6419_v10 = vld [vmem:[%s7907_s10 + $0x1c0] sm:$0xff]  }
0x1037   : > { %v5693_v31 = vcombine.low %v2696_v19, %v2704_v20  ;;  %v6413_v4 = vld [vmem:[%s7907_s10 + $0xb0] sm:$0xff]  }
0x1039   : > { %3623 = vmatpush1.bf16.msra.mxu0 %v5689_v24  ;;  %3664 = vmatpush1.bf16.msra.mxu1 %v5691_v26  ;;  %v5679_v24 = vcombine.low %v2681_v11, %v2689_v13  ;;  %v5694_v26 = vcombine.high %v2696_v19, %v2704_v20  ;;  %v7613_v11 = vld [vmem:[%s7089_s11] sm:$0xff]  ;;  %v2740_v13 = vsub.s32 3, %v7130_v25 }
0x103a   : > { %3624 = vmatprep.subr.bf16.mxu0 %v5706_v30  ;;  %3665 = vmatprep.subr.bf16.mxu1 %v5708_v29  ;;  %v5696_v30 = vcombine.high %v2697_v21, %v2705_v22  ;;  %v2712_v29 = vld [vmem:[%s7906_s8 + $0x3b0] sm:$0xff] }
0x103d   : > { %3625 = vmatpush1.bf16.msra.mxu0 %v5705_v53  ;;  %3666 = vmatpush1.bf16.msra.mxu1 %v5707_v35  ;;  %v5695_v53 = vcombine.low %v2697_v21, %v2705_v22  ;;  %v5710_v35 = vcombine.high %v2712_v29, %v2720_v2 }
0x103e   : > { %3692 = vmatprep.subr.bf16.mxu0 %v5598_v36  ;;  %3733 = vmatprep.subr.bf16.mxu1 %v5600_v38  ;;  %v5712_v36 = vcombine.high %v2713_v32, %v2721_v33  ;;  %v5709_v38 = vcombine.low %v2712_v29, %v2720_v2 }
0x1040   : > { %3643 = vmatmul.mubr.bf16.vlgmr.msra.gmra.mrb[44].mxu0 %v7474_v27  ;;  %3684 = vmatmul.mubr.bf16.vlgmr.msra.gmra.mrb[56].mxu1 %v7474_v27 }
0x1041   : > { %3693 = vmatpush1.bf16.msra.mxu0 %v5597_v37  ;;  %3734 = vmatpush1.bf16.msra.mxu1 %v5599_v34  ;;  %v6389_v37 = vld [vmem:[%s7907_s10 + $0x80] sm:$0xff]   ;;  %v6390_v34 = vld [vmem:[%s7907_s10 + $0x48] sm:$0xff]  }
0x1042   : > { %3694 = vmatprep.subr.bf16.mxu0 %v5614_v44  ;;  %3735 = vmatprep.subr.bf16.mxu1 %v5616_v47  ;;  %v6391_v44 = vld [vmem:[%s7907_s10 + $0xc8] sm:$0xff]  }
0x1043   : > { %3724 = vmatprep.mubr.bf16.mxu0 %v6712_v61  ;;  %3765 = vmatprep.mubr.bf16.mxu1 %v6712_v61  ;;  %v5647_v61 = vcombine.low %v2649_v51, %v2657_v46  ;;  %v6392_v47 = vld [vmem:[%s7907_s10 + $0x8] sm:$0xff]   ;;  %v6404_v51 = vld [vmem:[%s7907_s10 + $0x20] sm:$0xff]  }
0x1044   : > { %v6405_v46 = vld [vmem:[%s7907_s10 + $0xa0] sm:$0xff]  }
0x1045   : > { %3695 = vmatpush1.bf16.msra.mxu0 %v5613_v56  ;;  %3736 = vmatpush1.bf16.msra.mxu1 %v5615_v57  ;;  %v6397_v56 = vld [vmem:[%s7907_s10 + $0x90] sm:$0xff]   ;;  %v6399_v57 = vld [vmem:[%s7907_s10 + $0xd8] sm:$0xff]  }
0x1046   : > { %3696 = vmatprep.subr.bf16.mxu0 %v5630_v58  ;;  %3737 = vmatprep.subr.bf16.mxu1 %v5632_v59  ;;  %v6400_v58 = vld [vmem:[%s7907_s10 + $0x18] sm:$0xff]  }
0x1047   : > { %v6401_v59 = vld [vmem:[%s7907_s10 + $0x98] sm:$0xff]  }
0x1049   : > { %3697 = vmatpush1.bf16.msra.mxu0 %v5629_v62  ;;  %3738 = vmatpush1.bf16.msra.mxu1 %v5631_v41  ;;  %v6406_v62 = vld [vmem:[%s7907_s10 + $0x68] sm:$0xff]  }
0x104a   : > { %3698 = vmatprep.subr.bf16.mxu0 %v5646_v63  ;;  %3739 = vmatprep.subr.bf16.mxu1 %v5648_v0  ;;  %v6407_v41 = vld [vmem:[%s7907_s10 + $0xe8] sm:$0xff]  }
0x104b   : > { %v6408_v63 = vld [vmem:[%s7907_s10 + $0x28] sm:$0xff]  }
0x104c   : > { %v6409_v0 = vld [vmem:[%s7907_s10 + $0xa8] sm:$0xff]  }
0x104d   : > { %3699 = vmatpush1.bf16.msra.mxu0 %v5645_v5  ;;  %3740 = vmatpush1.bf16.msra.mxu1 %v5647_v61  ;;  %v6414_v5 = vld [vmem:[%s7907_s10 + $0x78] sm:$0xff]  }
0x104e   : > { %3700 = vmatprep.subr.bf16.mxu0 %v5662_v6  ;;  %3741 = vmatprep.subr.bf16.mxu1 %v5664_v7  ;;  %v6415_v61 = vld [vmem:[%s7907_s10 + $0xf8] sm:$0xff]  }
0x104f   : > { %v6416_v6 = vld [vmem:[%s7907_s10 + $0x38] sm:$0xff]  }
0x1050   : > { %v6417_v7 = vld [vmem:[%s7907_s10 + $0xb8] sm:$0xff]  }
0x1051   : > { %3701 = vmatpush1.bf16.msra.mxu0 %v5661_v14  ;;  %3742 = vmatpush1.bf16.msra.mxu1 %v5663_v15  ;;  %v2729_v14 = vrot.slane %v7613_v11, %v7133_v28  ;;  %v2737_v15 = vrot.slane %v7613_v11, %v7463_v12 }
0x1052   : > { %3702 = vmatprep.subr.bf16.mxu0 %v5678_v16  ;;  %3743 = vmatprep.subr.bf16.mxu1 %v5680_v17  ;;  %v2733_v16 = vrot.slane %v7613_v11, %v7304_v18  ;;  %v2741_v17 = vrot.slane %v7613_v11, %v2740_v13 }
0x1055   : > { %3703 = vmatpush1.bf16.msra.mxu0 %v5677_v23  ;;  %3744 = vmatpush1.bf16.msra.mxu1 %v5679_v24 }
0x1056   : > { %3704 = vmatprep.subr.bf16.mxu0 %v5694_v26  ;;  %3745 = vmatprep.subr.bf16.mxu1 %v5696_v30 }
0x1059   : > { %3705 = vmatpush1.bf16.msra.mxu0 %v5693_v31  ;;  %3746 = vmatpush1.bf16.msra.mxu1 %v5695_v53 }
0x105a   : > { %3706 = vmatprep.subr.bf16.mxu0 %v5710_v35  ;;  %3747 = vmatprep.subr.bf16.mxu1 %v5712_v36 }
0x105d   : > { %3707 = vmatpush1.bf16.msra.mxu0 %v5709_v38  ;;  %3748 = vmatpush1.bf16.msra.mxu1 %v5711_v39 }
0x105e   : > { %5920 = vmatprep.subr.bf16.mxu0 %v6386_v40  ;;  %5942 = vmatprep.subr.bf16.mxu1 %v6387_v42  ;;  %v6420_v40 = vld [vmem:[%s7907_s10 + $0x100] sm:$0xff]  }
0x105f   : > { %v6421_v42 = vld [vmem:[%s7907_s10 + $0x180] sm:$0xff]  }
0x1060   : > { %3725 = vmatmul.mubr.bf16.vlgmr.msra.gmra.mrb[48].mxu0 %v7474_v27  ;;  %3766 = vmatmul.mubr.bf16.vlgmr.msra.gmra.mrb[60].mxu1 %v7474_v27  ;;  %v6398_v27 = vld [vmem:[%s7907_s10 + $0x58] sm:$0xff]  }
0x1061   : > { %5921 = vmatpush3.bf16.msra.mxu0 %v6388_v43  ;;  %5943 = vmatpush3.bf16.msra.mxu1 %v6389_v37 }
0x1062   : > { %5922 = vmatprep.subr.bf16.mxu0 %v6390_v34  ;;  %5944 = vmatprep.subr.bf16.mxu1 %v6391_v44  ;;  %v6422_v34 = vld [vmem:[%s7907_s10 + $0x148] sm:$0xff]  }
0x1063   : > { %v6423_v44 = vld [vmem:[%s7907_s10 + $0x1c8] sm:$0xff]  }
0x1065   : > { %5923 = vmatpush3.bf16.msra.mxu0 %v6392_v47  ;;  %5945 = vmatpush3.bf16.msra.mxu1 %v6393_v50  ;;  %v6424_v47 = vld [vmem:[%s7907_s10 + $0x108] sm:$0xff]  }
0x1066   : > { %5924 = vmatprep.subr.bf16.mxu0 %v6394_v52  ;;  %5946 = vmatprep.subr.bf16.mxu1 %v6395_v55  ;;  %v6425_v50 = vld [vmem:[%s7907_s10 + $0x188] sm:$0xff]   ;;  %v6426_v52 = vld [vmem:[%s7907_s10 + $0x150] sm:$0xff]  }
0x1067   : > { %v6427_v55 = vld [vmem:[%s7907_s10 + $0x1d0] sm:$0xff]  }
0x1069   : > { %5925 = vmatpush3.bf16.msra.mxu0 %v6396_v49  ;;  %5947 = vmatpush3.bf16.msra.mxu1 %v6397_v56  ;;  %v6428_v49 = vld [vmem:[%s7907_s10 + $0x110] sm:$0xff]  }
0x106a   : > { %5926 = vmatprep.subr.bf16.mxu0 %v6398_v27  ;;  %5948 = vmatprep.subr.bf16.mxu1 %v6399_v57  ;;  %v6429_v56 = vld [vmem:[%s7907_s10 + $0x190] sm:$0xff]   ;;  %v6430_v27 = vld [vmem:[%s7907_s10 + $0x158] sm:$0xff]  }
0x106b   : > { %v6431_v57 = vld [vmem:[%s7907_s10 + $0x1d8] sm:$0xff]  }
0x106d   : > { %5927 = vmatpush3.bf16.msra.mxu0 %v6400_v58  ;;  %5949 = vmatpush3.bf16.msra.mxu1 %v6401_v59  ;;  %v6432_v58 = vld [vmem:[%s7907_s10 + $0x118] sm:$0xff]  }
0x106e   : > { %5928 = vmatprep.subr.bf16.mxu0 %v6402_v60  ;;  %5950 = vmatprep.subr.bf16.mxu1 %v6403_v48  ;;  %v6433_v59 = vld [vmem:[%s7907_s10 + $0x198] sm:$0xff]   ;;  %v6434_v60 = vld [vmem:[%s7907_s10 + $0x160] sm:$0xff]  }
0x106f   : > { %v6435_v48 = vld [vmem:[%s7907_s10 + $0x1e0] sm:$0xff]  }
0x1071   : > { %5929 = vmatpush3.bf16.msra.mxu0 %v6404_v51  ;;  %5951 = vmatpush3.bf16.msra.mxu1 %v6405_v46  ;;  %v6436_v51 = vld [vmem:[%s7907_s10 + $0x120] sm:$0xff]  }
0x1072   : > { %5930 = vmatprep.subr.bf16.mxu0 %v6406_v62  ;;  %5952 = vmatprep.subr.bf16.mxu1 %v6407_v41  ;;  %v6437_v46 = vld [vmem:[%s7907_s10 + $0x1a0] sm:$0xff]   ;;  %v6438_v62 = vld [vmem:[%s7907_s10 + $0x168] sm:$0xff]  }
0x1073   : > { %v6439_v41 = vld [vmem:[%s7907_s10 + $0x1e8] sm:$0xff]  }
0x1075   : > { %5931 = vmatpush3.bf16.msra.mxu0 %v6408_v63  ;;  %5953 = vmatpush3.bf16.msra.mxu1 %v6409_v0  ;;  %v2744_v63 = vsub.s32 4, %v7130_v25  ;;  %v2752_v0 = vsub.s32 6, %v7130_v25 }
0x1076   : > { %5932 = vmatprep.subr.bf16.mxu0 %v6410_v54  ;;  %5954 = vmatprep.subr.bf16.mxu1 %v6411_v1  ;;  %v6440_v54 = vld [vmem:[%s7907_s10 + $0x128] sm:$0xff]  }
0x1077   : > { %v6441_v1 = vld [vmem:[%s7907_s10 + $0x1a8] sm:$0xff]  }
0x1079   : > { %5933 = vmatpush3.bf16.msra.mxu0 %v6412_v3  ;;  %5955 = vmatpush3.bf16.msra.mxu1 %v6413_v4  ;;  %v2748_v3 = vsub.s32 5, %v7130_v25  ;;  %v2756_v4 = vsub.s32 7, %v7130_v25 }
0x107a   : > { %5934 = vmatprep.subr.bf16.mxu0 %v6414_v5  ;;  %5956 = vmatprep.subr.bf16.mxu1 %v6415_v61  ;;  %v6442_v5 = vld [vmem:[%s7907_s10 + $0x170] sm:$0xff]  }
0x107b   : > { %v6443_v61 = vld [vmem:[%s7907_s10 + $0x1f0] sm:$0xff]  }
0x107d   : > { %5935 = vmatpush3.bf16.msra.mxu0 %v6416_v6  ;;  %5957 = vmatpush3.bf16.msra.mxu1 %v6417_v7  ;;  %v2745_v6 = vrot.slane %v7613_v11, %v2744_v63  ;;  %v2753_v7 = vrot.slane %v7613_v11, %v2752_v0 }
0x107e   : > { %5964 = vmatprep.subr.bf16.mxu0 %v6418_v9  ;;  %5986 = vmatprep.subr.bf16.mxu1 %v6419_v10  ;;  %v2749_v9 = vrot.slane %v7613_v11, %v2748_v3  ;;  %v2757_v10 = vrot.slane %v7613_v11, %v2756_v4 }
0x10d3   : > { %v3480_v19 = vpop.f32.mrb[36].mxu0  ;;  %v3521_v20 = vpop.f32.mrb[48].mxu1 }
0x10d4   : > { %v3481_v21 = vadd.f32 %v3480_v19, %v2729_v14  ;;  %v3522_v22 = vadd.f32 %v3521_v20, %v2737_v15  ;;  %v3482_v23 = vpop.f32.mrb[37].mxu0  ;;  %v3523_v24 = vpop.f32.mrb[49].mxu1  ;;  %v6444_v14 = vld [vmem:[%s7907_s10 + $0x130] sm:$0xff]  }
0x10d5   : > { %v3483_v26 = vadd.f32 %v3482_v23, %v2733_v16  ;;  %v3524_v30 = vadd.f32 %v3523_v24, %v2741_v17  ;;  %v3484_v29 = vpop.f32.mrb[38].mxu0  ;;  %v3525_v2 = vpop.f32.mrb[50].mxu1  ;;  %v6445_v15 = vld [vmem:[%s7907_s10 + $0x1b0] sm:$0xff]   ;;  %v6446_v16 = vld [vmem:[%s7907_s10 + $0x178] sm:$0xff]  }
0x10d6   : > { %v3774_v32 = vmax.f32 %v3481_v21, 0.0  ;;  %v3776_v33 = vmax.f32 %v3522_v22, 0.0  ;;  %v3485_v31 = vpop.f32.mrb[39].mxu0  ;;  %v3526_v53 = vpop.f32.mrb[51].mxu1  ;;  %v6447_v17 = vld [vmem:[%s7907_s10 + $0x1f8] sm:$0xff]  }
0x10d7   : > { %v3775_v35 = vmax.f32 %v3483_v26, 0.0  ;;  %v3777_v36 = vmax.f32 %v3524_v30, 0.0  ;;  %v6448_v2 = vld [vmem:[%s7907_s10 + $0x138] sm:$0xff]  }
0x10d8   : > { %v3790_v43 = vpack.c.bf16 %v3774_v32, %v3774_v32  ;;  %v3792_v37 = vpack.c.bf16 %v3776_v33, %v3776_v33  ;;  %v6449_v32 = vld [vmem:[%s7907_s10 + $0x1b8] sm:$0xff]  }
0x10d9   : > { %v3791_v38 = vpack.c.bf16 %v3775_v35, %v3775_v35  ;;  %v3793_v39 = vpack.c.bf16 %v3777_v36, %v3777_v36  ;;  %v6450_v36 = vld [vmem:[%s7907_s10 + $0x240] sm:$0xff]  }
0x10db   : > { %4862 = vmatprep.mubr.bf16.mxu0 %v3791_v38  ;;  %4902 = vmatprep.mubr.bf16.mxu1 %v3793_v39  ;;  %v6451_v38 = vld [vmem:[%s7907_s10 + $0x2c0] sm:$0xff]  }
0x10dc   : > { %4863 = vmatmul.mubr.bf16.vlgmr.msra.gmra.mrb[52].mxu0 %v3790_v43  ;;  %4903 = vmatmul.mubr.bf16.vlgmr.msra.gmra.mrb[64].mxu1 %v3792_v37  ;;  %v6452_v37 = vld [vmem:[%s7907_s10 + $0x200] sm:$0xff]  }
0x10dd   : > { %5965 = vmatpush3.bf16.msra.mxu0 %v6420_v40  ;;  %5987 = vmatpush3.bf16.msra.mxu1 %v6421_v42 }
0x10de   : > { %5966 = vmatprep.subr.bf16.mxu0 %v6422_v34  ;;  %5988 = vmatprep.subr.bf16.mxu1 %v6423_v44  ;;  %v6453_v34 = vld [vmem:[%s7907_s10 + $0x280] sm:$0xff]  }
0x10e1   : > { %5967 = vmatpush3.bf16.msra.mxu0 %v6424_v47  ;;  %5989 = vmatpush3.bf16.msra.mxu1 %v6425_v50  ;;  %v6454_v50 = vld [vmem:[%s7907_s10 + $0x248] sm:$0xff]  }
0x10e2   : > { %5968 = vmatprep.subr.bf16.mxu0 %v6426_v52  ;;  %5990 = vmatprep.subr.bf16.mxu1 %v6427_v55  ;;  %v6455_v52 = vld [vmem:[%s7907_s10 + $0x2c8] sm:$0xff]  }
0x10e3   : > { %v6456_v55 = vld [vmem:[%s7907_s10 + $0x208] sm:$0xff]  }
0x10e5   : > { %5969 = vmatpush3.bf16.msra.mxu0 %v6428_v49  ;;  %5991 = vmatpush3.bf16.msra.mxu1 %v6429_v56  ;;  %v6457_v49 = vld [vmem:[%s7907_s10 + $0x288] sm:$0xff]   ;;  %v6458_v56 = vld [vmem:[%s7907_s10 + $0x250] sm:$0xff]  }
0x10e6   : > { %5970 = vmatprep.subr.bf16.mxu0 %v6430_v27  ;;  %5992 = vmatprep.subr.bf16.mxu1 %v6431_v57  ;;  %v6459_v27 = vld [vmem:[%s7907_s10 + $0x2d0] sm:$0xff]  }
0x10e7   : > { %v6460_v57 = vld [vmem:[%s7907_s10 + $0x210] sm:$0xff]  }
0x10e9   : > { %5971 = vmatpush3.bf16.msra.mxu0 %v6432_v58  ;;  %5993 = vmatpush3.bf16.msra.mxu1 %v6433_v59  ;;  %v6461_v58 = vld [vmem:[%s7907_s10 + $0x290] sm:$0xff]   ;;  %v6462_v59 = vld [vmem:[%s7907_s10 + $0x258] sm:$0xff]  }
0x10ea   : > { %5972 = vmatprep.subr.bf16.mxu0 %v6434_v60  ;;  %5994 = vmatprep.subr.bf16.mxu1 %v6435_v48  ;;  %v6463_v60 = vld [vmem:[%s7907_s10 + $0x2d8] sm:$0xff]  }
0x10eb   : > { %v6464_v48 = vld [vmem:[%s7907_s10 + $0x218] sm:$0xff]  }
0x10ed   : > { %5973 = vmatpush3.bf16.msra.mxu0 %v6436_v51  ;;  %5995 = vmatpush3.bf16.msra.mxu1 %v6437_v46  ;;  %v6465_v51 = vld [vmem:[%s7907_s10 + $0x298] sm:$0xff]   ;;  %v6466_v46 = vld [vmem:[%s7907_s10 + $0x260] sm:$0xff]  }
0x10ee   : > { %5974 = vmatprep.subr.bf16.mxu0 %v6438_v62  ;;  %5996 = vmatprep.subr.bf16.mxu1 %v6439_v41  ;;  %v6467_v62 = vld [vmem:[%s7907_s10 + $0x2e0] sm:$0xff]  }
0x10ef   : > { %v6468_v41 = vld [vmem:[%s7907_s10 + $0x220] sm:$0xff]  }
0x10f1   : > { %5975 = vmatpush3.bf16.msra.mxu0 %v6440_v54  ;;  %5997 = vmatpush3.bf16.msra.mxu1 %v6441_v1  ;;  %v6469_v54 = vld [vmem:[%s7907_s10 + $0x2a0] sm:$0xff]   ;;  %v6470_v1 = vld [vmem:[%s7907_s10 + $0x268] sm:$0xff]  }
0x10f2   : > { %5976 = vmatprep.subr.bf16.mxu0 %v6442_v5  ;;  %5998 = vmatprep.subr.bf16.mxu1 %v6443_v61  ;;  %v6471_v5 = vld [vmem:[%s7907_s10 + $0x2e8] sm:$0xff]  }
0x10f3   : > { %v3562_v19 = vpop.f32.mrb[40].mxu0  ;;  %v3603_v20 = vpop.f32.mrb[52].mxu1  ;;  %v6472_v61 = vld [vmem:[%s7907_s10 + $0x228] sm:$0xff]  }
0x10f4   : > { %v3563_v21 = vadd.f32 %v3562_v19, %v2745_v6  ;;  %v3604_v22 = vadd.f32 %v3603_v20, %v2753_v7  ;;  %v3564_v23 = vpop.f32.mrb[41].mxu0  ;;  %v3605_v24 = vpop.f32.mrb[53].mxu1  ;;  %v6473_v6 = vld [vmem:[%s7907_s10 + $0x2a8] sm:$0xff]   ;;  %v6476_v19 = vld [vmem:[%s7907_s10 + $0x230] sm:$0xff]  }
0x10f5   : > { %v3565_v26 = vadd.f32 %v3564_v23, %v2749_v9  ;;  %v3606_v30 = vadd.f32 %v3605_v24, %v2757_v10  ;;  %v3566_v29 = vpop.f32.mrb[42].mxu0  ;;  %v3607_v11 = vpop.f32.mrb[54].mxu1  ;;  %5977 = vmatpush3.bf16.msra.mxu0 %v6444_v14  ;;  %5999 = vmatpush3.bf16.msra.mxu1 %v6445_v15  ;;  %v7696_v7 = vld [vmem:[%s7089_s11 + $0x8] sm:$0xff]  ;;  %v6474_v9 = vld [vmem:[%s7907_s10 + $0x270] sm:$0xff]  }
0x10f6   : > { %v3778_v33 = vmax.f32 %v3563_v21, 0.0  ;;  %v3780_v31 = vmax.f32 %v3604_v22, 0.0  ;;  %v3567_v53 = vpop.f32.mrb[43].mxu0  ;;  %v3608_v35 = vpop.f32.mrb[55].mxu1  ;;  %5978 = vmatprep.subr.bf16.mxu0 %v6446_v16  ;;  %6000 = vmatprep.subr.bf16.mxu1 %v6447_v17  ;;  %v6475_v10 = vld [vmem:[%s7907_s10 + $0x2f0] sm:$0xff]   ;;  %v2761_v14 = vrot.slane %v7696_v7, %v7133_v28  ;;  %v2769_v15 = vrot.slane %v7696_v7, %v7463_v12  ;;  %v6478_v21 = vld [vmem:[%s7907_s10 + $0x278] sm:$0xff]  }
0x10f7   : > { %v3779_v39 = vmax.f32 %v3565_v26, 0.0  ;;  %v3781_v40 = vmax.f32 %v3606_v30, 0.0  ;;  %v2765_v16 = vrot.slane %v7696_v7, %v7304_v18  ;;  %v2773_v17 = vrot.slane %v7696_v7, %v2740_v13  ;;  %v6477_v20 = vld [vmem:[%s7907_s10 + $0x2b0] sm:$0xff]   ;;  %v6479_v28 = vld [vmem:[%s7907_s10 + $0x2f8] sm:$0xff]  }
0x10f8   : > { %v3794_v44 = vpack.c.bf16 %v3778_v33, %v3778_v33  ;;  %v3796_v47 = vpack.c.bf16 %v3780_v31, %v3780_v31 }
0x10f9   : > { %v3795_v42 = vpack.c.bf16 %v3779_v39, %v3779_v39  ;;  %v3797_v43 = vpack.c.bf16 %v3781_v40, %v3781_v40  ;;  %5979 = vmatpush3.bf16.msra.mxu0 %v6448_v2  ;;  %6001 = vmatpush3.bf16.msra.mxu1 %v6449_v32  ;;  %v6480_v2 = vld [vmem:[%s7907_s10 + $0x238] sm:$0xff]  }
0x10fa   : > { %6008 = vmatprep.subr.bf16.mxu0 %v6450_v36  ;;  %6030 = vmatprep.subr.bf16.mxu1 %v6451_v38  ;;  %v6481_v32 = vld [vmem:[%s7907_s10 + $0x2b8] sm:$0xff]   ;;  %v6482_v36 = vld [vmem:[%s7907_s10 + $0x340] sm:$0xff]  }
0x10fb   : > { %4942 = vmatprep.mubr.bf16.mxu0 %v3795_v42  ;;  %4982 = vmatprep.mubr.bf16.mxu1 %v3797_v43  ;;  %v6483_v38 = vld [vmem:[%s7907_s10 + $0x3c0] sm:$0xff]  }
0x10fc   : > { %4943 = vmatmul.mubr.bf16.vlgmr.msra.gmra.mrb[56].mxu0 %v3794_v44  ;;  %4983 = vmatmul.mubr.bf16.vlgmr.msra.gmra.mrb[68].mxu1 %v3796_v47 }
0x10fd   : > { %6009 = vmatpush3.bf16.msra.mxu0 %v6452_v37  ;;  %6031 = vmatpush3.bf16.msra.mxu1 %v6453_v34  ;;  %v6484_v37 = vld [vmem:[%s7907_s10 + $0x300] sm:$0xff]  }
0x10fe   : > { %6010 = vmatprep.subr.bf16.mxu0 %v6454_v50  ;;  %6032 = vmatprep.subr.bf16.mxu1 %v6455_v52  ;;  %v6485_v34 = vld [vmem:[%s7907_s10 + $0x380] sm:$0xff]   ;;  %v6486_v50 = vld [vmem:[%s7907_s10 + $0x348] sm:$0xff]  }
0x10ff   : > { %v6487_v52 = vld [vmem:[%s7907_s10 + $0x3c8] sm:$0xff]  }
0x1101   : > { %6011 = vmatpush3.bf16.msra.mxu0 %v6456_v55  ;;  %6033 = vmatpush3.bf16.msra.mxu1 %v6457_v49  ;;  %v6488_v55 = vld [vmem:[%s7907_s10 + $0x308] sm:$0xff]  }
0x1102   : > { %6012 = vmatprep.subr.bf16.mxu0 %v6458_v56  ;;  %6034 = vmatprep.subr.bf16.mxu1 %v6459_v27  ;;  %v6489_v49 = vld [vmem:[%s7907_s10 + $0x388] sm:$0xff]   ;;  %v6490_v56 = vld [vmem:[%s7907_s10 + $0x350] sm:$0xff]  }
0x1103   : > { %v6491_v27 = vld [vmem:[%s7907_s10 + $0x3d0] sm:$0xff]  }
0x1105   : > { %6013 = vmatpush3.bf16.msra.mxu0 %v6460_v57  ;;  %6035 = vmatpush3.bf16.msra.mxu1 %v6461_v58  ;;  %v6492_v57 = vld [vmem:[%s7907_s10 + $0x310] sm:$0xff]  }
0x1106   : > { %6014 = vmatprep.subr.bf16.mxu0 %v6462_v59  ;;  %6036 = vmatprep.subr.bf16.mxu1 %v6463_v60  ;;  %v6493_v58 = vld [vmem:[%s7907_s10 + $0x390] sm:$0xff]   ;;  %v6494_v59 = vld [vmem:[%s7907_s10 + $0x358] sm:$0xff]  }
0x1107   : > { %v6495_v60 = vld [vmem:[%s7907_s10 + $0x3d8] sm:$0xff]  }
0x1109   : > { %6015 = vmatpush3.bf16.msra.mxu0 %v6464_v48  ;;  %6037 = vmatpush3.bf16.msra.mxu1 %v6465_v51  ;;  %v6496_v48 = vld [vmem:[%s7907_s10 + $0x318] sm:$0xff]  }
0x110a   : > { %6016 = vmatprep.subr.bf16.mxu0 %v6466_v46  ;;  %6038 = vmatprep.subr.bf16.mxu1 %v6467_v62  ;;  %v6497_v51 = vld [vmem:[%s7907_s10 + $0x398] sm:$0xff]   ;;  %v6498_v46 = vld [vmem:[%s7907_s10 + $0x360] sm:$0xff]  }
0x110b   : > { %v6499_v62 = vld [vmem:[%s7907_s10 + $0x3e0] sm:$0xff]  }
0x110d   : > { %6017 = vmatpush3.bf16.msra.mxu0 %v6468_v41  ;;  %6039 = vmatpush3.bf16.msra.mxu1 %v6469_v54  ;;  %v6500_v41 = vld [vmem:[%s7907_s10 + $0x320] sm:$0xff]  }
0x110e   : > { %6018 = vmatprep.subr.bf16.mxu0 %v6470_v1  ;;  %6040 = vmatprep.subr.bf16.mxu1 %v6471_v5  ;;  %v6501_v54 = vld [vmem:[%s7907_s10 + $0x3a0] sm:$0xff]   ;;  %v6502_v1 = vld [vmem:[%s7907_s10 + $0x368] sm:$0xff]  }
0x110f   : > { %v6503_v5 = vld [vmem:[%s7907_s10 + $0x3e8] sm:$0xff]  }
0x1111   : > { %6019 = vmatpush3.bf16.msra.mxu0 %v6472_v61  ;;  %6041 = vmatpush3.bf16.msra.mxu1 %v6473_v6  ;;  %v6504_v61 = vld [vmem:[%s7907_s10 + $0x328] sm:$0xff]  }
0x1112   : > { %6020 = vmatprep.subr.bf16.mxu0 %v6474_v9  ;;  %6042 = vmatprep.subr.bf16.mxu1 %v6475_v10  ;;  %v6505_v6 = vld [vmem:[%s7907_s10 + $0x3a8] sm:$0xff]   ;;  %v6506_v9 = vld [vmem:[%s7907_s10 + $0x370] sm:$0xff]  }
0x1113   : > { %v3644_v22 = vpop.f32.mrb[44].mxu0  ;;  %v3685_v23 = vpop.f32.mrb[56].mxu1  ;;  %v6507_v10 = vld [vmem:[%s7907_s10 + $0x3f0] sm:$0xff]  }
0x1114   : > { %v3645_v12 = vadd.f32 %v3644_v22, %v2761_v14  ;;  %v3686_v24 = vadd.f32 %v3685_v23, %v2769_v15  ;;  %v3646_v26 = vpop.f32.mrb[45].mxu0  ;;  %v3687_v30 = vpop.f32.mrb[57].mxu1  ;;  %v2777_v14 = vrot.slane %v7696_v7, %v2744_v63  ;;  %v2785_v15 = vrot.slane %v7696_v7, %v2752_v0  ;;  %v6510_v63 = vld [vmem:[%s7907_s10 + $0x378] sm:$0xff]  }
0x1115   : > { %v3647_v18 = vadd.f32 %v3646_v26, %v2765_v16  ;;  %v3688_v29 = vadd.f32 %v3687_v30, %v2773_v17  ;;  %v3648_v11 = vpop.f32.mrb[46].mxu0  ;;  %v3689_v13 = vpop.f32.mrb[58].mxu1  ;;  %6021 = vmatpush3.bf16.msra.mxu0 %v6476_v19  ;;  %6043 = vmatpush3.bf16.msra.mxu1 %v6477_v20  ;;  %v2781_v16 = vrot.slane %v7696_v7, %v2748_v3  ;;  %v6508_v19 = vld [vmem:[%s7907_s10 + $0x330] sm:$0xff]  }
0x1116   : > { %v3782_v33 = vmax.f32 %v3645_v12, 0.0  ;;  %v3784_v31 = vmax.f32 %v3686_v24, 0.0  ;;  %v3649_v53 = vpop.f32.mrb[47].mxu0  ;;  %v3690_v35 = vpop.f32.mrb[59].mxu1  ;;  %6022 = vmatprep.subr.bf16.mxu0 %v6478_v21  ;;  %6044 = vmatprep.subr.bf16.mxu1 %v6479_v28  ;;  %v2789_v17 = vrot.slane %v7696_v7, %v2756_v4  ;;  %v6509_v20 = vld [vmem:[%s7907_s10 + $0x3b0] sm:$0xff]   ;;  %v6511_v21 = vld [vmem:[%s7907_s10 + $0x3f8] sm:$0xff]  }
0x1117   : > { %v3783_v39 = vmax.f32 %v3647_v18, 0.0  ;;  %v3785_v40 = vmax.f32 %v3688_v29, 0.0  ;;  %v6512_v4 = vld [vmem:[%s7907_s10 + $0x338] sm:$0xff]  }
0x1118   : > { %v3798_v44 = vpack.c.bf16 %v3782_v33, %v3782_v33  ;;  %v3800_v47 = vpack.c.bf16 %v3784_v31, %v3784_v31  ;;  %v6513_v7 = vld [vmem:[%s7907_s10 + $0x3b8] sm:$0xff]  }
0x1119   : > { %v3799_v42 = vpack.c.bf16 %v3783_v39, %v3783_v39  ;;  %v3801_v43 = vpack.c.bf16 %v3785_v40, %v3785_v40  ;;  %6023 = vmatpush3.bf16.msra.mxu0 %v6480_v2  ;;  %6045 = vmatpush3.bf16.msra.mxu1 %v6481_v32 }
0x111a   : > { %6052 = vmatprep.subr.bf16.mxu0 %v6482_v36  ;;  %6074 = vmatprep.subr.bf16.mxu1 %v6483_v38 }
0x111b   : > { %5022 = vmatprep.mubr.bf16.mxu0 %v3799_v42  ;;  %5062 = vmatprep.mubr.bf16.mxu1 %v3801_v43 }
0x111c   : > { %5023 = vmatmul.mubr.bf16.vlgmr.msra.gmra.mrb[60].mxu0 %v3798_v44  ;;  %5063 = vmatmul.mubr.bf16.vlgmr.msra.gmra.mrb[72].mxu1 %v3800_v47 }
0x111d   : > { %6053 = vmatpush3.bf16.msra.mxu0 %v6484_v37  ;;  %6075 = vmatpush3.bf16.msra.mxu1 %v6485_v34 }
0x111e   : > { %6054 = vmatprep.subr.bf16.mxu0 %v6486_v50  ;;  %6076 = vmatprep.subr.bf16.mxu1 %v6487_v52 }
0x1121   : > { %6055 = vmatpush3.bf16.msra.mxu0 %v6488_v55  ;;  %6077 = vmatpush3.bf16.msra.mxu1 %v6489_v49 }
0x1122   : > { %6056 = vmatprep.subr.bf16.mxu0 %v6490_v56  ;;  %6078 = vmatprep.subr.bf16.mxu1 %v6491_v27 }
0x1125   : > { %6057 = vmatpush3.bf16.msra.mxu0 %v6492_v57  ;;  %6079 = vmatpush3.bf16.msra.mxu1 %v6493_v58 }
0x1126   : > { %6058 = vmatprep.subr.bf16.mxu0 %v6494_v59  ;;  %6080 = vmatprep.subr.bf16.mxu1 %v6495_v60 }
0x1129   : > { %6059 = vmatpush3.bf16.msra.mxu0 %v6496_v48  ;;  %6081 = vmatpush3.bf16.msra.mxu1 %v6497_v51 }
0x112a   : > { %6060 = vmatprep.subr.bf16.mxu0 %v6498_v46  ;;  %6082 = vmatprep.subr.bf16.mxu1 %v6499_v62 }
0x112d   : > { %6061 = vmatpush3.bf16.msra.mxu0 %v6500_v41  ;;  %6083 = vmatpush3.bf16.msra.mxu1 %v6501_v54 }
0x112e   : > { %6062 = vmatprep.subr.bf16.mxu0 %v6502_v1  ;;  %6084 = vmatprep.subr.bf16.mxu1 %v6503_v5 }
0x1131   : > { %6063 = vmatpush3.bf16.msra.mxu0 %v6504_v61  ;;  %6085 = vmatpush3.bf16.msra.mxu1 %v6505_v6 }
0x1132   : > { %6064 = vmatprep.subr.bf16.mxu0 %v6506_v9  ;;  %6086 = vmatprep.subr.bf16.mxu1 %v6507_v10 }
0x1133   : > { %v3726_v28 = vpop.f32.mrb[48].mxu0  ;;  %v3767_v0 = vpop.f32.mrb[60].mxu1 }
0x1134   : > { %v3727_v22 = vadd.f32 %v3726_v28, %v2777_v14  ;;  %v3768_v23 = vadd.f32 %v3767_v0, %v2785_v15  ;;  %v3728_v12 = vpop.f32.mrb[49].mxu0  ;;  %v3769_v24 = vpop.f32.mrb[61].mxu1 }
0x1135   : > { %v3729_v26 = vadd.f32 %v3728_v12, %v2781_v16  ;;  %v3770_v3 = vadd.f32 %v3769_v24, %v2789_v17  ;;  %v3730_v30 = vpop.f32.mrb[50].mxu0  ;;  %v3771_v25 = vpop.f32.mrb[62].mxu1  ;;  %6065 = vmatpush3.bf16.msra.mxu0 %v6508_v19  ;;  %6087 = vmatpush3.bf16.msra.mxu1 %v6509_v20 }
0x1136   : > { %v3786_v18 = vmax.f32 %v3727_v22, 0.0  ;;  %v3788_v29 = vmax.f32 %v3768_v23, 0.0  ;;  %v3731_v11 = vpop.f32.mrb[51].mxu0  ;;  %v3772_v13 = vpop.f32.mrb[63].mxu1  ;;  %6066 = vmatprep.subr.bf16.mxu0 %v6510_v63  ;;  %6088 = vmatprep.subr.bf16.mxu1 %v6511_v21 }
0x1137   : > { %v3787_v2 = vmax.f32 %v3729_v26, 0.0  ;;  %v3789_v32 = vmax.f32 %v3770_v3, 0.0  ;;  %v5841_v3 = vld [vmem:[%s1052_s12] ss:$0 sm:$0xff] }
0x1138   : > { %v3802_v53 = vpack.c.bf16 %v3786_v18, %v3786_v18  ;;  %v3804_v35 = vpack.c.bf16 %v3788_v29, %v3788_v29 }
0x1139   : > { %v3803_v33 = vpack.c.bf16 %v3787_v2, %v3787_v2  ;;  %v3805_v31 = vpack.c.bf16 %v3789_v32, %v3789_v32  ;;  %6067 = vmatpush3.bf16.msra.mxu0 %v6512_v4  ;;  %6089 = vmatpush3.bf16.msra.mxu1 %v6513_v7 }
0x113b   : > { %5102 = vmatprep.mubr.bf16.mxu0 %v3803_v33  ;;  %5142 = vmatprep.mubr.bf16.mxu1 %v3805_v31 }
0x113c   : > { %5103 = vmatmul.mubr.bf16.vlgmr.msra.gmra.mrb[64].mxu0 %v3802_v53  ;;  %5143 = vmatmul.mubr.bf16.vlgmr.msra.gmra.mrb[76].mxu1 %v3804_v35 }
0x11af   : > { %v5936_v36 = vpop.f32.mrb[52].mxu0  ;;  %v5958_v38 = vpop.f32.mrb[64].mxu1 }
0x11b0   : > { %v5937_v39 = vpop.f32.mrb[53].mxu0  ;;  %v5959_v40 = vpop.f32.mrb[65].mxu1 }
0x11b1   : > { %v5938_v42 = vadd.f32 %v5937_v39, %v5936_v36  ;;  %v5960_v43 = vadd.f32 %v5959_v40, %v5958_v38  ;;  %v5939_v37 = vpop.f32.mrb[54].mxu0  ;;  %v5961_v34 = vpop.f32.mrb[66].mxu1 }
0x11b2   : > { %v5940_v44 = vpop.f32.mrb[55].mxu0  ;;  %v5962_v47 = vpop.f32.mrb[67].mxu1 }
0x11b3   : > { %v4905_v50 = vadd.f32 %v5960_v43, %v5938_v42 }
0x11cf   : > { %v5980_v52 = vpop.f32.mrb[56].mxu0  ;;  %v6002_v55 = vpop.f32.mrb[68].mxu1 }
0x11d0   : > { %v5981_v49 = vpop.f32.mrb[57].mxu0  ;;  %v6003_v56 = vpop.f32.mrb[69].mxu1 }
0x11d1   : > { %v5982_v27 = vadd.f32 %v5981_v49, %v5980_v52  ;;  %v6004_v57 = vadd.f32 %v6003_v56, %v6002_v55  ;;  %v5983_v58 = vpop.f32.mrb[58].mxu0  ;;  %v6005_v59 = vpop.f32.mrb[70].mxu1 }
0x11d2   : > { %v5984_v60 = vpop.f32.mrb[59].mxu0  ;;  %v6006_v48 = vpop.f32.mrb[71].mxu1 }
0x11d3   : > { %v4945_v51 = vadd.f32 %v5982_v27, %v4905_v50 }
0x11d5   : > { %v4985_v46 = vadd.f32 %v6004_v57, %v4945_v51 }
0x11ef   : > { %v6024_v62 = vpop.f32.mrb[60].mxu0  ;;  %v6046_v41 = vpop.f32.mrb[72].mxu1 }
0x11f0   : > { %v6025_v54 = vpop.f32.mrb[61].mxu0  ;;  %v6047_v1 = vpop.f32.mrb[73].mxu1 }
0x11f1   : > { %v6026_v5 = vadd.f32 %v6025_v54, %v6024_v62  ;;  %v6048_v61 = vadd.f32 %v6047_v1, %v6046_v41  ;;  %v6027_v6 = vpop.f32.mrb[62].mxu0  ;;  %v6049_v9 = vpop.f32.mrb[74].mxu1 }
0x11f2   : > { %v6028_v10 = vpop.f32.mrb[63].mxu0  ;;  %v6050_v14 = vpop.f32.mrb[75].mxu1 }
0x11f3   : > { %v5025_v15 = vadd.f32 %v6026_v5, %v4985_v46 }
0x11f5   : > { %v5065_v16 = vadd.f32 %v6048_v61, %v5025_v15 }
0x120f   : > { %v6068_v17 = vpop.f32.mrb[64].mxu0  ;;  %v6090_v19 = vpop.f32.mrb[76].mxu1 }
0x1210   : > { %v6069_v20 = vpop.f32.mrb[65].mxu0  ;;  %v6091_v63 = vpop.f32.mrb[77].mxu1 }
0x1211   : > { %v6070_v21 = vadd.f32 %v6069_v20, %v6068_v17  ;;  %v6092_v28 = vadd.f32 %v6091_v63, %v6090_v19  ;;  %v6071_v0 = vpop.f32.mrb[66].mxu0  ;;  %v6093_v22 = vpop.f32.mrb[78].mxu1 }
0x1212   : > { %v6072_v23 = vpop.f32.mrb[67].mxu0  ;;  %v6094_v12 = vpop.f32.mrb[79].mxu1 }
0x1213   : > { %v5105_v24 = vadd.f32 %v6070_v21, %v5065_v16  ;;  %5162 = sbr.rel (%p5842_p8) target bundleno = 4636 (0x121c), region = 124 }
0x1215   : > { %v5145_v26 = vadd.f32 %v6092_v28, %v5105_v24 }
0x1217   : > { %v5150_v30 = vadd.f32 %v5145_v26, %v7415_v45 }
0x1219   : > { %v5158_v25 = vadd.f32 %v5841_v3, %v5150_v30 }
0x121b   : > { %5163 = vst [vmem:[%s7099_s13] sm:$0xff] %v5158_v25 }
0x121c PF: > { %s7910_s27 = sld [smem:[#allocation10_spill]] }
0x1222   : > { %p5843_p2 = scmp.ne.s32.totalorder %s7910_s27, 1 }
0x1223   : > { %5170 = vadd.xlane.f32.xlu0 (!%p5843_p2), %v5158_v25  ;;  %s7911_s20 = sld [smem:[#allocation36_spill]] (!%p5843_p2)  ;;  %s7912_s28 = sld [smem:[#allocation37_spill]] (!%p5843_p2) }
0x1224   : > { %5167 = sbr.rel (%p5843_p2) target bundleno = 4970 (0x136a), region = 128 }
0x1229   : > { %v5844_v36 = vld [vmem:[%s7911_s20] ss:$0 sm:$0xff] (!%p5843_p2) }
0x122a   : > { %v5845_v39 = vld [vmem:[%s7912_s28] ss:$0 sm:$0xff] (!%p5843_p2) }
0x12b0   : > { %v5171_v4 = vpop.xlane.xlu0 %5170 }
0x12b1   : > { %v5172_v7 = vmul.f32 0.03125, %v5171_v4 }
0x12b3   : > { %v5173_v18 = vsub.f32 %v5158_v25, %v5172_v7 }
0x12b5   : > { %v5174_v29 = vmul.f32 %v5173_v18, %v5173_v18  ;;  %v5194_v38 = vmul.f32 %v5844_v36, %v5173_v18 }
0x12b7   : > { %v5175_v11 = vmul.f32 %v7107_v8, %v5174_v29 }
0x12b9   : > { %5176 = vadd.xlane.f32.xlu0 %v5175_v11 }
0x1346   : > { %v5177_v13 = vpop.xlane.xlu0 %5176 }
0x1347   : > { %v5178_v45 = vmul.f32 0.032258064, %v5177_v13 }
0x1349   : > { %6561 = vrsqrt.f32 %v5178_v45  ;;  %vm5181_vm13 = vcmp.eq.f32.partialorder %v5178_v45, inf  ;;  %v5184_v33 = vand.u32 2147483648, %v5178_v45  ;;  %vm5183_vm14 = vcmp.eq.f32.partialorder %v5178_v45, 0.0 }
0x1353   : > { %v6562_v2 = vpop.eup %6561 }
0x1354   : > { %v5180_v32 = vmul.f32 %v6562_v2, %v5178_v45 }
0x1356   : > { %v5182_v31 = vsel %vm5181_vm13, %v5178_v45, %v5180_v32 }
0x1357   : > { %v5185_v53 = vsel %vm5183_vm14, %v5184_v33, %v5182_v31 }
0x1358   : > { %v5186_v35 = vadd.f32 1e-06, %v5185_v53 }
0x135a   : > { %6563 = vrcp.f32 %v5186_v35 }
0x1364   : > { %v6564_v8 = vpop.eup %6563 }
0x1365   : > { %v5195_v40 = vmul.f32 %v6564_v8, %v5194_v38 }
0x1367   : > { %v5202_v42 = vadd.f32 %v5845_v39, %v5195_v40 }
0x1369   : > { %5203 = vst [vmem:[%s7099_s13] sm:$0xff] %v5202_v42 }
0x136a PF: > { %s7913_s2 = sld [smem:[#allocation13_spill]]  ;;  %s7914_s3 = sld [smem:[#allocation8_spill]] }
0x136b   : > { %s7915_s28 = sld [smem:[#allocation9_spill]]  ;;  %s7916_s29 = sld [smem:[#allocation16_spill]] }
0x136c   : > { %s7917_s30 = sld [smem:[#allocation11_spill]]  ;;  %s7918_s4 = sld [smem:[#allocation12_spill]] }
0x136d   : > { %s7919_s0 = sld [smem:[#allocation14_spill]]  ;;  %s7920_s23 = sld [smem:[#allocation15_spill]] }
0x1370   : > { %s38_s1 = sadd.s32 1, %s7913_s2  }
0x1371   : > { %p35_p3 = scmp.ge.s32.totalorder %s38_s1, 6  }
0x1373   :  { %37 = sbr.rel (!%p35_p3) target bundleno = 27 (0x1b), region = 227 }
0x137a   :  { %5223 = vsyncpa [#allocation3], 1 }
0x137b   :  { %5225 = vsyncpa [#allocation3 + $0x1], 1 }
0x137c   :  { %5226 = vsyncpa [#allocation5], 1 }
0x137d   :  { %5228 = vsyncpa [#allocation5 + $0x1], 1 }

</bundles_post_ra>
